<compile_context>
chip_gen: v7x
topology: tpu7x:2x2x1
jax: 0.10.0
libtpu: 0.0.40
codegen_flags: <defaults>
</compile_context>

<pallas_src>
import functools

import jax
import jax.numpy as jnp
from jax import lax
from jax.experimental import pallas as pl
from jax.experimental.pallas import tpu as pltpu


def _topk_mean_last(x, k, col=None):
    """Exact top-k mean over the last axis (first-occurrence ties), static k.

    Returns shape x.shape[:-1] + (1,). Fast path for k == 1; for k > 1 the caller
    may pass a pre-built iota `col` (shape == x.shape) so it is materialised once.
    """
    if k == 1:
        return jnp.max(x, axis=-1, keepdims=True)
    m_last = x.shape[-1]
    if col is None:
        col = lax.broadcasted_iota(jnp.int32, x.shape, x.ndim - 1)
    acc = jnp.zeros(x.shape[:-1] + (1,), jnp.float32)
    cur = x
    for i in range(k):
        mx = jnp.max(cur, axis=-1, keepdims=True)
        acc = acc + mx
        if i + 1 < k:  # dead work on the last iteration -> skip
            idx = jnp.min(jnp.where(cur == mx, col, m_last), axis=-1, keepdims=True)
            cur = jnp.where(col == idx, -jnp.inf, cur)
    return acc / float(k)


def _mn4_kernel(q_ref, s_ref, o_ref, *, n_way, q_per, m_q, m_s, topk, matmul_dtype):
    # q_ref: (BT, Q*MQ, C)   s_ref: (BT, C, N*MS)   o_ref: (BT, Q, N)
    eps = 1e-12
    nm = n_way * m_s
    qm = q_per * m_q
    bt = q_ref.shape[0]

    # ---- cosine normalisation along the channel axis (EUP rsqrt, no divide) ----
    # F.normalize semantics: x / max(||x||, eps)  ==  x * rsqrt(max(||x||^2, eps^2))
    q_feat = q_ref[...].astype(jnp.float32)                               # [BT, QM, C]
    q_ss = jnp.sum(q_feat * q_feat, axis=-1, keepdims=True)
    q_feat = q_feat * lax.rsqrt(jnp.maximum(q_ss, eps * eps))

    s_feat = s_ref[...].astype(jnp.float32)                               # [BT, C, NM]
    s_ss = jnp.sum(s_feat * s_feat, axis=1, keepdims=True)
    s_feat = s_feat * lax.rsqrt(jnp.maximum(s_ss, eps * eps))

    # ---- ONE fused batched similarity matmul per grid step (B_TILE episodes) ----
    # lhs contraction is on lanes, rhs contraction on sublanes -> standard MXU feed,
    # no in-kernel transpose.  matmul_dtype=bf16 at realistic shapes ~3-4x MXU
    # throughput (accumulation stays f32 via preferred_element_type).
    sm = lax.dot_general(q_feat.astype(matmul_dtype), s_feat.astype(matmul_dtype),
                         (((2,), (1,)), ((0,), (0,))),
                         preferred_element_type=jnp.float32)              # [BT, QM, NM]

    # ---- mutual-NN mask (compensate_for_single == False path), fully batched ----
    # query-side argmax over the merged (class-major) support axis, first-occurrence
    # tie-break via the iota-min trick.
    col = lax.broadcasted_iota(jnp.int32, (bt, qm, nm), 2)
    cmax = jnp.max(sm, axis=2, keepdims=True)
    qn = jnp.min(jnp.where(sm == cmax, col, nm), axis=2, keepdims=True)   # [BT, QM, 1]

    # per-query support-side argmax: view rows as (q, MQ) — MQ is a multiple of 8,
    # so this sublane split is relayout-free.
    sm5 = sm.reshape(bt, q_per, m_q, nm)                                  # [BT, q, MQ, NM]
    row5 = lax.broadcasted_iota(jnp.int32, (bt, q_per, m_q, nm), 2)
    col5 = lax.broadcasted_iota(jnp.int32, (bt, q_per, m_q, nm), 3)
    rmax = jnp.max(sm5, axis=2, keepdims=True)                            # [BT, q, 1, NM]
    sn = jnp.min(jnp.where(sm5 == rmax, row5, m_q), axis=2, keepdims=True)
    qn5 = qn.reshape(bt, q_per, m_q, 1)
    mutual = (qn5 == col5) & (sn == row5)                                 # [BT, q, MQ, NM]
    mask = (jnp.sum(mutual.astype(jnp.float32), axis=3, keepdims=True) > 0.0
            ).astype(jnp.float32)                                         # [BT, q, MQ, 1]

    # ---- per-class NBNN top-k + masked aggregation ----
    # one shared iota for all classes (only needed when k > 1)
    col_ms = None
    if topk > 1:
        col_ms = lax.broadcasted_iota(jnp.int32, (bt, qm, m_s), 2)
    qv_cols = []
    for n in range(n_way):
        blk = sm[:, :, n * m_s:(n + 1) * m_s]                             # [BT, QM, MS]
        topv_n = _topk_mean_last(blk, topk, col_ms)                       # [BT, QM, 1]
        topv_n = topv_n.reshape(bt, q_per, m_q, 1)                        # sublane split
        # class score: VPU multiply + sublane reduce (no width-1 MXU matmul)
        qv_cols.append(jnp.sum(topv_n * mask, axis=2))                    # [BT, q, 1]

    # single dense writeback per grid step
    o_ref[...] = jnp.concatenate(qv_cols, axis=-1)                        # [BT, q, N]


def _choose_episodes_per_block(b, c, qm, nm, requested):
    """Grow the episode block as large as VMEM comfortably allows (don't shrink tiles)."""
    if requested is not None:
        return max(1, min(int(requested), b))
    per_ep_in = 4 * c * (qm + nm)            # f32 input-block bytes per episode
    per_ep_tmp = 4 * qm * nm * 8             # sm + iotas + masks, rough upper bound
    budget = 8 << 20                         # conservative vs v5e's 16 MiB scoped default
    bt = max(1, budget // max(1, 4 * per_ep_in + per_ep_tmp))
    if b >= 2:
        # keep >= 2 grid steps so the "parallel" batch axis still splits across
        # the two v7x TensorCores (harmless on single-TC v5e/v6e).
        bt = min(bt, pl.cdiv(b, 2))
    return max(1, min(bt, b))


def mn4_query_value(support_xf, query_xf, *, n_way, k_shot, nbnn_topk,
                    episodes_per_block=None, matmul_dtype=jnp.float32):
    """Returns query_value [b, q, n_way] (float32) — the pre-softmax class scores."""
    b, s, c, h, w = support_xf.shape
    q = query_xf.shape[1]
    assert s == n_way * k_shot
    m_q = h * w
    m_s = k_shot * h * w
    qm, nm = q * m_q, n_way * m_s
    assert 1 <= nbnn_topk <= m_s, "nbnn_topk must be in [1, k_shot*h*w]"

    # glue reshapes (same semantics as InnerproductSimilarity):
    #   support lanes ordered class-major: (n_way, k_shot, h, w) -> [b, C, N*MS]
    #   query rows ordered query-major, channels on lanes:        -> [b, Q*MQ, C]
    sup = support_xf.reshape(b, n_way, k_shot, c, h, w)
    sup = jnp.transpose(sup, (0, 3, 1, 2, 4, 5)).reshape(b, c, nm)
    qry = jnp.transpose(query_xf, (0, 1, 3, 4, 2)).reshape(b, qm, c)

    bt = _choose_episodes_per_block(b, c, qm, nm, episodes_per_block)
    n_blocks = pl.cdiv(b, bt)
    b_pad = n_blocks * bt
    if b_pad != b:
        qry = jnp.pad(qry, ((0, b_pad - b), (0, 0), (0, 0)))
        sup = jnp.pad(sup, ((0, b_pad - b), (0, 0), (0, 0)))

    # VMEM note: 2 inputs x 2 pipeline buffers x block bytes (+ f32 intermediates).
    # Raise the scoped limit only if the block approaches v5e's 16 MiB default;
    # at v6e/v7x defaults (32 MiB) this leaves ample headroom.
    block_in_bytes = 4 * bt * c * (qm + nm)
    vmem_limit = None
    if 4 * block_in_bytes > (12 << 20):
        vmem_limit = min(16 * block_in_bytes, 64 << 20)

    kernel = functools.partial(_mn4_kernel, n_way=n_way, q_per=q,
                               m_q=m_q, m_s=m_s, topk=nbnn_topk,
                               matmul_dtype=matmul_dtype)
    out = pl.pallas_call(
        kernel,
        out_shape=jax.ShapeDtypeStruct((b_pad, q, n_way), jnp.float32),
        grid_spec=pltpu.PrefetchScalarGridSpec(
            num_scalar_prefetch=0,
            grid=(n_blocks,),
            in_specs=[
                pl.BlockSpec((bt, qm, c), lambda i: (i, 0, 0)),
                pl.BlockSpec((bt, c, nm), lambda i: (i, 0, 0)),
            ],
            out_specs=pl.BlockSpec((bt, q, n_way), lambda i: (i, 0, 0)),
        ),
        # episode blocks are independent -> parallel batch axis (2 TCs on v7x)
        compiler_params=pltpu.CompilerParams(
            dimension_semantics=("parallel",),
            vmem_limit_bytes=vmem_limit,
        ),
    )(qry, sup)
    return out[:b]


def mn4_forward_eval(support_xf, support_y, query_xf, query_y, *, n_way, k_shot,
                     nbnn_topk, episodes_per_block=None, matmul_dtype=jnp.float32):
    """Eval-mode forward: rewards (1 if prediction == label) per query."""
    # TODO(synk): training branch (nn.CrossEntropyLoss on query_value / temperature) not kernelized.
    # TODO(synk): compensate_for_single=True branch (encoder != 'FourLayer_64F') not implemented.
    del support_y  # support labels are assumed class-ordered (as in the torch pipeline)
    b, q = query_xf.shape[:2]
    qv = mn4_query_value(support_xf, query_xf,
                         n_way=n_way, k_shot=k_shot, nbnn_topk=nbnn_topk,
                         episodes_per_block=episodes_per_block,
                         matmul_dtype=matmul_dtype)
    qv = qv.reshape(b * q, n_way)
    pred = jnp.argmax(qv, axis=1)
    rewards = (pred == query_y.reshape(b * q)).astype(jnp.int32)
    return rewards, qv


def mn4_reference(support_xf, query_xf, *, n_way, k_shot, nbnn_topk):
    """Pure-JAX reference replicating the torch semantics (for correctness check)."""
    b, s, c, h, w = support_xf.shape
    q = query_xf.shape[1]
    m_q, m_s = h * w, k_shot * h * w
    sup = support_xf.reshape(b, n_way, k_shot, c, h, w)
    sup = jnp.transpose(sup, (0, 1, 3, 2, 4, 5)).reshape(b, n_way, c, m_s)
    qry = query_xf.reshape(b, q, c, m_q)
    sup = sup / jnp.maximum(jnp.linalg.norm(sup, axis=2, keepdims=True), 1e-12)
    qry = qry / jnp.maximum(jnp.linalg.norm(qry, axis=2, keepdims=True), 1e-12)
    simi = jnp.einsum('bqcm,bncs->bqnms', qry, sup)                    # [b,q,N,MQ,MS]
    sm = jnp.transpose(simi, (0, 1, 3, 2, 4)).reshape(b, q, m_q, n_way * m_s)
    qn = jnp.argmax(sm, axis=-1)                                       # [b,q,MQ]
    sn = jnp.argmax(sm, axis=-2)                                       # [b,q,N*MS]
    gathered = jnp.take_along_axis(sn, qn, axis=-1)                    # [b,q,MQ]
    mask = (gathered == jnp.arange(m_q)[None, None, :]).astype(jnp.float32)
    topv = (-jnp.sort(-simi, axis=-1))[..., :nbnn_topk].mean(-1)       # [b,q,N,MQ]
    qv = jnp.sum(topv * mask[:, :, None, :], axis=-1)                  # [b,q,N]
    return qv.reshape(b * q, n_way)


if __name__ == "__main__":
    # cfg: n_way=3, k_shot=2, model.nbnn_topk=1, model.encoder='FourLayer_64F'
    n_way, k_shot = 3, 2
    b, c, h, w = 8, 32, 4, 4          # b=8 -> episode blocking: 2 grid steps x 4 episodes
    q = 3
    s = n_way * k_shot

    key = jax.random.PRNGKey(0)
    k1, k2, k3 = jax.random.split(key, 3)
    support_xf = jax.random.normal(k1, (b, s, c, h, w), jnp.float32)
    query_xf = jax.random.normal(k2, (b, q, c, h, w), jnp.float32)
    query_y = jax.random.randint(k3, (b, q), 0, n_way)
    support_y = jnp.tile(jnp.repeat(jnp.arange(n_way), k_shot)[None, :], (b, 1))

    # exercise both the configured topk=1 fast path and the general k>1 path
    for topk in (1, 2):
        rewards, qv = mn4_forward_eval(support_xf, support_y, query_xf, query_y,
                                       n_way=n_way, k_shot=k_shot, nbnn_topk=topk)
        jax.block_until_ready(qv)
        jax.block_until_ready(rewards)
        ref = mn4_reference(support_xf, query_xf,
                            n_way=n_way, k_shot=k_shot, nbnn_topk=topk)
        # tolerance covers rsqrt-vs-divide normalisation differences
        assert jnp.allclose(qv, ref, atol=2e-3, rtol=2e-3), (topk, qv, ref)

    # also exercise a non-divisible batch block (padding path), forced block size
    rewards, qv = mn4_forward_eval(support_xf, support_y, query_xf, query_y,
                                   n_way=n_way, k_shot=k_shot, nbnn_topk=1,
                                   episodes_per_block=3)
    jax.block_until_ready(qv)
    ref = mn4_reference(support_xf, query_xf, n_way=n_way, k_shot=k_shot, nbnn_topk=1)
    assert jnp.allclose(qv, ref, atol=2e-3, rtol=2e-3)

    print("KERNEL_OK")
</pallas_src>

<mosaic_0001>
module attributes {stable_mosaic.version = 11 : i64} {
  func.func @_mn4_kernel(%arg0: i32, %arg1: memref<4x48x32xf32, #tpu.memory_space<vmem>>, %arg2: memref<4x32x96xf32, #tpu.memory_space<vmem>>, %arg3: memref<4x3x3xf32, #tpu.memory_space<vmem>>) attributes {dimension_semantics = [#tpu.dimension_semantics<parallel>], iteration_bounds = array<i64: 2>, scalar_prefetch = 0 : i64, scratch_operands = 0 : i64, tpu.core_type = #tpu.core_type<tc>, window_params = [{transform_indices = @transform_0, window_bounds = array<i64: 4, 48, 32>}, {transform_indices = @transform_1, window_bounds = array<i64: 4, 32, 96>}, {transform_indices = @transform_2, window_bounds = array<i64: 4, 3, 3>}]} {
    %c0 = arith.constant 0 : index
    %c0_0 = arith.constant 0 : index
    %c0_1 = arith.constant 0 : index
    %0 = vector.load %arg1[%c0, %c0_0, %c0_1] : memref<4x48x32xf32, #tpu.memory_space<vmem>>, vector<4x48x32xf32>
    %1 = arith.mulf %0, %0 : vector<4x48x32xf32>
    %cst = arith.constant dense<0.000000e+00> : vector<4x48xf32>
    %2 = vector.multi_reduction <add>, %1, %cst [2] : vector<4x48x32xf32> to vector<4x48xf32>
    %3 = vector.shape_cast %2 : vector<4x48xf32> to vector<4x48x1xf32>
    %cst_2 = arith.constant 1.000000e-24 : f32
    %4 = vector.broadcast %cst_2 : f32 to vector<4x48x1xf32>
    %5 = arith.maximumf %3, %4 : vector<4x48x1xf32>
    %6 = math.rsqrt %5 : vector<4x48x1xf32>
    %7 = vector.broadcast %6 : vector<4x48x1xf32> to vector<4x48x32xf32>
    %8 = arith.mulf %0, %7 : vector<4x48x32xf32>
    %c0_3 = arith.constant 0 : index
    %c0_4 = arith.constant 0 : index
    %c0_5 = arith.constant 0 : index
    %9 = vector.load %arg2[%c0_3, %c0_4, %c0_5] : memref<4x32x96xf32, #tpu.memory_space<vmem>>, vector<4x32x96xf32>
    %10 = arith.mulf %9, %9 : vector<4x32x96xf32>
    %cst_6 = arith.constant dense<0.000000e+00> : vector<4x96xf32>
    %11 = vector.multi_reduction <add>, %10, %cst_6 [1] : vector<4x32x96xf32> to vector<4x96xf32>
    %12 = vector.shape_cast %11 : vector<4x96xf32> to vector<4x1x96xf32>
    %cst_7 = arith.constant 1.000000e-24 : f32
    %13 = vector.broadcast %cst_7 : f32 to vector<4x1x96xf32>
    %14 = arith.maximumf %12, %13 : vector<4x1x96xf32>
    %15 = math.rsqrt %14 : vector<4x1x96xf32>
    %16 = vector.broadcast %15 : vector<4x1x96xf32> to vector<4x32x96xf32>
    %17 = arith.mulf %9, %16 : vector<4x32x96xf32>
    %cst_8 = arith.constant dense<0.000000e+00> : vector<4x48x96xf32>
    %18 = tpu.matmul %8, %17, %cst_8 {dimension_numbers = #tpu.dot_dimension_numbers<[2], [1], [1], [2], [0, 0, 0, 1, 1, 2], [0], [0]>} : vector<4x48x32xf32>, vector<4x32x96xf32>, vector<4x48x96xf32> -> vector<4x48x96xf32>
    %19 = tpu.iota {dimensions = array<i32: 2>} : vector<4x48x96xi32>
    %cst_9 = arith.constant dense<0xFF800000> : vector<4x48xf32>
    %20 = vector.multi_reduction <maximumf>, %18, %cst_9 [2] : vector<4x48x96xf32> to vector<4x48xf32>
    %21 = vector.shape_cast %20 : vector<4x48xf32> to vector<4x48x1xf32>
    %22 = vector.broadcast %21 : vector<4x48x1xf32> to vector<4x48x96xf32>
    %23 = arith.cmpf oeq, %18, %22 : vector<4x48x96xf32>
    %c96_i32 = arith.constant 96 : i32
    %24 = vector.broadcast %c96_i32 : i32 to vector<4x48x96xi32>
    %25 = arith.select %23, %19, %24 : vector<4x48x96xi1>, vector<4x48x96xi32>
    %cst_10 = arith.constant dense<2147483647> : vector<4x48xi32>
    %26 = vector.multi_reduction <minsi>, %25, %cst_10 [2] : vector<4x48x96xi32> to vector<4x48xi32>
    %27 = vector.shape_cast %26 : vector<4x48xi32> to vector<4x48x1xi32>
    %28 = vector.shape_cast %18 : vector<4x48x96xf32> to vector<4x3x16x96xf32>
    %29 = tpu.iota {dimensions = array<i32: 2>} : vector<4x3x16x96xi32>
    %30 = tpu.iota {dimensions = array<i32: 3>} : vector<4x3x16x96xi32>
    %cst_11 = arith.constant dense<0xFF800000> : vector<4x3x96xf32>
    %31 = vector.multi_reduction <maximumf>, %28, %cst_11 [2] : vector<4x3x16x96xf32> to vector<4x3x96xf32>
    %32 = vector.shape_cast %31 : vector<4x3x96xf32> to vector<4x3x1x96xf32>
    %33 = vector.broadcast %32 : vector<4x3x1x96xf32> to vector<4x3x16x96xf32>
    %34 = arith.cmpf oeq, %28, %33 : vector<4x3x16x96xf32>
    %c16_i32 = arith.constant 16 : i32
    %35 = vector.broadcast %c16_i32 : i32 to vector<4x3x16x96xi32>
    %36 = arith.select %34, %29, %35 : vector<4x3x16x96xi1>, vector<4x3x16x96xi32>
    %cst_12 = arith.constant dense<2147483647> : vector<4x3x96xi32>
    %37 = vector.multi_reduction <minsi>, %36, %cst_12 [2] : vector<4x3x16x96xi32> to vector<4x3x96xi32>
    %38 = vector.shape_cast %37 : vector<4x3x96xi32> to vector<4x3x1x96xi32>
    %39 = vector.shape_cast %27 : vector<4x48x1xi32> to vector<4x3x16x1xi32>
    %40 = vector.broadcast %39 : vector<4x3x16x1xi32> to vector<4x3x16x96xi32>
    %41 = arith.cmpi eq, %40, %30 : vector<4x3x16x96xi32>
    %42 = vector.broadcast %38 : vector<4x3x1x96xi32> to vector<4x3x16x96xi32>
    %43 = arith.cmpi eq, %42, %29 : vector<4x3x16x96xi32>
    %44 = arith.andi %41, %43 : vector<4x3x16x96xi1>
    %45 = arith.extui %44 : vector<4x3x16x96xi1> to vector<4x3x16x96xi32>
    %46 = arith.sitofp %45 : vector<4x3x16x96xi32> to vector<4x3x16x96xf32>
    %cst_13 = arith.constant dense<0.000000e+00> : vector<4x3x16xf32>
    %47 = vector.multi_reduction <add>, %46, %cst_13 [3] : vector<4x3x16x96xf32> to vector<4x3x16xf32>
    %48 = vector.shape_cast %47 : vector<4x3x16xf32> to vector<4x3x16x1xf32>
    %cst_14 = arith.constant 0.000000e+00 : f32
    %49 = vector.broadcast %cst_14 : f32 to vector<4x3x16x1xf32>
    %50 = arith.cmpf ogt, %48, %49 : vector<4x3x16x1xf32>
    %51 = arith.extui %50 : vector<4x3x16x1xi1> to vector<4x3x16x1xi32>
    %52 = arith.sitofp %51 : vector<4x3x16x1xi32> to vector<4x3x16x1xf32>
    %53 = vector.extract_strided_slice %18 {offsets = [0, 0, 0], sizes = [4, 48, 32], strides = [1, 1, 1]} : vector<4x48x96xf32> to vector<4x48x32xf32>
    %cst_15 = arith.constant dense<0xFF800000> : vector<4x48xf32>
    %54 = vector.multi_reduction <maximumf>, %53, %cst_15 [2] : vector<4x48x32xf32> to vector<4x48xf32>
    %55 = vector.shape_cast %54 : vector<4x48xf32> to vector<4x48x1xf32>
    %56 = vector.shape_cast %55 : vector<4x48x1xf32> to vector<4x3x16x1xf32>
    %57 = arith.mulf %56, %52 : vector<4x3x16x1xf32>
    %cst_16 = arith.constant dense<0.000000e+00> : vector<4x3x1xf32>
    %58 = vector.multi_reduction <add>, %57, %cst_16 [2] : vector<4x3x16x1xf32> to vector<4x3x1xf32>
    %59 = vector.extract_strided_slice %18 {offsets = [0, 0, 32], sizes = [4, 48, 32], strides = [1, 1, 1]} : vector<4x48x96xf32> to vector<4x48x32xf32>
    %cst_17 = arith.constant dense<0xFF800000> : vector<4x48xf32>
    %60 = vector.multi_reduction <maximumf>, %59, %cst_17 [2] : vector<4x48x32xf32> to vector<4x48xf32>
    %61 = vector.shape_cast %60 : vector<4x48xf32> to vector<4x48x1xf32>
    %62 = vector.shape_cast %61 : vector<4x48x1xf32> to vector<4x3x16x1xf32>
    %63 = arith.mulf %62, %52 : vector<4x3x16x1xf32>
    %cst_18 = arith.constant dense<0.000000e+00> : vector<4x3x1xf32>
    %64 = vector.multi_reduction <add>, %63, %cst_18 [2] : vector<4x3x16x1xf32> to vector<4x3x1xf32>
    %65 = vector.extract_strided_slice %18 {offsets = [0, 0, 64], sizes = [4, 48, 32], strides = [1, 1, 1]} : vector<4x48x96xf32> to vector<4x48x32xf32>
    %cst_19 = arith.constant dense<0xFF800000> : vector<4x48xf32>
    %66 = vector.multi_reduction <maximumf>, %65, %cst_19 [2] : vector<4x48x32xf32> to vector<4x48xf32>
    %67 = vector.shape_cast %66 : vector<4x48xf32> to vector<4x48x1xf32>
    %68 = vector.shape_cast %67 : vector<4x48x1xf32> to vector<4x3x16x1xf32>
    %69 = arith.mulf %68, %52 : vector<4x3x16x1xf32>
    %cst_20 = arith.constant dense<0.000000e+00> : vector<4x3x1xf32>
    %70 = vector.multi_reduction <add>, %69, %cst_20 [2] : vector<4x3x16x1xf32> to vector<4x3x1xf32>
    %71 = tpu.concatenate %58, %64, %70 in 2 : vector<4x3x1xf32>, vector<4x3x1xf32>, vector<4x3x1xf32> -> vector<4x3x3xf32>
    %c0_21 = arith.constant 0 : index
    %c0_22 = arith.constant 0 : index
    %c0_23 = arith.constant 0 : index
    %72 = vector.load %arg3[%c0_21, %c0_22, %c0_23] : memref<4x3x3xf32, #tpu.memory_space<vmem>>, vector<4x3x3xf32>
    tpu.vector_store %arg3[%c0_21, %c0_22, %c0_23], %71 {strides = array<i32>} : memref<4x3x3xf32, #tpu.memory_space<vmem>>, vector<4x3x3xf32>,
    return
  }
  func.func @transform_0(%arg0: i32) -> (i32, i32, i32) {
    %c0_i32 = arith.constant 0 : i32
    %c0_i32_0 = arith.constant 0 : i32
    %c0_i32_1 = arith.constant 0 : i32
    return %arg0, %c0_i32, %c0_i32_0 : i32, i32, i32
  }
  func.func @transform_1(%arg0: i32) -> (i32, i32, i32) {
    %c0_i32 = arith.constant 0 : i32
    %c0_i32_0 = arith.constant 0 : i32
    %c0_i32_1 = arith.constant 0 : i32
    return %arg0, %c0_i32, %c0_i32_0 : i32, i32, i32
  }
  func.func @transform_2(%arg0: i32) -> (i32, i32, i32) {
    %c0_i32 = arith.constant 0 : i32
    %c0_i32_0 = arith.constant 0 : i32
    %c0_i32_1 = arith.constant 0 : i32
    return %arg0, %c0_i32, %c0_i32_0 : i32, i32, i32
  }
}

</mosaic_0001>

<bundles_post_ra>
// kernel: tpu_custom_call.1
= control target key start
LH: loop header
LB: loop body
LE: loop exit
PB: predicated region body
PF: predicated region fallthrough
CT: control target
= control target key end

     0   :  { %s2982_s9 = smov 0   ;;  %s4753_s0 = inlined_call_operand.vmem [shape: f32[8,48,32], index: 0, kind: input, shape index: {}]   ;;  %s4754_s1 = inlined_call_operand.vmem [shape: f32[8,32,96], index: 1, kind: input, shape index: {}]   ;;  %s4755_s2 = inlined_call_operand.vmem [shape: f32[8,3,3], index: 2, kind: output, shape index: {}]  }
   0x1 LB: > { %s2665_s10 = sadd.s32 4294967295, %s2964_s9   ;;  %p2669_p0 = scmp.ge.s32.totalorder %s2964_s9, 1  ;;  %s2964_s9 = sphi %s2982_s9, %s12_s9  }
   0x2   : > { %p126_p1 = scmp.lt.s32.totalorder %s2964_s9, 3 }
   0x4   : > { %p127_p2 = pnand %p2669_p0, %p126_p1 }
   0x6   : > { %130 = sbr.rel (%p127_p2) target bundleno = 1108 (0x454), region = 28 }
   0xd   : > { %s2670_s11 = sshll.u32 %s2665_s10, 2  ;;  %vm223_vm0 = vcmask 261120   ;;  %vm400_vm1 = vcmask 785408   ;;  %vm2146_vm2 = vcmask 523520  }
   0xe   : > { %p156_p3 = scmp.lt.s32.totalorder %s2670_s11, 7 }
  0x10   : > { %s5008_s11 = smov (!%p156_p3, %s2670_s11), 7 }
  0x11   : > { %s2892_s12 = smul.u32 48, %s5008_s11  ;;  %s2751_s13 = sshll.u32 %s5008_s11, 5 }
  0x12   : > { %s3020_s19 = scalar_lea.vmem %s4754_s1, %s2751_s13  ;;  %s2676_s20 = sshll.u32 %s5008_s11, 2 }
  0x13   : > { %s2997_s16 = scalar_lea.vmem %s4753_s0, %s2892_s12  ;;  %v3033_v12 = vld [vmem:[%s3020_s19] sm:$0xff]  ;;  %v3045_v18 = vld [vmem:[%s3020_s19 + $0x8] sm:$0xff]  ;;  %v3051_v20 = vld [vmem:[%s3020_s19 + $0x10] sm:$0xff]  ;;  %s4655_s23 = scalar_lea.vmem %s4755_s2, %s2676_s20 }
  0x14   : > { %v3000_v0 = vld [vmem:[%s2997_s16 + $0x30] sm:$0xff]  ;;  %v3003_v1 = vld [vmem:[%s2997_s16] sm:$0xff]  ;;  %v3006_v2 = vld [vmem:[%s2997_s16 + $0x38] sm:$0xff]  ;;  %v384_v21 = vmul.f32 %v3033_v12, %v3033_v12  ;;  %v385_v23 = vmul.f32 %v3045_v18, %v3045_v18  ;;  %v386_v29 = vmul.f32 %v3051_v20, %v3051_v20 }
  0x15   : > { %v205_v3 = vmul.f32 %v3000_v0, %v3000_v0  ;;  %v199_v4 = vmul.f32 %v3003_v1, %v3003_v1  ;;  %v206_v5 = vmul.f32 %v3006_v2, %v3006_v2  ;;  %v3015_v6 = vld [vmem:[%s2997_s16 + $0x8] sm:$0xff]  ;;  %v3025_v8 = vld [vmem:[%s2997_s16 + $0x10] sm:$0xff]  ;;  %v3028_v9 = vld [vmem:[%s2997_s16 + $0x18] sm:$0xff] }
  0x16   : > { %v200_v7 = vmul.f32 %v3015_v6, %v3015_v6  ;;  %v201_v15 = vmul.f32 %v3025_v8, %v3025_v8  ;;  %v202_v16 = vmul.f32 %v3028_v9, %v3028_v9  ;;  %v3042_v17 = vld [vmem:[%s2997_s16 + $0x40] sm:$0xff]  ;;  %v3048_v19 = vld [vmem:[%s2997_s16 + $0x48] sm:$0xff]  ;;  %v3072_v30 = vld [vmem:[%s3020_s19 + $0x18] sm:$0xff]  ;;  %v401_v31 = vsel %vm400_vm1, %v384_v21, 0.0 }
  0x17   : > { %v242_v10 = vsel %vm223_vm0, %v205_v3, 0.0  ;;  %v224_v11 = vsel %vm223_vm0, %v199_v4, 0.0  ;;  %v245_v13 = vsel %vm223_vm0, %v206_v5, 0.0  ;;  %v207_v22 = vmul.f32 %v3042_v17, %v3042_v17  ;;  %v3064_v27 = vld [vmem:[%s2997_s16 + $0x20] sm:$0xff]  ;;  %v3067_v28 = vld [vmem:[%s2997_s16 + $0x28] sm:$0xff]  ;;  %v3087_v37 = vld [vmem:[%s2997_s16 + $0x50] sm:$0xff] }
  0x18   : > { %243 = vadd.xlane.f32.xlu1 %v242_v10  ;;  %225 = vadd.xlane.f32.xlu0 %v224_v11  ;;  %v227_v14 = vsel %vm223_vm0, %v200_v7, 0.0  ;;  %v230_v24 = vsel %vm223_vm0, %v201_v15, 0.0  ;;  %v233_v25 = vsel %vm223_vm0, %v202_v16, 0.0  ;;  %v208_v26 = vmul.f32 %v3048_v19, %v3048_v19  ;;  %v3076_v32 = vld [vmem:[%s3020_s19 + $0x20] sm:$0xff]  ;;  %v3079_v33 = vld [vmem:[%s3020_s19 + $0x28] sm:$0xff]  ;;  %v3090_v38 = vld [vmem:[%s3020_s19 + $0x30] sm:$0xff] }
  0x19   : > { %v248_v34 = vsel %vm223_vm0, %v207_v22, 0.0  ;;  %v203_v35 = vmul.f32 %v3064_v27, %v3064_v27  ;;  %v204_v36 = vmul.f32 %v3067_v28, %v3067_v28  ;;  %v3093_v39 = vld [vmem:[%s3020_s19 + $0x38] sm:$0xff]  ;;  %v387_v42 = vmul.f32 %v3072_v30, %v3072_v30  ;;  %v3121_v58 = vld [vmem:[%s2997_s16 + $0x60] sm:$0xff]  ;;  %v3125_v61 = vld [vmem:[%s2997_s16 + $0x68] sm:$0xff] }
  0x1a   : > { %v251_v40 = vsel %vm223_vm0, %v208_v26, 0.0  ;;  %v3097_v41 = vld [vmem:[%s2997_s16 + $0x58] sm:$0xff]  ;;  %v402_v43 = vsel %vm400_vm1, %v385_v23, 0.0  ;;  %v404_v44 = vsel %vm400_vm1, %v386_v29, 0.0  ;;  %v388_v46 = vmul.f32 %v3076_v32, %v3076_v32  ;;  %v3129_v3 = vld [vmem:[%s2997_s16 + $0x90] sm:$0xff] }
  0x1b   : > { %v403_v45 = vadd.f32 %v402_v43, %v401_v31  ;;  %v389_v47 = vmul.f32 %v3079_v33, %v3079_v33  ;;  %v209_v48 = vmul.f32 %v3087_v37, %v3087_v37  ;;  %v406_v49 = vsel %vm400_vm1, %v387_v42, 0.0  ;;  %v3140_v16 = vld [vmem:[%s2997_s16 + $0x98] sm:$0xff]  ;;  %v3143_v23 = vld [vmem:[%s2997_s16 + $0x70] sm:$0xff]  ;;  %v3163_v43 = vld [vmem:[%s2997_s16 + $0xa8] sm:$0xff] }
  0x1c   : > { %246 = vadd.xlane.f32.xlu1 %v245_v13  ;;  %228 = vadd.xlane.f32.xlu0 %v227_v14  ;;  %v390_v50 = vmul.f32 %v3090_v38, %v3090_v38  ;;  %v391_v51 = vmul.f32 %v3093_v39, %v3093_v39  ;;  %v210_v52 = vmul.f32 %v3097_v41, %v3097_v41  ;;  %v414_v54 = vsel %vm400_vm1, %v388_v46, 0.0 }
  0x1d   : > { %v405_v53 = vadd.f32 %v404_v44, %v403_v45  ;;  %v415_v55 = vsel %vm400_vm1, %v389_v47, 0.0  ;;  %v236_v56 = vsel %vm223_vm0, %v203_v35, 0.0  ;;  %v239_v57 = vsel %vm223_vm0, %v204_v36, 0.0  ;;  %v3156_v36 = vld [vmem:[%s3020_s19 + $0x40] sm:$0xff] }
  0x1e   : > { %v416_v59 = vadd.f32 %v415_v55, %v414_v54  ;;  %v417_v60 = vsel %vm400_vm1, %v390_v50, 0.0  ;;  %v419_v63 = vsel %vm400_vm1, %v391_v51, 0.0  ;;  %v211_v5 = vmul.f32 %v3121_v58, %v3121_v58  ;;  %v3176_v51 = vld [vmem:[%s3020_s19 + $0x50] sm:$0xff] }
  0x1f   : > { %v407_v62 = vadd.f32 %v406_v49, %v405_v53  ;;  %v254_v10 = vsel %vm223_vm0, %v209_v48, 0.0  ;;  %v257_v11 = vsel %vm223_vm0, %v210_v52, 0.0  ;;  %v212_v13 = vmul.f32 %v3125_v61, %v3125_v61 }
  0x20   : > { %231 = vadd.xlane.f32.xlu0 %v230_v24  ;;  %234 = vadd.xlane.f32.xlu1 %v233_v25  ;;  %v418_v4 = vadd.f32 %v417_v60, %v416_v59  ;;  %v217_v15 = vmul.f32 %v3129_v3, %v3129_v3  ;;  %v3146_v24 = vld [vmem:[%s2997_s16 + $0x78] sm:$0xff]  ;;  %v3149_v25 = vld [vmem:[%s2997_s16 + $0xa0] sm:$0xff]  ;;  %v260_v29 = vsel %vm223_vm0, %v211_v5, 0.0  ;;  %v392_v45 = vmul.f32 %v3156_v36, %v3156_v36 }
  0x21   : > { %v408_v7 = vrot.slane %v407_v62, 4  ;;  %v263_v31 = vsel %vm223_vm0, %v212_v13, 0.0  ;;  %v213_v47 = vmul.f32 %v3143_v23, %v3143_v23  ;;  %v214_v48 = vmul.f32 %v3146_v24, %v3146_v24  ;;  %v3186_v60 = vld [vmem:[%s3020_s19 + $0x58] sm:$0xff] }
  0x22   : > { %v420_v14 = vadd.f32 %v419_v63, %v418_v4  ;;  %v278_v42 = vsel %vm223_vm0, %v217_v15, 0.0  ;;  %v219_v49 = vmul.f32 %v3149_v25, %v3149_v25  ;;  %v394_v53 = vmul.f32 %v3176_v51, %v3176_v51  ;;  %v3189_v63 = vld [vmem:[%s3020_s19 + $0x60] sm:$0xff]  ;;  %v3192_v4 = vld [vmem:[%s3020_s19 + $0x68] sm:$0xff] }
  0x23   : > { %v409_v21 = vadd.f32 %v408_v7, %v407_v62  ;;  %v427_v54 = vsel %vm400_vm1, %v392_v45, 0.0  ;;  %v395_v7 = vmul.f32 %v3186_v60, %v3186_v60  ;;  %v266_v13 = vsel %vm223_vm0, %v213_v47, 0.0  ;;  %v3214_v45 = vld [vmem:[%s2997_s16 + $0x88] sm:$0xff] }
  0x24   : > { %249 = vadd.xlane.f32.xlu0 %v248_v34  ;;  %252 = vadd.xlane.f32.xlu1 %v251_v40  ;;  %v421_v22 = vrot.slane %v420_v14, 4  ;;  %v218_v34 = vmul.f32 %v3140_v16, %v3140_v16  ;;  %v3159_v40 = vld [vmem:[%s3020_s19 + $0x48] sm:$0xff] }
  0x25   : > { %v410_v26 = vrot.slane %v409_v21, 2  ;;  %v393_v46 = vmul.f32 %v3159_v40, %v3159_v40 }
  0x26   : > { %v422_v35 = vadd.f32 %v421_v22, %v420_v14  ;;  %v397_v22 = vmul.f32 %v3192_v4, %v3192_v4 }
  0x27   : > { %v411_v44 = vadd.f32 %v410_v26, %v409_v21  ;;  %v428_v55 = vsel %vm400_vm1, %v393_v46, 0.0  ;;  %v3201_v21 = vld [vmem:[%s3020_s19 + $0x70] sm:$0xff] }
  0x28   : > { %237 = vadd.xlane.f32.xlu0 %v236_v56  ;;  %240 = vadd.xlane.f32.xlu1 %v239_v57  ;;  %v423_v50 = vrot.slane %v422_v35, 2  ;;  %v281_v56 = vsel %vm223_vm0, %v218_v34, 0.0  ;;  %v220_v57 = vmul.f32 %v3163_v43, %v3163_v43  ;;  %v429_v62 = vadd.f32 %v428_v55, %v427_v54 }
  0x29   : > { %v412_v52 = vrot.slane %v411_v44, 1 }
  0x2a   : > { %v424_v59 = vadd.f32 %v423_v50, %v422_v35  ;;  %v269_v35 = vsel %vm223_vm0, %v214_v48, 0.0  ;;  %v3217_v50 = vld [vmem:[%s3020_s19 + $0x78] sm:$0xff] }
  0x2b   : > { %v413_v5 = vadd.f32 %v412_v52, %v411_v44  ;;  %v3211_v44 = vld [vmem:[%s2997_s16 + $0x80] sm:$0xff]  ;;  %v399_v52 = vmul.f32 %v3217_v50, %v3217_v50 }
  0x2c   : > { %255 = vadd.xlane.f32.xlu0 %v254_v10  ;;  %258 = vadd.xlane.f32.xlu1 %v257_v11  ;;  %v430_v10 = vsel %vm400_vm1, %v394_v53, 0.0  ;;  %v396_v11 = vmul.f32 %v3189_v63, %v3189_v63  ;;  %v425_v14 = vrot.slane %v424_v59, 1 }
  0x2d   : > { %v431_v15 = vadd.f32 %v430_v10, %v429_v62  ;;  %v453_v26 = vmax.f32 %v413_v5, 1e-24  ;;  %v445_v5 = vsel %vm400_vm1, %v399_v52, 0.0  ;;  %v287_v10 = vsel %vm223_vm0, %v220_v57, 0.0 }
  0x2e   : > { %v440_v34 = vsel %vm400_vm1, %v396_v11, 0.0  ;;  %v426_v46 = vadd.f32 %v425_v14, %v424_v59  ;;  %v216_v59 = vmul.f32 %v3214_v45, %v3214_v45  ;;  %v3231_v11 = vld [vmem:[%s2997_s16 + $0xb0] sm:$0xff]  ;;  %v3234_v14 = vld [vmem:[%s2997_s16 + $0xb8] sm:$0xff] }
  0x2f   : > { %2902 = vrsqrt.f32 %v453_v26  ;;  %v221_v26 = vmul.f32 %v3231_v11, %v3231_v11 }
  0x30   : > { %261 = vadd.xlane.f32.xlu0 %v260_v29  ;;  %264 = vadd.xlane.f32.xlu1 %v263_v31  ;;  %v432_v29 = vsel %vm400_vm1, %v395_v7, 0.0  ;;  %v398_v31 = vmul.f32 %v3201_v21, %v3201_v21  ;;  %v454_v48 = vmax.f32 %v426_v46, 1e-24  ;;  %v284_v7 = vsel %vm223_vm0, %v219_v49, 0.0 }
  0x31   : > { %v433_v47 = vadd.f32 %v432_v29, %v431_v15  ;;  %v222_v29 = vmul.f32 %v3234_v14, %v3234_v14  ;;  %v275_v57 = vsel %vm223_vm0, %v216_v59, 0.0 }
  0x32   : > { %v443_v54 = vsel %vm400_vm1, %v398_v31, 0.0  ;;  %2904 = vrsqrt.f32 %v454_v48 }
  0x33   : > { %v434_v55 = vrot.slane %v433_v47, 4  ;;  %v293_v52 = vsel %vm223_vm0, %v222_v29, 0.0 }
  0x34   : > { %279 = vadd.xlane.f32.xlu0 %v278_v42  ;;  %282 = vadd.xlane.f32.xlu1 %v281_v56  ;;  %v441_v42 = vsel %vm400_vm1, %v397_v22, 0.0  ;;  %v215_v56 = vmul.f32 %v3211_v44, %v3211_v44 }
  0x35   : > { %v442_v53 = vadd.f32 %v441_v42, %v440_v34 }
  0x36   : > { %v272_v49 = vsel %vm223_vm0, %v215_v56, 0.0 }
  0x37   : > { %v444_v62 = vadd.f32 %v443_v54, %v442_v53 }
  0x38   : > { %267 = vadd.xlane.f32.xlu0 %v266_v13  ;;  %270 = vadd.xlane.f32.xlu1 %v269_v35  ;;  %v435_v13 = vadd.f32 %v434_v55, %v433_v47  ;;  %v290_v47 = vsel %vm223_vm0, %v221_v26, 0.0 }
  0x39   : > { %v446_v15 = vadd.f32 %v445_v5, %v444_v62  ;;  %v2903_v42 = vpop.eup %2902 }
  0x3a   : > { %v436_v22 = vrot.slane %v435_v13, 2  ;;  %v461_v54 = vmul.f32 %v2903_v42, %v3033_v12  ;;  %v462_v48 = vmul.f32 %v2903_v42, %v3045_v18  ;;  %v463_v55 = vmul.f32 %v2903_v42, %v3051_v20 }
  0x3b   : > { %v447_v31 = vrot.slane %v446_v15, 4  ;;  %v464_v56 = vmul.f32 %v2903_v42, %v3072_v30 }
  0x3c   : > { %285 = vadd.xlane.f32.xlu0 %v284_v7  ;;  %288 = vadd.xlane.f32.xlu1 %v287_v10  ;;  %v437_v34 = vadd.f32 %v436_v22, %v435_v13  ;;  %v2905_v5 = vpop.eup %2904  ;;  %v2860_v7 = vpack.c.bf16 %v462_v48, %v461_v54 }
  0x3d   : > { %v448_v35 = vadd.f32 %v447_v31, %v446_v15  ;;  %v2864_v10 = vpack.c.bf16 %v464_v56, %v463_v55  ;;  %v465_v13 = vmul.f32 %v2905_v5, %v3076_v32  ;;  %v466_v15 = vmul.f32 %v2905_v5, %v3079_v33 }
  0x3e   : > { %v438_v46 = vrot.slane %v437_v34, 1  ;;  %v467_v22 = vmul.f32 %v2905_v5, %v3090_v38  ;;  %2861 = vmatprep.subr.bf16.mxu0 %v2860_v7  ;;  %v468_v18 = vmul.f32 %v2905_v5, %v3093_v39 }
  0x3f   : > { %v449_v53 = vrot.slane %v448_v35, 2  ;;  %v2868_v26 = vpack.c.bf16 %v466_v15, %v465_v13  ;;  %2863 = vmatpush3.bf16.msra.mxu0 %v2860_v7 }
  0x40   : > { %273 = vadd.xlane.f32.xlu0 %v272_v49  ;;  %276 = vadd.xlane.f32.xlu1 %v275_v57  ;;  %v439_v59 = vadd.f32 %v438_v46, %v437_v34  ;;  %v2872_v30 = vpack.c.bf16 %v468_v18, %v467_v22 }
  0x41   : > { %v450_v62 = vadd.f32 %v449_v53, %v448_v35  ;;  %2865 = vmatprep.subr.bf16.mxu0 %v2864_v10  ;;  %2869 = vmatprep.subr.bf16.mxu1 %v2868_v26 }
  0x42   : > { %v455_v12 = vmax.f32 %v439_v59, 1e-24  ;;  %2871 = vmatpush3.bf16.msra.mxu1 %v2868_v26 }
  0x43   : > { %v451_v20 = vrot.slane %v450_v62, 1  ;;  %2873 = vmatprep.subr.bf16.mxu1 %v2872_v30  ;;  %2867 = vmatpush3.bf16.msra.mxu0 %v2864_v10 }
  0x44   : > { %291 = vadd.xlane.f32.xlu0 %v290_v47  ;;  %294 = vadd.xlane.f32.xlu1 %v293_v52  ;;  %2906 = vrsqrt.f32 %v455_v12 }
  0x45   : > { %v452_v29 = vadd.f32 %v451_v20, %v450_v62 }
  0x46   : > { %2875 = vmatpush3.bf16.msra.mxu1 %v2872_v30 }
  0x47   : > { %v456_v31 = vmax.f32 %v452_v29, 1e-24 }
  0x49   : > { %2908 = vrsqrt.f32 %v456_v31 }
  0x4e   : > { %v2907_v32 = vpop.eup %2906 }
  0x4f   : > { %v469_v33 = vmul.f32 %v2907_v32, %v3156_v36  ;;  %v470_v38 = vmul.f32 %v2907_v32, %v3159_v40  ;;  %v471_v39 = vmul.f32 %v2907_v32, %v3176_v51  ;;  %v472_v49 = vmul.f32 %v2907_v32, %v3186_v60 }
  0x51   : > { %v2876_v57 = vpack.c.bf16 %v470_v38, %v469_v33  ;;  %v3256_v34 = vpack.c.bf16 %v472_v49, %v471_v39 }
  0x53   : > { %v2909_v35 = vpop.eup %2908  ;;  %2877 = vmatprep.subr.bf16.mxu0 %v2876_v57 }
  0x54   : > { %v473_v46 = vmul.f32 %v2909_v35, %v3189_v63  ;;  %v474_v42 = vmul.f32 %v2909_v35, %v3192_v4  ;;  %v475_v47 = vmul.f32 %v2909_v35, %v3201_v21  ;;  %v476_v52 = vmul.f32 %v2909_v35, %v3217_v50 }
  0x56   : > { %v2884_v36 = vpack.c.bf16 %v474_v42, %v473_v46  ;;  %v3262_v53 = vpack.c.bf16 %v476_v52, %v475_v47 }
  0x58   : > { %2885 = vmatprep.subr.bf16.mxu1 %v2884_v36 }
  0xa5   : > { %v244_v40 = vpop.xlane.xlu1 %243  ;;  %v226_v51 = vpop.xlane.xlu0 %225 }
  0xa6   : > { %v302_v60 = vmax.f32 %v244_v40, 1e-24  ;;  %v296_v54 = vmax.f32 %v226_v51, 1e-24 }
  0xa8   : > { %2910 = vrsqrt.f32 %v302_v60 }
  0xa9   : > { %2912 = vrsqrt.f32 %v296_v54  ;;  %v247_v48 = vpop.xlane.xlu1 %246  ;;  %v229_v55 = vpop.xlane.xlu0 %228 }
  0xaa   : > { %v303_v56 = vmax.f32 %v247_v48, 1e-24  ;;  %v297_v63 = vmax.f32 %v229_v55, 1e-24 }
  0xac   : > { %2914 = vrsqrt.f32 %v303_v56 }
  0xad   : > { %2916 = vrsqrt.f32 %v297_v63  ;;  %v232_v4 = vpop.xlane.xlu0 %231  ;;  %v235_v21 = vpop.xlane.xlu1 %234 }
  0xae   : > { %v298_v59 = vmax.f32 %v232_v4, 1e-24  ;;  %v299_v50 = vmax.f32 %v235_v21, 1e-24 }
  0xb0   : > { %2918 = vrsqrt.f32 %v298_v59 }
  0xb1   : > { %2920 = vrsqrt.f32 %v299_v50  ;;  %v250_v62 = vpop.xlane.xlu0 %249  ;;  %v253_v5 = vpop.xlane.xlu1 %252 }
  0xb2   : > { %v2911_v7 = vpop.eup %2910  ;;  %v304_v10 = vmax.f32 %v250_v62, 1e-24  ;;  %v305_v13 = vmax.f32 %v253_v5, 1e-24 }
  0xb3   : > { %v2913_v15 = vpop.eup %2912  ;;  %v350_v22 = vmul.f32 %v2911_v7, %v3000_v0 }
  0xb4   : > { %2922 = vrsqrt.f32 %v304_v10  ;;  %v344_v12 = vmul.f32 %v2913_v15, %v3003_v1 }
  0xb5   : > { %2924 = vrsqrt.f32 %v305_v13  ;;  %v238_v18 = vpop.xlane.xlu0 %237  ;;  %v241_v20 = vpop.xlane.xlu1 %240  ;;  %2817 = vmatprep.mubr.msk.f32.mxu1 %vm223_vm0, %v350_v22 }
  0xb6   : > { %v2915_v26 = vpop.eup %2914  ;;  %2800 = vmatprep.mubr.msk.f32.mxu0 %vm223_vm0, %v344_v12  ;;  %v300_v30 = vmax.f32 %v238_v18, 1e-24  ;;  %v301_v29 = vmax.f32 %v241_v20, 1e-24 }
  0xb7   : > { %v2917_v31 = vpop.eup %2916  ;;  %v351_v32 = vmul.f32 %v2915_v26, %v3006_v2 }
  0xb8   : > { %2926 = vrsqrt.f32 %v300_v30  ;;  %v345_v33 = vmul.f32 %v2917_v31, %v3015_v6 }
  0xb9   : > { %2928 = vrsqrt.f32 %v301_v29  ;;  %2818 = vmatmul.mubr.msk.f32.vlgmr.msra.gmra.mrb[0].mxu1 %vm223_vm0, %v351_v32  ;;  %v256_v0 = vpop.xlane.xlu0 %255  ;;  %v259_v1 = vpop.xlane.xlu1 %258 }
  0xba   : > { %v2919_v38 = vpop.eup %2918  ;;  %2801 = vmatmul.mubr.msk.f32.vlgmr.msra.gmra.mrb[0].mxu0 %vm223_vm0, %v345_v33  ;;  %v306_v39 = vmax.f32 %v256_v0, 1e-24  ;;  %v307_v49 = vmax.f32 %v259_v1, 1e-24  ;;  %2887 = vmatpush3.bf16.msra.mxu1 %v2884_v36 }
  0xbb   : > { %v2921_v35 = vpop.eup %2920  ;;  %v346_v46 = vmul.f32 %v2919_v38, %v3025_v8  ;;  %2879 = vmatpush3.bf16.msra.mxu0 %v2876_v57  ;;  %2889 = vmatprep.subr.bf16.mxu1 %v3262_v53 }
  0xbc   : > { %2930 = vrsqrt.f32 %v306_v39  ;;  %v347_v2 = vmul.f32 %v2921_v35, %v3028_v9  ;;  %2881 = vmatprep.subr.bf16.mxu0 %v3256_v34 }
  0xbd   : > { %2932 = vrsqrt.f32 %v307_v49  ;;  %2803 = vmatprep.mubr.msk.f32.mxu0 %vm223_vm0, %v346_v46  ;;  %v262_v6 = vpop.xlane.xlu0 %261  ;;  %v265_v42 = vpop.xlane.xlu1 %264 }
  0xbe   : > { %v2923_v47 = vpop.eup %2922  ;;  %2804 = vmatmul.mubr.msk.f32.gmra.mrb[2].mxu0 %vm223_vm0, %v347_v2  ;;  %v308_v52 = vmax.f32 %v262_v6, 1e-24  ;;  %v309_v36 = vmax.f32 %v265_v42, 1e-24  ;;  %2891 = vmatpush3.bf16.msra.mxu1 %v3262_v53 }
  0xbf   : > { %v2925_v8 = vpop.eup %2924  ;;  %v352_v57 = vmul.f32 %v2923_v47, %v3042_v17  ;;  %2883 = vmatpush3.bf16.msra.mxu0 %v3256_v34 }
  0xc0   : > { %v353_v9 = vmul.f32 %v2925_v8, %v3048_v19  ;;  %2934 = vrsqrt.f32 %v308_v52 }
  0xc1   : > { %2820 = vmatprep.mubr.msk.f32.mxu1 %vm223_vm0, %v352_v57  ;;  %2936 = vrsqrt.f32 %v309_v36  ;;  %v280_v40 = vpop.xlane.xlu0 %279  ;;  %v283_v51 = vpop.xlane.xlu1 %282 }
  0xc2   : > { %v2927_v60 = vpop.eup %2926  ;;  %2821 = vmatmul.mubr.msk.f32.gmra.mrb[2].mxu1 %vm223_vm0, %v353_v9  ;;  %v314_v54 = vmax.f32 %v280_v40, 1e-24  ;;  %v315_v48 = vmax.f32 %v283_v51, 1e-24  ;;  %v4756_v40 = vlaneseq }
  0xc3   : > { %v2929_v55 = vpop.eup %2928  ;;  %v348_v53 = vmul.f32 %v2927_v60, %v3064_v27 }
  0xc4   : > { %v349_v17 = vmul.f32 %v2929_v55, %v3067_v28  ;;  %2938 = vrsqrt.f32 %v314_v54 }
  0xc5   : > { %2806 = vmatprep.mubr.msk.f32.mxu0 %vm223_vm0, %v348_v53  ;;  %2940 = vrsqrt.f32 %v315_v48  ;;  %v268_v19 = vpop.xlane.xlu0 %267  ;;  %v271_v34 = vpop.xlane.xlu1 %270 }
  0xc6   : > { %v2931_v56 = vpop.eup %2930  ;;  %2807 = vmatmul.mubr.msk.f32.gmra.mrb[4].mxu0 %vm223_vm0, %v349_v17  ;;  %v310_v63 = vmax.f32 %v268_v19, 1e-24  ;;  %v311_v4 = vmax.f32 %v271_v34, 1e-24 }
  0xc7   : > { %v2933_v21 = vpop.eup %2932  ;;  %v354_v59 = vmul.f32 %v2931_v56, %v3087_v37  ;;  %v3355_v56 = vshrl.u32 %v4756_v40, 7 }
  0xc8   : > { %v355_v50 = vmul.f32 %v2933_v21, %v3097_v41  ;;  %2942 = vrsqrt.f32 %v310_v63 }
  0xc9   : > { %2823 = vmatprep.mubr.msk.f32.mxu1 %vm223_vm0, %v354_v59  ;;  %2944 = vrsqrt.f32 %v311_v4  ;;  %v286_v27 = vpop.xlane.xlu0 %285  ;;  %v289_v28 = vpop.xlane.xlu1 %288  ;;  %4817 = vst [vmem:[#allocation9_spill] sm:$0xff] %v3355_v56 }
  0xca   : > { %v2935_v62 = vpop.eup %2934  ;;  %2824 = vmatmul.mubr.msk.f32.gmra.mrb[4].mxu1 %vm223_vm0, %v355_v50  ;;  %v316_v5 = vmax.f32 %v286_v27, 1e-24  ;;  %v317_v7 = vmax.f32 %v289_v28, 1e-24 }
  0xcb   : > { %v2937_v10 = vpop.eup %2936  ;;  %v356_v13 = vmul.f32 %v2935_v62, %v3121_v58 }
  0xcc   : > { %v357_v15 = vmul.f32 %v2937_v10, %v3125_v61  ;;  %2946 = vrsqrt.f32 %v316_v5 }
  0xcd   : > { %2834 = vmatprep.mubr.msk.f32.mxu0 %vm223_vm0, %v356_v13  ;;  %2948 = vrsqrt.f32 %v317_v7  ;;  %v274_v37 = vpop.xlane.xlu0 %273  ;;  %v277_v41 = vpop.xlane.xlu1 %276 }
  0xce   : > { %v2939_v22 = vpop.eup %2938  ;;  %2835 = vmatmul.mubr.msk.f32.vlgmr.msra.gmra.mrb[6].mxu0 %vm223_vm0, %v357_v15  ;;  %v312_v12 = vmax.f32 %v274_v37, 1e-24  ;;  %v313_v18 = vmax.f32 %v277_v41, 1e-24 }
  0xcf   : > { %v2941_v20 = vpop.eup %2940  ;;  %v362_v26 = vmul.f32 %v2939_v22, %v3129_v3  ;;  %v3384_v22 = vadd.s32 8, %v3355_v56 }
  0xd0   : > { %v363_v30 = vmul.f32 %v2941_v20, %v3140_v16  ;;  %2950 = vrsqrt.f32 %v312_v12 }
  0xd1   : > { %2851 = vmatprep.mubr.msk.f32.mxu1 %vm223_vm0, %v362_v26  ;;  %2952 = vrsqrt.f32 %v313_v18  ;;  %v292_v58 = vpop.xlane.xlu0 %291  ;;  %v295_v61 = vpop.xlane.xlu1 %294  ;;  %4822 = vst [vmem:[#allocation14_spill] sm:$0xff] %v3384_v22 }
  0xd2   : > { %v2943_v29 = vpop.eup %2942  ;;  %2852 = vmatmul.mubr.msk.f32.vlgmr.msra.gmra.mrb[6].mxu1 %vm223_vm0, %v363_v30  ;;  %v318_v31 = vmax.f32 %v292_v58, 1e-24  ;;  %v319_v32 = vmax.f32 %v295_v61, 1e-24 }
  0xd3   : > { %v2945_v33 = vpop.eup %2944  ;;  %v358_v0 = vmul.f32 %v2943_v29, %v3143_v23 }
  0xd4   : > { %v359_v1 = vmul.f32 %v2945_v33, %v3146_v24  ;;  %2954 = vrsqrt.f32 %v318_v31 }
  0xd5   : > { %2837 = vmatprep.mubr.msk.f32.mxu0 %vm223_vm0, %v358_v0  ;;  %2956 = vrsqrt.f32 %v319_v32 }
  0xd6   : > { %v2947_v3 = vpop.eup %2946  ;;  %2838 = vmatmul.mubr.msk.f32.gmra.mrb[8].mxu0 %vm223_vm0, %v359_v1 }
  0xd7   : > { %v2949_v16 = vpop.eup %2948  ;;  %v364_v38 = vmul.f32 %v2947_v3, %v3149_v25 }
  0xd8   : > { %v365_v39 = vmul.f32 %v2949_v16, %v3163_v43 }
  0xd9   : > { %2854 = vmatprep.mubr.msk.f32.mxu1 %vm223_vm0, %v364_v38 }
  0xda   : > { %v2951_v49 = vpop.eup %2950  ;;  %2855 = vmatmul.mubr.msk.f32.gmra.mrb[8].mxu1 %vm223_vm0, %v365_v39 }
  0xdb   : > { %v2953_v23 = vpop.eup %2952  ;;  %v360_v24 = vmul.f32 %v2951_v49, %v3211_v44 }
  0xdc   : > { %v361_v35 = vmul.f32 %v2953_v23, %v3214_v45 }
  0xdd   : > { %2840 = vmatprep.mubr.msk.f32.mxu0 %vm223_vm0, %v360_v24 }
  0xde   : > { %v2955_v46 = vpop.eup %2954  ;;  %2841 = vmatmul.mubr.msk.f32.gmra.mrb[10].mxu0 %vm223_vm0, %v361_v35 }
  0xdf   : > { %v2957_v2 = vpop.eup %2956  ;;  %v366_v25 = vmul.f32 %v2955_v46, %v3231_v11 }
  0xe0   : > { %v367_v43 = vmul.f32 %v2957_v2, %v3234_v14 }
  0xe1   : > { %2857 = vmatprep.mubr.msk.f32.mxu1 %vm223_vm0, %v366_v25 }
  0xe2   : > { %2858 = vmatmul.mubr.msk.f32.gmra.mrb[10].mxu1 %vm223_vm0, %v367_v43 }
 0x18c   : > { %v3316_v6 = vpop.f32.mrb[0].mxu1 }
 0x18d   : > { %4810 = vst [vmem:[#allocation2_spill] sm:$0xff] %v3316_v6  ;;  %v3318_v44 = vpop.f32.mrb[0].mxu0  ;;  %v3320_v45 = vpop.f32.mrb[1].mxu1  ;;  %v952_v42 = vsel %vm400_vm1, %v3316_v6, -inf  ;;  %v3326_v47 = vsel %vm2146_vm2, %v3316_v6, -inf  ;;  %v1987_v18 = vsel %vm223_vm0, %v3316_v6, -inf }
 0x18e   : > { %4811 = vst [vmem:[#allocation3_spill] sm:$0xff] %v3320_v45  ;;  %4812 = vst [vmem:[#allocation4_spill] sm:$0xff] %v3326_v47  ;;  %v3328_v11 = vpop.f32.mrb[1].mxu0  ;;  %v934_v14 = vsel %vm400_vm1, %v3318_v44, -inf  ;;  %v949_v52 = vsel %vm400_vm1, %v3320_v45, -inf  ;;  %v3338_v9 = vsel %vm2146_vm2, %v3320_v45, -inf }
 0x18f   : > { %4813 = vst [vmem:[#allocation5_spill] sm:$0xff] %v3328_v11  ;;  %935 = vmax.xlane.f32.xlu1 %v934_v14  ;;  %v931_v36 = vsel %vm400_vm1, %v3328_v11, -inf  ;;  %v1435_v8 = vmax.f32 %v949_v52, %v952_v42  ;;  %4814 = vst [vmem:[#allocation6_spill] sm:$0xff] %v3338_v9  ;;  %v1969_v59 = vsel %vm223_vm0, %v3318_v44, -inf  ;;  %v1966_v5 = vsel %vm223_vm0, %v3328_v11, -inf }
 0x190   : > { %932 = vmax.xlane.f32.xlu0 %v931_v36  ;;  %v1414_v57 = vmax.f32 %v931_v36, %v934_v14  ;;  %v1984_v32 = vsel %vm223_vm0, %v3320_v45, -inf  ;;  %v2150_v1 = vsel %vm2146_vm2, %v3318_v44, -inf  ;;  %v2147_v39 = vsel %vm2146_vm2, %v3328_v11, -inf }
 0x191   : > { %v3340_v51 = vpop.f32.mrb[2].mxu0  ;;  %v1436_v60 = vrot.slane %v1435_v8, 4 }
 0x192   : > { %4815 = vst [vmem:[#allocation7_spill] sm:$0xff] %v3340_v51  ;;  %v1415_v54 = vrot.slane %v1414_v57, 4  ;;  %v3342_v48 = vpop.f32.mrb[3].mxu0  ;;  %v3346_v55 = vsel %vm400_vm1, %v3340_v51, -inf }
 0x193   : > { %4816 = vst [vmem:[#allocation8_spill] sm:$0xff] %v3342_v48  ;;  %953 = vmax.xlane.f32.xlu1 %v952_v42  ;;  %v1437_v53 = vmax.f32 %v1435_v8, %v1436_v60  ;;  %v3350_v17 = vsel %vm400_vm1, %v3342_v48, -inf }
 0x194   : > { %v1416_v19 = vmax.f32 %v1414_v57, %v1415_v54  ;;  %950 = vmax.xlane.f32.xlu0 %v949_v52  ;;  %v1421_v34 = vmax.f32 %v3350_v17, %v3346_v55 }
 0x195   : > { %v1438_v63 = vrot.slane %v1437_v53, 2  ;;  %v3357_v4 = vpop.f32.mrb[2].mxu1 }
 0x196   : > { %4818 = vst [vmem:[#allocation10_spill] sm:$0xff] %v3357_v4  ;;  %v1417_v21 = vrot.slane %v1416_v19, 2  ;;  %v3361_v50 = vpop.f32.mrb[3].mxu1  ;;  %v1422_v27 = vrot.slane %v1421_v34, 4  ;;  %v3365_v28 = vsel %vm400_vm1, %v3357_v4, -inf  ;;  %v3375_v10 = vsel %vm2146_vm2, %v3357_v4, -inf }
 0x197   : > { %4819 = vst [vmem:[#allocation11_spill] sm:$0xff] %v3361_v50  ;;  %v1439_v62 = vmax.f32 %v1437_v53, %v1438_v63  ;;  %1970 = vmax.xlane.f32.xlu1 %v1969_v59  ;;  %v3371_v7 = vsel %vm400_vm1, %v3361_v50, -inf  ;;  %4820 = vst [vmem:[#allocation12_spill] sm:$0xff] %v3375_v10  ;;  %v3381_v41 = vsel %vm2146_vm2, %v3361_v50, -inf  ;;  %v1975_v53 = vsel %vm223_vm0, %v3340_v51, -inf }
 0x198   : > { %v1418_v13 = vmax.f32 %v1416_v19, %v1417_v21  ;;  %1967 = vmax.xlane.f32.xlu0 %v1966_v5  ;;  %v1423_v15 = vmax.f32 %v1421_v34, %v1422_v27  ;;  %v1442_v37 = vmax.f32 %v3371_v7, %v3365_v28  ;;  %4821 = vst [vmem:[#allocation13_spill] sm:$0xff] %v3381_v41  ;;  %v3448_v34 = vsel %vm2146_vm2, %v3340_v51, -inf }
 0x199   : > { %v1440_v12 = vrot.slane %v1439_v62, 1  ;;  %v3388_v20 = vpop.f32.mrb[4].mxu0  ;;  %v1972_v5 = vsel %vm223_vm0, %v3342_v48, -inf }
 0x19a   : > { %v1419_v26 = vrot.slane %v1418_v13, 1  ;;  %v3390_v30 = vpop.f32.mrb[5].mxu0  ;;  %v1424_v58 = vrot.slane %v1423_v15, 2  ;;  %v1443_v61 = vrot.slane %v1442_v37, 4  ;;  %v3394_v29 = vsel %vm400_vm1, %v3388_v20, -inf }
 0x19b   : > { %v1441_v31 = vmax.f32 %v1439_v62, %v1440_v12  ;;  %1988 = vmax.xlane.f32.xlu1 %v1987_v18  ;;  %v3400_v33 = vsel %vm400_vm1, %v3390_v30, -inf  ;;  %v1978_v47 = vsel %vm223_vm0, %v3390_v30, -inf }
 0x19c   : > { %v1420_v0 = vmax.f32 %v1418_v13, %v1419_v26  ;;  %1985 = vmax.xlane.f32.xlu0 %v1984_v32  ;;  %v1425_v3 = vmax.f32 %v1423_v15, %v1424_v58  ;;  %v1428_v16 = vmax.f32 %v3400_v33, %v3394_v29  ;;  %v1444_v49 = vmax.f32 %v1442_v37, %v1443_v61 }
 0x19d   : > { %vm1504_vm3 = vcmp.eq.f32.partialorder %v3320_v45, %v1441_v31  ;;  %vm1505_vm4 = vcmp.eq.f32.partialorder %v3316_v6, %v1441_v31  ;;  %v3408_v38 = vpop.f32.mrb[4].mxu1 }
 0x19e   : > { %4823 = vst [vmem:[#allocation15_spill] sm:$0xff] %v3408_v38  ;;  %vm1498_vm5 = vcmp.eq.f32.partialorder %v3328_v11, %v1420_v0  ;;  %vm1499_vm6 = vcmp.eq.f32.partialorder %v3318_v44, %v1420_v0  ;;  %v1528_v23 = vsel %vm1504_vm3, %v3355_v56, 16  ;;  %v1529_v24 = vsel %vm1505_vm4, %v3384_v22, 16  ;;  %v3416_v35 = vpop.f32.mrb[5].mxu1 }
 0x19f   : > { %4824 = vst [vmem:[#allocation16_spill] sm:$0xff] %v3416_v35  ;;  %v1522_v46 = vsel %vm1498_vm5, %v3355_v56, 16  ;;  %v1523_v2 = vsel %vm1499_vm6, %v3384_v22, 16  ;;  %v3421_v25 = vsel %vm400_vm1, %v1528_v23, 2147483647  ;;  %2151 = vmax.xlane.f32.xlu1 %v2150_v1  ;;  %v1426_v52 = vrot.slane %v1425_v3, 1 }
 0x1a0   : > { %v3424_v43 = vsel %vm400_vm1, %v1529_v24, 2147483647  ;;  %v3427_v42 = vsel %vm400_vm1, %v1522_v46, 2147483647  ;;  %v3430_v14 = vsel %vm400_vm1, %v1523_v2, 2147483647  ;;  %2148 = vmax.xlane.f32.xlu0 %v2147_v39 }
 0x1a1   : > { %vm1587_vm7 = vcmp.lt.s32.totalorder %v3421_v25, %v3424_v43  ;;  %vm1548_vm8 = vcmp.lt.s32.totalorder %v3427_v42, %v3430_v14  ;;  %v1445_v36 = vrot.slane %v1444_v49, 2  ;;  %v3436_v8 = vpop.f32.mrb[6].mxu0  ;;  %v1429_v57 = vrot.slane %v1428_v16, 4 }
 0x1a2   : > { %4825 = vst [vmem:[#allocation17_spill] sm:$0xff] %v3436_v8  ;;  %v3440_v60 = vsel %vm400_vm1, %v3408_v38, -inf  ;;  %v1427_v54 = vmax.f32 %v1425_v3, %v1426_v52  ;;  %v3444_v19 = vpop.f32.mrb[7].mxu0  ;;  %v3452_v63 = vsel %vm400_vm1, %v3416_v35, -inf  ;;  %v3459_v62 = vsel %vm400_vm1, %v3436_v8, -inf }
 0x1a3   : > { %4826 = vst [vmem:[#allocation18_spill] sm:$0xff] %v3444_v19  ;;  %941 = vmax.xlane.f32.xlu1 %v3346_v55  ;;  %v1446_v21 = vmax.f32 %v1444_v49, %v1445_v36  ;;  %v1430_v59 = vmax.f32 %v1428_v16, %v1429_v57  ;;  %v1449_v27 = vmax.f32 %v3452_v63, %v3440_v60  ;;  %v3468_v55 = vsel %vm400_vm1, %v3444_v19, -inf }
 0x1a4   : > { %938 = vmax.xlane.f32.xlu0 %v3350_v17  ;;  %vm1500_vm9 = vcmp.eq.f32.partialorder %v3342_v48, %v1427_v54  ;;  %vm1501_vm10 = vcmp.eq.f32.partialorder %v3340_v51, %v1427_v54  ;;  %v1456_v31 = vmax.f32 %v3468_v55, %v3459_v62  ;;  %v2153_v3 = vsel %vm2146_vm2, %v3342_v48, -inf }
 0x1a5   : > { %v1524_v13 = vsel %vm1500_vm9, %v3355_v56, 16  ;;  %v1525_v15 = vsel %vm1501_vm10, %v3384_v22, 16  ;;  %v1447_v37 = vrot.slane %v1446_v21, 1  ;;  %v3472_v12 = vpop.f32.mrb[6].mxu1  ;;  %v1431_v18 = vrot.slane %v1430_v59, 2 }
 0x1a6   : > { %4827 = vst [vmem:[#allocation19_spill] sm:$0xff] %v3472_v12  ;;  %v3475_v17 = vsel %vm400_vm1, %v1524_v13, 2147483647  ;;  %v3478_v26 = vsel %vm400_vm1, %v1525_v15, 2147483647  ;;  %v3480_v58 = vpop.f32.mrb[7].mxu1 }
 0x1a7   : > { %4828 = vst [vmem:[#allocation20_spill] sm:$0xff] %v3480_v58  ;;  %v1450_v61 = vrot.slane %v1449_v27, 4  ;;  %vm1561_vm11 = vcmp.lt.s32.totalorder %v3475_v17, %v3478_v26  ;;  %959 = vmax.xlane.f32.xlu1 %v3365_v28  ;;  %v1448_v32 = vmax.f32 %v1446_v21, %v1447_v37  ;;  %v1432_v0 = vmax.f32 %v1430_v59, %v1431_v18 }
 0x1a8   : > { %v3489_v1 = vsel %vm400_vm1, %v3472_v12, -inf  ;;  %956 = vmax.xlane.f32.xlu0 %v3371_v7  ;;  %v1457_v39 = vrot.slane %v1456_v31, 4  ;;  %v3496_v49 = vsel %vm400_vm1, %v3480_v58, -inf  ;;  %v1990_v37 = vsel %vm223_vm0, %v3361_v50, -inf }
 0x1a9   : > { %v1451_v16 = vmax.f32 %v1449_v27, %v1450_v61  ;;  %vm1506_vm12 = vcmp.eq.f32.partialorder %v3361_v50, %v1448_v32  ;;  %vm1507_vm13 = vcmp.eq.f32.partialorder %v3357_v4, %v1448_v32  ;;  %v1433_v28 = vrot.slane %v1432_v0, 1  ;;  %v3500_v23 = vpop.f32.mrb[8].mxu0 }
 0x1aa   : > { %4829 = vst [vmem:[#allocation21_spill] sm:$0xff] %v3500_v23  ;;  %v1477_v24 = vmax.f32 %v3496_v49, %v3489_v1  ;;  %v1530_v7 = vsel %vm1506_vm12, %v3355_v56, 16  ;;  %v1531_v46 = vsel %vm1507_vm13, %v3384_v22, 16  ;;  %v3506_v52 = vpop.f32.mrb[9].mxu0  ;;  %v1458_v36 = vmax.f32 %v1456_v31, %v1457_v39 }
 0x1ab   : > { %v1452_v2 = vrot.slane %v1451_v16, 2  ;;  %4830 = vst [vmem:[#allocation22_spill] sm:$0xff] %v3506_v52  ;;  %v3509_v57 = vsel %vm400_vm1, %v1530_v7, 2147483647  ;;  %v3512_v54 = vsel %vm400_vm1, %v1531_v46, 2147483647  ;;  %1976 = vmax.xlane.f32.xlu1 %v1975_v53  ;;  %v1434_v21 = vmax.f32 %v1432_v0, %v1433_v28 }
 0x1ac   : > { %v1478_v59 = vrot.slane %v1477_v24, 4  ;;  %vm1600_vm14 = vcmp.lt.s32.totalorder %v3509_v57, %v3512_v54  ;;  %1973 = vmax.xlane.f32.xlu0 %v1972_v5  ;;  %v1993_v27 = vsel %vm223_vm0, %v3357_v4, -inf  ;;  %v1459_v15 = vrot.slane %v1458_v36, 2 }
 0x1ad   : > { %v1453_v13 = vmax.f32 %v1451_v16, %v1452_v2  ;;  %vm1502_vm15 = vcmp.eq.f32.partialorder %v3390_v30, %v1434_v21  ;;  %vm1503_vm3 = vcmp.eq.f32.partialorder %v3388_v20, %v1434_v21  ;;  %v3522_v18 = vpop.f32.mrb[8].mxu1  ;;  %v3536_v7 = vsel %vm400_vm1, %v3500_v23, -inf }
 0x1ae   : > { %4831 = vst [vmem:[#allocation23_spill] sm:$0xff] %v3522_v18  ;;  %v1479_v53 = vmax.f32 %v1477_v24, %v1478_v59  ;;  %v1526_v61 = vsel %vm1502_vm15, %v3355_v56, 16  ;;  %v1527_v31 = vsel %vm1503_vm3, %v3384_v22, 16  ;;  %v3526_v32 = vpop.f32.mrb[9].mxu1  ;;  %v1460_v0 = vmax.f32 %v1458_v36, %v1459_v15 }
 0x1af   : > { %v1454_v5 = vrot.slane %v1453_v13, 1  ;;  %4832 = vst [vmem:[#allocation24_spill] sm:$0xff] %v3526_v32  ;;  %1994 = vmax.xlane.f32.xlu1 %v1993_v27  ;;  %v3529_v16 = vsel %vm400_vm1, %v1526_v61, 2147483647  ;;  %v3532_v39 = vsel %vm400_vm1, %v1527_v31, 2147483647 }
 0x1b0   : > { %v1480_v28 = vrot.slane %v1479_v53, 2  ;;  %1991 = vmax.xlane.f32.xlu0 %v1990_v37  ;;  %vm1574_vm4 = vcmp.lt.s32.totalorder %v3529_v16, %v3532_v39  ;;  %v1461_v46 = vrot.slane %v1460_v0, 1  ;;  %v3542_v2 = vsel %vm400_vm1, %v3506_v52, -inf }
 0x1b1   : > { %v1455_v24 = vmax.f32 %v1453_v13, %v1454_v5  ;;  %v3544_v36 = vpop.f32.mrb[10].mxu0  ;;  %v1463_v59 = vmax.f32 %v3542_v2, %v3536_v7  ;;  %v3550_v27 = vsel %vm400_vm1, %v3522_v18, -inf  ;;  %v3554_v15 = vsel %vm400_vm1, %v3526_v32, -inf }
 0x1b2   : > { %4833 = vst [vmem:[#allocation25_spill] sm:$0xff] %v3544_v36  ;;  %v1481_v21 = vmax.f32 %v1479_v53, %v1480_v28  ;;  %v1462_v13 = vmax.f32 %v1460_v0, %v1461_v46  ;;  %v3558_v37 = vpop.f32.mrb[11].mxu0  ;;  %v1484_v53 = vmax.f32 %v3554_v15, %v3550_v27  ;;  %v1999_v50 = vsel %vm223_vm0, %v3408_v38, -inf }
 0x1b3   : > { %vm1508_vm5 = vcmp.eq.f32.partialorder %v3416_v35, %v1455_v24  ;;  %vm1509_vm6 = vcmp.eq.f32.partialorder %v3408_v38, %v1455_v24  ;;  %4834 = vst [vmem:[#allocation26_spill] sm:$0xff] %v3558_v37  ;;  %2157 = vmax.xlane.f32.xlu1 %v3448_v34  ;;  %v1464_v28 = vrot.slane %v1463_v59, 4  ;;  %v3635_v51 = vsel %vm2146_vm2, %v3408_v38, -inf }
 0x1b4   : > { %v1532_v61 = vsel %vm1508_vm5, %v3355_v56, 16  ;;  %v1533_v31 = vsel %vm1509_vm6, %v3384_v22, 16  ;;  %v1482_v5 = vrot.slane %v1481_v21, 1  ;;  %2154 = vmax.xlane.f32.xlu0 %v2153_v3  ;;  %vm1510_vm9 = vcmp.eq.f32.partialorder %v3444_v19, %v1462_v13  ;;  %4837 = vst [vmem:[#allocation29_spill] sm:$0xff] %v3635_v51 }
 0x1b5   : > { %v3566_v40 = vsel %vm400_vm1, %v1532_v61, 2147483647  ;;  %v3569_v24 = vsel %vm400_vm1, %v1533_v31, 2147483647  ;;  %vm1511_vm10 = vcmp.eq.f32.partialorder %v3436_v8, %v1462_v13  ;;  %v1534_v34 = vsel %vm1510_vm9, %v3355_v56, 16  ;;  %v3577_v41 = vpop.f32.mrb[10].mxu1 }
 0x1b6   : > { %vm1613_vm12 = vcmp.lt.s32.totalorder %v3566_v40, %v3569_v24  ;;  %v1535_v0 = vsel %vm1511_vm10, %v3384_v22, 16  ;;  %v1483_v46 = vmax.f32 %v1481_v21, %v1482_v5  ;;  %4835 = vst [vmem:[#allocation27_spill] sm:$0xff] %v3577_v41  ;;  %v3580_v3 = vsel %vm400_vm1, %v1534_v34, 2147483647  ;;  %v3585_v31 = vpop.f32.mrb[11].mxu1 }
 0x1b7   : > { %v3583_v61 = vsel %vm400_vm1, %v1535_v0, 2147483647  ;;  %4836 = vst [vmem:[#allocation28_spill] sm:$0xff] %v3585_v31  ;;  %v1465_v10 = vmax.f32 %v1463_v59, %v1464_v28  ;;  %v1485_v13 = vrot.slane %v1484_v53, 4  ;;  %947 = vmax.xlane.f32.xlu1 %v3394_v29  ;;  %v3639_v45 = vsel %vm2146_vm2, %v3416_v35, -inf }
 0x1b8   : > { %vm1626_vm13 = vcmp.lt.s32.totalorder %v3580_v3, %v3583_v61  ;;  %vm1516_vm15 = vcmp.eq.f32.partialorder %v3480_v58, %v1483_v46  ;;  %vm1517_vm3 = vcmp.eq.f32.partialorder %v3472_v12, %v1483_v46  ;;  %944 = vmax.xlane.f32.xlu0 %v3400_v33  ;;  %v3606_v33 = vsel %vm400_vm1, %v3544_v36, -inf  ;;  %4838 = vst [vmem:[#allocation30_spill] sm:$0xff] %v3639_v45 }
 0x1b9   : > { %v1540_v21 = vsel %vm1516_vm15, %v3355_v56, 16  ;;  %v1541_v5 = vsel %vm1517_vm3, %v3384_v22, 16  ;;  %v1466_v34 = vrot.slane %v1465_v10, 2  ;;  %v1486_v0 = vmax.f32 %v1484_v53, %v1485_v13 }
 0x1ba   : > { %v3596_v59 = vsel %vm400_vm1, %v1540_v21, 2147483647  ;;  %v3599_v29 = vsel %vm400_vm1, %v1541_v5, 2147483647  ;;  %v3610_v53 = vsel %vm400_vm1, %v3558_v37, -inf  ;;  %v3614_v46 = vsel %vm400_vm1, %v3577_v41, -inf }
 0x1bb   : > { %vm1665_vm5 = vcmp.lt.s32.totalorder %v3596_v59, %v3599_v29  ;;  %v1467_v28 = vmax.f32 %v1465_v10, %v1466_v34  ;;  %v1487_v9 = vrot.slane %v1486_v0, 2  ;;  %965 = vmax.xlane.f32.xlu1 %v3440_v60  ;;  %v3618_v13 = vsel %vm400_vm1, %v3585_v31, -inf }
 0x1bc   : > { %962 = vmax.xlane.f32.xlu0 %v3452_v63  ;;  %v1470_v21 = vmax.f32 %v3610_v53, %v3606_v33  ;;  %v1491_v5 = vmax.f32 %v3618_v13, %v3614_v46  ;;  %v1981_v34 = vsel %vm223_vm0, %v3388_v20, -inf  ;;  %v1996_v63 = vsel %vm223_vm0, %v3416_v35, -inf }
 0x1bd   : > { %v1468_v10 = vrot.slane %v1467_v28, 1  ;;  %v1488_v60 = vmax.f32 %v1486_v0, %v1487_v9  ;;  %v3643_v6 = vsel %vm2146_vm2, %v3436_v8, -inf  ;;  %v3647_v11 = vsel %vm2146_vm2, %v3444_v19, -inf }
 0x1be   : > { %v1471_v0 = vrot.slane %v1470_v21, 4  ;;  %v1492_v48 = vrot.slane %v1491_v5, 4  ;;  %4839 = vst [vmem:[#allocation31_spill] sm:$0xff] %v3643_v6  ;;  %v3655_v35 = vsel %vm2146_vm2, %v3500_v23, -inf }
 0x1bf   : > { %v1469_v4 = vmax.f32 %v1467_v28, %v1468_v10  ;;  %v1489_v9 = vrot.slane %v1488_v60, 1  ;;  %1982 = vmax.xlane.f32.xlu1 %v1981_v34  ;;  %4840 = vst [vmem:[#allocation32_spill] sm:$0xff] %v3655_v35  ;;  %v3696_v35 = vsel %vm2146_vm2, %v3480_v58, -inf }
 0x1c0   : > { %1979 = vmax.xlane.f32.xlu0 %v1978_v47  ;;  %v1472_v10 = vmax.f32 %v1470_v21, %v1471_v0  ;;  %v1493_v45 = vmax.f32 %v1491_v5, %v1492_v48  ;;  %v2159_v0 = vsel %vm2146_vm2, %v3390_v30, -inf }
 0x1c1   : > { %vm1512_vm6 = vcmp.eq.f32.partialorder %v3506_v52, %v1469_v4  ;;  %vm1513_vm9 = vcmp.eq.f32.partialorder %v3500_v23, %v1469_v4  ;;  %v1490_v28 = vmax.f32 %v1488_v60, %v1489_v9  ;;  %v3675_v9 = vsel %vm2146_vm2, %v3506_v52, -inf }
 0x1c2   : > { %v1536_v34 = vsel %vm1512_vm6, %v3355_v56, 16  ;;  %v1537_v51 = vsel %vm1513_vm9, %v3384_v22, 16  ;;  %v1473_v60 = vrot.slane %v1472_v10, 2  ;;  %v1494_v5 = vrot.slane %v1493_v45, 2  ;;  %4841 = vst [vmem:[#allocation33_spill] sm:$0xff] %v3675_v9 }
 0x1c3   : > { %v3658_v6 = vsel %vm400_vm1, %v1536_v34, 2147483647  ;;  %v3661_v47 = vsel %vm400_vm1, %v1537_v51, 2147483647  ;;  %vm1518_vm10 = vcmp.eq.f32.partialorder %v3526_v32, %v1490_v28  ;;  %vm1519_vm15 = vcmp.eq.f32.partialorder %v3522_v18, %v1490_v28  ;;  %2000 = vmax.xlane.f32.xlu1 %v1999_v50 }
 0x1c4   : > { %vm1639_vm3 = vcmp.lt.s32.totalorder %v3658_v6, %v3661_v47  ;;  %v1542_v48 = vsel %vm1518_vm10, %v3355_v56, 16  ;;  %v1543_v4 = vsel %vm1519_vm15, %v3384_v22, 16  ;;  %1997 = vmax.xlane.f32.xlu0 %v1996_v63  ;;  %v2162_v50 = vsel %vm2146_vm2, %v3388_v20, -inf }
 0x1c5   : > { %v3670_v21 = vsel %vm400_vm1, %v1542_v48, 2147483647  ;;  %v1677_v51 = vsel %vm400_vm1, %v1543_v4, 2147483647  ;;  %v1474_v28 = vmax.f32 %v1472_v10, %v1473_v60  ;;  %v1495_v63 = vmax.f32 %v1493_v45, %v1494_v5 }
 0x1c6   : > { %v3684_v34 = vsel %vm2146_vm2, %v3544_v36, -inf  ;;  %v3688_v48 = vsel %vm2146_vm2, %v3558_v37, -inf  ;;  %v3692_v4 = vsel %vm2146_vm2, %v3472_v12, -inf  ;;  %v3700_v45 = vsel %vm2146_vm2, %v3522_v18, -inf }
 0x1c7   : > { %4842 = vst [vmem:[#allocation34_spill] sm:$0xff] %v3688_v48  ;;  %4843 = vst [vmem:[#allocation35_spill] sm:$0xff] %v3692_v4  ;;  %2163 = vmax.xlane.f32.xlu1 %v2162_v50  ;;  %v1475_v9 = vrot.slane %v1474_v28, 1  ;;  %v3704_v10 = vsel %vm2146_vm2, %v3526_v32, -inf  ;;  %v1496_v60 = vrot.slane %v1495_v63, 1  ;;  %v3708_v50 = vsel %vm2146_vm2, %v3577_v41, -inf }
 0x1c8   : > { %4844 = vst [vmem:[#allocation36_spill] sm:$0xff] %v3700_v45  ;;  %4845 = vst [vmem:[#allocation37_spill] sm:$0xff] %v3704_v10  ;;  %2160 = vmax.xlane.f32.xlu0 %v2159_v0  ;;  %v3712_v4 = vsel %vm2146_vm2, %v3585_v31, -inf }
 0x1c9   : > { %v1476_v5 = vmax.f32 %v1474_v28, %v1475_v9  ;;  %v1497_v48 = vmax.f32 %v1495_v63, %v1496_v60  ;;  %4846 = vst [vmem:[#allocation38_spill] sm:$0xff] %v3708_v50  ;;  %4847 = vst [vmem:[#allocation39_spill] sm:$0xff] %v3712_v4 }
 0x1cb   : > { %971 = vmax.xlane.f32.xlu1 %v3459_v62  ;;  %vm1514_vm9 = vcmp.eq.f32.partialorder %v3558_v37, %v1476_v5  ;;  %vm1515_vm10 = vcmp.eq.f32.partialorder %v3544_v36, %v1476_v5  ;;  %vm1520_vm15 = vcmp.eq.f32.partialorder %v3585_v31, %v1497_v48  ;;  %vm1521_vm6 = vcmp.eq.f32.partialorder %v3577_v41, %v1497_v48 }
 0x1cc   : > { %968 = vmax.xlane.f32.xlu0 %v3468_v55  ;;  %v1538_v0 = vsel %vm1514_vm9, %v3355_v56, 16  ;;  %v1539_v9 = vsel %vm1515_vm10, %v3384_v22, 16  ;;  %v1544_v62 = vsel %vm1520_vm15, %v3355_v56, 16  ;;  %v1545_v60 = vsel %vm1521_vm6, %v3384_v22, 16  ;;  %v4882_v56 = vld [vmem:[#allocation16_spill] sm:$0xff] }
 0x1cd   : > { %v1650_v28 = vsel %vm400_vm1, %v1538_v0, 2147483647  ;;  %v1651_v63 = vsel %vm400_vm1, %v1539_v9, 2147483647  ;;  %v1689_v5 = vsel %vm400_vm1, %v1544_v62, 2147483647  ;;  %v3734_v48 = vsel %vm1548_vm8, %v3427_v42, %v3430_v14 }
 0x1ce   : > { %vm1652_vm2 = vcmp.lt.s32.totalorder %v1650_v28, %v1651_v63  ;;  %v1690_v55 = vsel %vm400_vm1, %v1545_v60, 2147483647  ;;  %4848 = vst [vmem:[#allocation40_spill] sm:$0xff] %v3734_v48  ;;  %v3742_v0 = vsel %vm1587_vm7, %v3421_v25, %v3424_v43  ;;  %v3756_v42 = vsel %vm1600_vm14, %v3509_v57, %v3512_v54 }
 0x1cf   : > { %989 = vmax.xlane.f32.xlu1 %v3489_v1  ;;  %vm1691_vm9 = vcmp.lt.s32.totalorder %v1689_v5, %v1690_v55  ;;  %4849 = vst [vmem:[#allocation41_spill] sm:$0xff] %v3742_v0  ;;  %v3749_v1 = vsel %vm1561_vm11, %v3475_v17, %v3478_v26  ;;  %4851 = vst [vmem:[#allocation43_spill] sm:$0xff] %v3756_v42  ;;  %v3763_v25 = vsel %vm1574_vm4, %v3529_v16, %v3532_v39 }
 0x1d0   : > { %986 = vmax.xlane.f32.xlu0 %v3496_v49  ;;  %4850 = vst [vmem:[#allocation42_spill] sm:$0xff] %v3749_v1  ;;  %4852 = vst [vmem:[#allocation44_spill] sm:$0xff] %v3763_v25  ;;  %v2005_v43 = vsel %vm223_vm0, %v3436_v8, -inf  ;;  %v3772_v14 = vsel %vm1613_vm12, %v3566_v40, %v3569_v24  ;;  %v3779_v17 = vsel %vm1626_vm13, %v3580_v3, %v3583_v61  ;;  %v2002_v26 = vsel %vm223_vm0, %v3444_v19, -inf }
 0x1d1   : > { %4853 = vst [vmem:[#allocation45_spill] sm:$0xff] %v3772_v14  ;;  %4854 = vst [vmem:[#allocation46_spill] sm:$0xff] %v3779_v17  ;;  %v2023_v49 = vsel %vm223_vm0, %v3472_v12, -inf  ;;  %v2020_v40 = vsel %vm223_vm0, %v3480_v58, -inf  ;;  %v3792_v57 = vsel %vm1665_vm5, %v3596_v59, %v3599_v29  ;;  %v3803_v54 = vsel %vm1639_vm3, %v3658_v6, %v3661_v47  ;;  %v4863_v47 = vld [vmem:[#allocation5_spill] sm:$0xff] }
 0x1d2   : > { %4855 = vst [vmem:[#allocation47_spill] sm:$0xff] %v3792_v57  ;;  %4856 = vst [vmem:[#allocation48_spill] sm:$0xff] %v3803_v54  ;;  %vm4857_vm7 = vcmp.lt.s32.totalorder %v3670_v21, %v1677_v51  ;;  %v3811_v39 = vsel %vm1652_vm2, %v1650_v28, %v1651_v63  ;;  %v2029_v6 = vsel %vm223_vm0, %v3522_v18, -inf  ;;  %v2017_v24 = vsel %vm223_vm0, %v3544_v36, -inf  ;;  %v4864_v63 = vld [vmem:[#allocation2_spill] sm:$0xff] }
 0x1d3   : > { %2006 = vmax.xlane.f32.xlu1 %v2005_v43  ;;  %v3808_v16 = vsel %vm4857_vm7, %v3670_v21, %v1677_v51  ;;  %4859 = vst [vmem:[#allocation50_spill] sm:$0xff] %v3811_v39  ;;  %v2014_v3 = vsel %vm223_vm0, %v3558_v37, -inf  ;;  %v2035_v61 = vsel %vm223_vm0, %v3577_v41, -inf  ;;  %v2032_v59 = vsel %vm223_vm0, %v3585_v31, -inf }
 0x1d4   : > { %2003 = vmax.xlane.f32.xlu0 %v2002_v26  ;;  %4858 = vst [vmem:[#allocation49_spill] sm:$0xff] %v3808_v16  ;;  %v4861_v29 = vlaneseq }
 0x1d7   : > { %2024 = vmax.xlane.f32.xlu1 %v2023_v49 }
 0x1d8   : > { %2021 = vmax.xlane.f32.xlu0 %v2020_v40 }
 0x1db   : > { %977 = vmax.xlane.f32.xlu1 %v3536_v7  ;;  %v2011_v7 = vsel %vm223_vm0, %v3500_v23, -inf }
 0x1dc   : > { %974 = vmax.xlane.f32.xlu0 %v3542_v2  ;;  %v2008_v2 = vsel %vm223_vm0, %v3506_v52, -inf }
 0x1df   : > { %995 = vmax.xlane.f32.xlu1 %v3550_v27  ;;  %v2026_v27 = vsel %vm223_vm0, %v3526_v32, -inf }
 0x1e0   : > { %992 = vmax.xlane.f32.xlu0 %v3554_v15  ;;  %v3824_v15 = vsel %vm1691_vm9, %v1689_v5, %v1690_v55  ;;  %v4865_v5 = vld [vmem:[#allocation3_spill] sm:$0xff] }
 0x1e1   : > { %4860 = vst [vmem:[#allocation51_spill] sm:$0xff] %v3824_v15 }
 0x1e3   : > { %2012 = vmax.xlane.f32.xlu1 %v2011_v7 }
 0x1e4   : > { %2009 = vmax.xlane.f32.xlu0 %v2008_v2 }
 0x1e7   : > { %2030 = vmax.xlane.f32.xlu1 %v2029_v6 }
 0x1e8   : > { %2027 = vmax.xlane.f32.xlu0 %v2026_v27 }
 0x1eb   : > { %983 = vmax.xlane.f32.xlu1 %v3606_v33  ;;  %v3837_v33 = vand.u32 127, %v4861_v29 }
 0x1ec   : > { %980 = vmax.xlane.f32.xlu0 %v3610_v53 }
 0x1ed   : > { %4862 = vst [vmem:[#allocation52_spill] sm:$0xff] %v3837_v33 }
 0x1ef   : > { %1001 = vmax.xlane.f32.xlu1 %v3614_v46 }
 0x1f0   : > { %998 = vmax.xlane.f32.xlu0 %v3618_v13 }
 0x1f3   : > { %2018 = vmax.xlane.f32.xlu1 %v2017_v24 }
 0x1f4   : > { %2015 = vmax.xlane.f32.xlu0 %v2014_v3 }
 0x1f7   : > { %2036 = vmax.xlane.f32.xlu1 %v2035_v61 }
 0x1f8   : > { %2033 = vmax.xlane.f32.xlu0 %v2032_v59 }
 0x21c   : > { %v936_v53 = vpop.xlane.xlu1 %935 }
 0x21d   : > { %vm1004_vm8 = vcmp.eq.f32.partialorder %v3318_v44, %v936_v53  ;;  %v933_v46 = vpop.xlane.xlu0 %932 }
 0x21e   : > { %v1028_v13 = vsel %vm1004_vm8, %v3837_v33, 96  ;;  %vm1003_vm11 = vcmp.eq.f32.partialorder %v4863_v47, %v933_v46 }
 0x21f   : > { %v3843_v21 = vsel %vm400_vm1, %v1028_v13, 2147483647  ;;  %v1027_v51 = vsel %vm1003_vm11, %v3837_v33, 96 }
 0x220   : > { %v954_v9 = vpop.xlane.xlu1 %953  ;;  %v1068_v28 = vshra.s32 %v3843_v21, 16  ;;  %v3856_v26 = vsel %vm400_vm1, %v1027_v51, 2147483647 }
 0x221   : > { %vm1010_vm0 = vcmp.eq.f32.partialorder %v4864_v63, %v954_v9  ;;  %v951_v62 = vpop.xlane.xlu0 %950  ;;  %v1053_v27 = vshra.s32 %v3856_v26, 16  ;;  %v4872_v9 = vld [vmem:[#allocation7_spill] sm:$0xff] }
 0x222   : > { %v1034_v60 = vsel %vm1010_vm0, %v3837_v33, 96  ;;  %vm1009_vm14 = vcmp.eq.f32.partialorder %v4865_v5, %v951_v62  ;;  %v3850_v55 = vcvt.s32.f32 %v1068_v28 }
 0x223   : > { %v3853_v43 = vsel %vm400_vm1, %v1034_v60, 2147483647  ;;  %v1033_v49 = vsel %vm1009_vm14, %v3837_v33, 96  ;;  %v3876_v59 = vcvt.s32.f32 %v1053_v27  ;;  %v4873_v60 = vld [vmem:[#allocation8_spill] sm:$0xff] }
 0x224   : > { %v3859_v40 = vpop.xlane.xlu1 %1970  ;;  %1071 = vmin.xlane.f32.xlu0 %v3850_v55  ;;  %v1158_v7 = vshra.s32 %v3853_v43, 16  ;;  %v3869_v24 = vsel %vm400_vm1, %v1033_v49, 2147483647 }
 0x225   : > { %4866 = vst [vmem:[#allocation5_spill] sm:$0xff] %v3859_v40  ;;  %v3863_v2 = vpop.xlane.xlu0 %1967  ;;  %v1143_v29 = vshra.s32 %v3869_v24, 16 }
 0x226   : > { %4867 = vst [vmem:[#allocation2_spill] sm:$0xff] %v3863_v2  ;;  %v3865_v6 = vcvt.s32.f32 %v1158_v7  ;;  %v4875_v2 = vld [vmem:[#allocation11_spill] sm:$0xff] }
 0x227   : > { %v3884_v13 = vcvt.s32.f32 %v1143_v29  ;;  %v4874_v29 = vld [vmem:[#allocation10_spill] sm:$0xff] }
 0x228   : > { %v3871_v3 = vpop.xlane.xlu1 %1988  ;;  %1161 = vmin.xlane.f32.xlu0 %v3865_v6 }
 0x229   : > { %4868 = vst [vmem:[#allocation3_spill] sm:$0xff] %v3871_v3  ;;  %v3874_v61 = vpop.xlane.xlu0 %1985 }
 0x22a   : > { %4869 = vst [vmem:[#allocation53_spill] sm:$0xff] %v3874_v61 }
 0x22c   : > { %v3879_v53 = vpop.xlane.xlu1 %2151  ;;  %1056 = vmin.xlane.f32.xlu0 %v3876_v59 }
 0x22d   : > { %4870 = vst [vmem:[#allocation54_spill] sm:$0xff] %v3879_v53  ;;  %v3882_v46 = vpop.xlane.xlu0 %2148 }
 0x22e   : > { %4871 = vst [vmem:[#allocation55_spill] sm:$0xff] %v3882_v46 }
 0x230   : > { %v942_v51 = vpop.xlane.xlu1 %941  ;;  %1146 = vmin.xlane.f32.xlu0 %v3884_v13 }
 0x231   : > { %vm1006_vm4 = vcmp.eq.f32.partialorder %v4872_v9, %v942_v51  ;;  %v939_v28 = vpop.xlane.xlu0 %938 }
 0x232   : > { %v1030_v62 = vsel %vm1006_vm4, %v3837_v33, 96  ;;  %vm1005_vm12 = vcmp.eq.f32.partialorder %v4873_v60, %v939_v28 }
 0x233   : > { %v3891_v49 = vsel %vm400_vm1, %v1030_v62, 2147483647  ;;  %v1029_v7 = vsel %vm1005_vm12, %v3837_v33, 96 }
 0x234   : > { %v960_v27 = vpop.xlane.xlu1 %959  ;;  %v1098_v61 = vshra.s32 %v3891_v49, 16  ;;  %v3904_v28 = vsel %vm400_vm1, %v1029_v7, 2147483647 }
 0x235   : > { %vm1012_vm13 = vcmp.eq.f32.partialorder %v4874_v29, %v960_v27  ;;  %v957_v3 = vpop.xlane.xlu0 %956 }
 0x236   : > { %v1036_v46 = vsel %vm1012_vm13, %v3837_v33, 96  ;;  %vm1011_vm5 = vcmp.eq.f32.partialorder %v4875_v2, %v957_v3  ;;  %v3898_v51 = vcvt.s32.f32 %v1098_v61  ;;  %v1083_v3 = vshra.s32 %v3904_v28, 16 }
 0x237   : > { %v3901_v53 = vsel %vm400_vm1, %v1036_v46, 2147483647  ;;  %v1035_v62 = vsel %vm1011_vm5, %v3837_v33, 96 }
 0x238   : > { %v3907_v40 = vpop.xlane.xlu1 %1976  ;;  %1101 = vmin.xlane.f32.xlu0 %v3898_v51  ;;  %v1188_v27 = vshra.s32 %v3901_v53, 16  ;;  %v3917_v61 = vsel %vm400_vm1, %v1035_v62, 2147483647 }
 0x239   : > { %4876 = vst [vmem:[#allocation7_spill] sm:$0xff] %v3907_v40  ;;  %v3911_v15 = vpop.xlane.xlu0 %1973  ;;  %v3924_v40 = vcvt.s32.f32 %v1083_v3  ;;  %v1173_v16 = vshra.s32 %v3917_v61, 16 }
 0x23a   : > { %4877 = vst [vmem:[#allocation8_spill] sm:$0xff] %v3911_v15  ;;  %v3913_v39 = vcvt.s32.f32 %v1188_v27 }
 0x23b   : > { %v3932_v15 = vcvt.s32.f32 %v1173_v16 }
 0x23c   : > { %v3919_v46 = vpop.xlane.xlu1 %1994  ;;  %1191 = vmin.xlane.f32.xlu0 %v3913_v39 }
 0x23d   : > { %4878 = vst [vmem:[#allocation10_spill] sm:$0xff] %v3919_v46  ;;  %v3922_v7 = vpop.xlane.xlu0 %1991 }
 0x23e   : > { %4879 = vst [vmem:[#allocation11_spill] sm:$0xff] %v3922_v7 }
 0x240   : > { %v3927_v54 = vpop.xlane.xlu1 %2157  ;;  %1086 = vmin.xlane.f32.xlu0 %v3924_v40 }
 0x241   : > { %4880 = vst [vmem:[#allocation56_spill] sm:$0xff] %v3927_v54  ;;  %v3930_v27 = vpop.xlane.xlu0 %2154 }
 0x242   : > { %4881 = vst [vmem:[#allocation57_spill] sm:$0xff] %v3930_v27 }
 0x244   : > { %v948_v62 = vpop.xlane.xlu1 %947  ;;  %1176 = vmin.xlane.f32.xlu0 %v3932_v15 }
 0x245   : > { %vm1008_vm3 = vcmp.eq.f32.partialorder %v3388_v20, %v948_v62  ;;  %v945_v46 = vpop.xlane.xlu0 %944 }
 0x246   : > { %v1032_v7 = vsel %vm1008_vm3, %v3837_v33, 96  ;;  %vm1007_vm6 = vcmp.eq.f32.partialorder %v3390_v30, %v945_v46 }
 0x247   : > { %v1031_v3 = vsel %vm1007_vm6, %v3837_v33, 96  ;;  %v3940_v54 = vsel %vm400_vm1, %v1032_v7, 2147483647  ;;  %vm2327_vm6 = vcmask 785920  }
 0x248   : > { %v966_v57 = vpop.xlane.xlu1 %965  ;;  %v1128_v27 = vshra.s32 %v3940_v54, 16  ;;  %v3944_v16 = vsel %vm400_vm1, %v1031_v3, 2147483647 }
 0x249   : > { %vm1014_vm10 = vcmp.eq.f32.partialorder %v3408_v38, %v966_v57  ;;  %v963_v17 = vpop.xlane.xlu0 %962  ;;  %v1113_v46 = vshra.s32 %v3944_v16, 16 }
 0x24a   : > { %v1038_v62 = vsel %vm1014_vm10, %v3837_v33, 96  ;;  %vm1013_vm15 = vcmp.eq.f32.partialorder %v4882_v56, %v963_v17  ;;  %v3949_v14 = vcvt.s32.f32 %v1128_v27 }
 0x24b   : > { %v1037_v7 = vsel %vm1013_vm15, %v3837_v33, 96  ;;  %v3954_v25 = vsel %vm400_vm1, %v1038_v62, 2147483647  ;;  %v3967_v27 = vcvt.s32.f32 %v1113_v46 }
 0x24c   : > { %v3957_v22 = vsel %vm400_vm1, %v1037_v7, 2147483647  ;;  %v3959_v3 = vpop.xlane.xlu1 %1982  ;;  %1131 = vmin.xlane.f32.xlu0 %v3949_v14  ;;  %v1218_v57 = vshra.s32 %v3954_v25, 16 }
 0x24d   : > { %4883 = vst [vmem:[#allocation58_spill] sm:$0xff] %v3959_v3  ;;  %v3963_v42 = vpop.xlane.xlu0 %1979  ;;  %v1203_v1 = vshra.s32 %v3957_v22, 16 }
 0x24e   : > { %4884 = vst [vmem:[#allocation59_spill] sm:$0xff] %v3963_v42  ;;  %v3965_v17 = vcvt.s32.f32 %v1218_v57 }
 0x24f   : > { %v3976_v7 = vcvt.s32.f32 %v1203_v1 }
 0x250   : > { %v3970_v0 = vpop.xlane.xlu1 %2000  ;;  %1221 = vmin.xlane.f32.xlu1 %v3965_v17  ;;  %1116 = vmin.xlane.f32.xlu0 %v3967_v27 }
 0x251   : > { %4885 = vst [vmem:[#allocation60_spill] sm:$0xff] %v3970_v0  ;;  %v3974_v62 = vpop.xlane.xlu0 %1997 }
 0x252   : > { %4886 = vst [vmem:[#allocation61_spill] sm:$0xff] %v3974_v62 }
 0x254   : > { %v3978_v3 = vpop.xlane.xlu1 %2163  ;;  %1206 = vmin.xlane.f32.xlu0 %v3976_v7 }
 0x255   : > { %4887 = vst [vmem:[#allocation62_spill] sm:$0xff] %v3978_v3  ;;  %v3981_v57 = vpop.xlane.xlu0 %2160 }
 0x256   : > { %4888 = vst [vmem:[#allocation63_spill] sm:$0xff] %v3981_v57 }
 0x258   : > { %v972_v46 = vpop.xlane.xlu1 %971 }
 0x259   : > { %vm1016_vm2 = vcmp.eq.f32.partialorder %v3436_v8, %v972_v46  ;;  %v969_v42 = vpop.xlane.xlu0 %968 }
 0x25a   : > { %v1040_v0 = vsel %vm1016_vm2, %v3837_v33, 96  ;;  %vm1015_vm9 = vcmp.eq.f32.partialorder %v3444_v19, %v969_v42 }
 0x25b   : > { %v1039_v48 = vsel %vm1015_vm9, %v3837_v33, 96  ;;  %v3988_v62 = vsel %vm400_vm1, %v1040_v0, 2147483647 }
 0x25c   : > { %v3991_v1 = vsel %vm400_vm1, %v1039_v48, 2147483647  ;;  %v990_v3 = vpop.xlane.xlu1 %989  ;;  %v1248_v4 = vshra.s32 %v3988_v62, 16 }
 0x25d   : > { %vm1022_vm7 = vcmp.eq.f32.partialorder %v3472_v12, %v990_v3  ;;  %v987_v57 = vpop.xlane.xlu0 %986  ;;  %v1233_v46 = vshra.s32 %v3991_v1, 16 }
 0x25e   : > { %v1046_v50 = vsel %vm1022_vm7, %v3837_v33, 96  ;;  %vm1021_vm8 = vcmp.eq.f32.partialorder %v3480_v58, %v987_v57  ;;  %v3998_v42 = vcvt.s32.f32 %v1248_v4 }
 0x25f   : > { %v1045_v0 = vsel %vm1021_vm8, %v3837_v33, 96  ;;  %v4001_v19 = vcvt.s32.f32 %v1233_v46  ;;  %v4004_v48 = vsel %vm400_vm1, %v1046_v50, 2147483647 }
 0x260   : > { %v4007_v8 = vsel %vm400_vm1, %v1045_v0, 2147483647  ;;  %v4009_v3 = vpop.xlane.xlu1 %2006  ;;  %1251 = vmin.xlane.f32.xlu1 %v3998_v42  ;;  %v1338_v12 = vshra.s32 %v4004_v48, 16 }
 0x261   : > { %4889 = vst [vmem:[#allocation64_spill] sm:$0xff] %v4009_v3  ;;  %1236 = vmin.xlane.f32.xlu0 %v4001_v19  ;;  %v4014_v4 = vpop.xlane.xlu0 %2003  ;;  %v1323_v57 = vshra.s32 %v4007_v8, 16 }
 0x262   : > { %4890 = vst [vmem:[#allocation65_spill] sm:$0xff] %v4014_v4  ;;  %v4017_v46 = vcvt.s32.f32 %v1338_v12 }
 0x263   : > { %v4019_v58 = vcvt.s32.f32 %v1323_v57 }
 0x264   : > { %v4021_v50 = vpop.xlane.xlu1 %2024  ;;  %1341 = vmin.xlane.f32.xlu1 %v4017_v46 }
 0x265   : > { %4891 = vst [vmem:[#allocation66_spill] sm:$0xff] %v4021_v50  ;;  %1326 = vmin.xlane.f32.xlu0 %v4019_v58  ;;  %v4025_v0 = vpop.xlane.xlu0 %2021 }
 0x266   : > { %4892 = vst [vmem:[#allocation67_spill] sm:$0xff] %v4025_v0 }
 0x268   : > { %v978_v3 = vpop.xlane.xlu1 %977 }
 0x269   : > { %vm1018_vm11 = vcmp.eq.f32.partialorder %v3500_v23, %v978_v3  ;;  %v975_v56 = vpop.xlane.xlu0 %974 }
 0x26a   : > { %v1042_v4 = vsel %vm1018_vm11, %v3837_v33, 96  ;;  %vm1017_vm0 = vcmp.eq.f32.partialorder %v3506_v52, %v975_v56 }
 0x26b   : > { %v1041_v12 = vsel %vm1017_vm0, %v3837_v33, 96  ;;  %v4032_v57 = vsel %vm400_vm1, %v1042_v4, 2147483647 }
 0x26c   : > { %v4035_v50 = vsel %vm400_vm1, %v1041_v12, 2147483647  ;;  %v996_v38 = vpop.xlane.xlu1 %995  ;;  %v1278_v10 = vshra.s32 %v4032_v57, 16 }
 0x26d   : > { %vm1024_vm14 = vcmp.eq.f32.partialorder %v3522_v18, %v996_v38  ;;  %v993_v0 = vpop.xlane.xlu0 %992  ;;  %v1263_v3 = vshra.s32 %v4035_v50, 16 }
 0x26e   : > { %v1048_v23 = vsel %vm1024_vm14, %v3837_v33, 96  ;;  %vm1023_vm4 = vcmp.eq.f32.partialorder %v3526_v32, %v993_v0  ;;  %v4042_v56 = vcvt.s32.f32 %v1278_v10 }
 0x26f   : > { %v1047_v4 = vsel %vm1023_vm4, %v3837_v33, 96  ;;  %v4045_v52 = vcvt.s32.f32 %v1263_v3  ;;  %v4048_v12 = vsel %vm400_vm1, %v1048_v23, 2147483647 }
 0x270   : > { %v4051_v45 = vsel %vm400_vm1, %v1047_v4, 2147483647  ;;  %v4053_v38 = vpop.xlane.xlu1 %2012  ;;  %1281 = vmin.xlane.f32.xlu1 %v4042_v56  ;;  %v1368_v18 = vshra.s32 %v4048_v12, 16 }
 0x271   : > { %4893 = vst [vmem:[#allocation68_spill] sm:$0xff] %v4045_v52  ;;  %4894 = vst [vmem:[#allocation69_spill] sm:$0xff] %v4053_v38  ;;  %1266 = vmin.xlane.f32.xlu0 %v4045_v52  ;;  %v4058_v10 = vpop.xlane.xlu0 %2009  ;;  %v1353_v0 = vshra.s32 %v4051_v45, 16 }
 0x272   : > { %4895 = vst [vmem:[#allocation70_spill] sm:$0xff] %v4058_v10  ;;  %v4061_v3 = vcvt.s32.f32 %v1368_v18 }
 0x273   : > { %v4063_v32 = vcvt.s32.f32 %v1353_v0 }
 0x274   : > { %4896 = vst [vmem:[#allocation71_spill] sm:$0xff] %v4061_v3  ;;  %v4065_v23 = vpop.xlane.xlu1 %2030  ;;  %1371 = vmin.xlane.f32.xlu1 %v4061_v3 }
 0x275   : > { %4897 = vst [vmem:[#allocation72_spill] sm:$0xff] %v4063_v32  ;;  %4898 = vst [vmem:[#allocation73_spill] sm:$0xff] %v4065_v23  ;;  %1356 = vmin.xlane.f32.xlu0 %v4063_v32  ;;  %v4069_v4 = vpop.xlane.xlu0 %2027 }
 0x276   : > { %4899 = vst [vmem:[#allocation74_spill] sm:$0xff] %v4069_v4 }
 0x278   : > { %v984_v38 = vpop.xlane.xlu1 %983 }
 0x279   : > { %vm1020_vm12 = vcmp.eq.f32.partialorder %v3544_v36, %v984_v38  ;;  %v981_v52 = vpop.xlane.xlu0 %980 }
 0x27a   : > { %v1044_v10 = vsel %vm1020_vm12, %v3837_v33, 96  ;;  %vm1019_vm13 = vcmp.eq.f32.partialorder %v3558_v37, %v981_v52 }
 0x27b   : > { %v1043_v18 = vsel %vm1019_vm13, %v3837_v33, 96  ;;  %v4076_v0 = vsel %vm400_vm1, %v1044_v10, 2147483647 }
 0x27c   : > { %4900 = vst [vmem:[#allocation75_spill] sm:$0xff] %v4076_v0  ;;  %v4079_v23 = vsel %vm400_vm1, %v1043_v18, 2147483647  ;;  %v1002_v3 = vpop.xlane.xlu1 %1001  ;;  %v1308_v32 = vshra.s32 %v4076_v0, 16 }
 0x27d   : > { %vm1026_vm5 = vcmp.eq.f32.partialorder %v3577_v41, %v1002_v3  ;;  %v999_v4 = vpop.xlane.xlu0 %998  ;;  %v1293_v38 = vshra.s32 %v4079_v23, 16  ;;  %v4904_v41 = vld [vmem:[#allocation13_spill] sm:$0xff] }
 0x27e   : > { %v1050_v36 = vsel %vm1026_vm5, %v3837_v33, 96  ;;  %vm1025_vm3 = vcmp.eq.f32.partialorder %v3585_v31, %v999_v4  ;;  %v4086_v52 = vcvt.s32.f32 %v1308_v32 }
 0x27f   : > { %v1049_v10 = vsel %vm1025_vm3, %v3837_v33, 96  ;;  %v4089_v37 = vcvt.s32.f32 %v1293_v38  ;;  %v4092_v18 = vsel %vm400_vm1, %v1050_v36, 2147483647  ;;  %v4901_v36 = vld [vmem:[#allocation4_spill] sm:$0xff]  ;;  %v4902_v38 = vld [vmem:[#allocation6_spill] sm:$0xff]  ;;  %v2331_v33 = vsel %vm2327_vm6, %v3318_v44, -inf }
 0x280   : > { %v4095_v0 = vsel %vm400_vm1, %v1049_v10, 2147483647  ;;  %1311 = vmin.xlane.f32.xlu1 %v4086_v52  ;;  %v1398_v3 = vshra.s32 %v4092_v18, 16  ;;  %v4903_v10 = vld [vmem:[#allocation12_spill] sm:$0xff] }
 0x281   : > { %1296 = vmin.xlane.f32.xlu0 %v4089_v37  ;;  %v1383_v4 = vshra.s32 %v4095_v0, 16  ;;  %v4908_v44 = vld [vmem:[#allocation32_spill] sm:$0xff] }
 0x282   : > { %v4101_v32 = vcvt.s32.f32 %v1398_v3  ;;  %v2328_v3 = vsel %vm2327_vm6, %v4863_v47, -inf  ;;  %v2343_v47 = vsel %vm2327_vm6, %v3388_v20, -inf  ;;  %v2352_v20 = vsel %vm2327_vm6, %v4875_v2, -inf }
 0x283   : > { %v4103_v31 = vcvt.s32.f32 %v1383_v4  ;;  %v2337_v4 = vsel %vm2327_vm6, %v4872_v9, -inf  ;;  %v2340_v9 = vsel %vm2327_vm6, %v3390_v30, -inf  ;;  %v1067_v30 = vand.u32 65535, %v3843_v21 }
 0x284   : > { %1401 = vmin.xlane.f32.xlu1 %v4101_v32 }
 0x285   : > { %1386 = vmin.xlane.f32.xlu0 %v4103_v31 }
 0x288   : > { %2169 = vmax.xlane.f32.xlu1 %v4901_v36  ;;  %v2334_v36 = vsel %vm2327_vm6, %v4873_v60, -inf  ;;  %v4129_v60 = vpop.xlane.xlu0 %2015 }
 0x289   : > { %2166 = vmax.xlane.f32.xlu0 %v4902_v38  ;;  %v4905_v38 = vld [vmem:[#allocation29_spill] sm:$0xff]  ;;  %4910 = vst [vmem:[#allocation4_spill] sm:$0xff] %v4129_v60 }
 0x28c   : > { %2175 = vmax.xlane.f32.xlu1 %v4903_v10  ;;  %v4906_v10 = vld [vmem:[#allocation30_spill] sm:$0xff] }
 0x28d   : > { %2172 = vmax.xlane.f32.xlu0 %v4904_v41  ;;  %v4907_v41 = vld [vmem:[#allocation31_spill] sm:$0xff] }
 0x290   : > { %2332 = vmax.xlane.f32.xlu1 %v2331_v33  ;;  %v4909_v33 = vld [vmem:[#allocation33_spill] sm:$0xff] }
 0x291   : > { %2329 = vmax.xlane.f32.xlu0 %v2328_v3  ;;  %v2349_v3 = vsel %vm2327_vm6, %v4864_v63, -inf  ;;  %v4912_v63 = vld [vmem:[#allocation34_spill] sm:$0xff] }
 0x294   : > { %2338 = vmax.xlane.f32.xlu1 %v2337_v4  ;;  %v2355_v4 = vsel %vm2327_vm6, %v4874_v29, -inf  ;;  %v1157_v29 = vand.u32 65535, %v3853_v43 }
 0x295   : > { %2335 = vmax.xlane.f32.xlu0 %v2334_v36  ;;  %v4139_v36 = vpop.xlane.xlu0 %2033 }
 0x296   : > { %4911 = vst [vmem:[#allocation6_spill] sm:$0xff] %v4139_v36 }
 0x298   : > { %2181 = vmax.xlane.f32.xlu1 %v4905_v38 }
 0x299   : > { %2178 = vmax.xlane.f32.xlu0 %v4906_v10  ;;  %v1069_v10 = vcvt.s32.f32 %v1067_v30 }
 0x29c   : > { %2187 = vmax.xlane.f32.xlu1 %v4907_v41 }
 0x29d   : > { %2184 = vmax.xlane.f32.xlu0 %v3647_v11  ;;  %v2346_v11 = vsel %vm2327_vm6, %v4865_v5, -inf  ;;  %v4913_v5 = vld [vmem:[#allocation35_spill] sm:$0xff] }
 0x2a0   : > { %2193 = vmax.xlane.f32.xlu1 %v4908_v44  ;;  %v1159_v44 = vcvt.s32.f32 %v1157_v29  ;;  %v4185_v29 = vpop.xlane.xlu1 %2018 }
 0x2a1   : > { %2190 = vmax.xlane.f32.xlu0 %v4909_v33  ;;  %4914 = vst [vmem:[#allocation12_spill] sm:$0xff] %v4185_v29 }
 0x2a4   : > { %2344 = vmax.xlane.f32.xlu1 %v2343_v47 }
 0x2a5   : > { %2341 = vmax.xlane.f32.xlu0 %v2340_v9 }
 0x2a8   : > { %2350 = vmax.xlane.f32.xlu1 %v2349_v3  ;;  %v1187_v3 = vand.u32 65535, %v3901_v53  ;;  %v1172_v53 = vand.u32 65535, %v3917_v61  ;;  %v1127_v61 = vand.u32 65535, %v3940_v54  ;;  %v1202_v54 = vand.u32 65535, %v3957_v22 }
 0x2a9   : > { %2347 = vmax.xlane.f32.xlu0 %v2346_v11  ;;  %v1247_v22 = vand.u32 65535, %v3988_v62 }
 0x2ac   : > { %2356 = vmax.xlane.f32.xlu1 %v2355_v4  ;;  %v1082_v4 = vand.u32 65535, %v3904_v28  ;;  %v1174_v28 = vcvt.s32.f32 %v1172_v53  ;;  %v1262_v53 = vand.u32 65535, %v4035_v50 }
 0x2ad   : > { %2353 = vmax.xlane.f32.xlu0 %v2352_v20 }
 0x2b0   : > { %2199 = vmax.xlane.f32.xlu1 %v3684_v34  ;;  %v1052_v34 = vand.u32 65535, %v3856_v26  ;;  %v1097_v26 = vand.u32 65535, %v3891_v49 }
 0x2b1   : > { %2196 = vmax.xlane.f32.xlu0 %v4912_v63  ;;  %v4144_v38 = vpop.xlane.xlu0 %1071  ;;  %v1084_v63 = vcvt.s32.f32 %v1082_v4 }
 0x2b2   : > { %vm1073_vm10 = vcmp.eq.f32.partialorder %v3850_v55, %v4144_v38  ;;  %v1054_v43 = vcvt.s32.f32 %v1052_v34 }
 0x2b3   : > { %v1074_v41 = vsel %vm1073_vm10, %v1069_v10, inf  ;;  %v1217_v10 = vand.u32 65535, %v3954_v25 }
 0x2b4   : > { %2205 = vmax.xlane.f32.xlu1 %v4913_v5 }
 0x2b5   : > { %2202 = vmax.xlane.f32.xlu0 %v3696_v35  ;;  %v4151_v2 = vpop.xlane.xlu0 %1161  ;;  %v1142_v35 = vand.u32 65535, %v3869_v24 }
 0x2b6   : > { %vm1163_vm15 = vcmp.eq.f32.partialorder %v3865_v6, %v4151_v2 }
 0x2b7   : > { %v1164_v33 = vsel %vm1163_vm15, %v1159_v44, inf  ;;  %v1144_v6 = vcvt.s32.f32 %v1142_v35 }
 0x2b8   : > { %1075 = vmin.xlane.f32.xlu1 %v1074_v41  ;;  %v4189_v41 = vpop.xlane.xlu1 %2036 }
 0x2b9   : > { %v4156_v21 = vpop.xlane.xlu0 %1056  ;;  %4915 = vst [vmem:[#allocation13_spill] sm:$0xff] %v4189_v41 }
 0x2ba   : > { %vm1058_vm2 = vcmp.eq.f32.partialorder %v3876_v59, %v4156_v21  ;;  %v1099_v59 = vcvt.s32.f32 %v1097_v26  ;;  %v1204_v26 = vcvt.s32.f32 %v1202_v54  ;;  %v4919_v54 = vld [vmem:[#allocation75_spill] sm:$0xff] }
 0x2bb   : > { %v1059_v47 = vsel %vm1058_vm2, %v1054_v43, inf  ;;  %v1219_v43 = vcvt.s32.f32 %v1217_v10 }
 0x2bc   : > { %1165 = vmin.xlane.f32.xlu1 %v1164_v33 }
 0x2bd   : > { %v4161_v55 = vpop.xlane.xlu0 %1146 }
 0x2be   : > { %vm1148_vm9 = vcmp.eq.f32.partialorder %v3884_v13, %v4161_v55  ;;  %v1189_v13 = vcvt.s32.f32 %v1187_v3 }
 0x2bf   : > { %v1149_v9 = vsel %vm1148_vm9, %v1144_v6, inf }
 0x2c0   : > { %1060 = vmin.xlane.f32.xlu1 %v1059_v47 }
 0x2c4   : > { %1150 = vmin.xlane.f32.xlu1 %v1149_v9  ;;  %v1337_v9 = vand.u32 65535, %v4004_v48 }
 0x2c5   : > { %v4167_v11 = vpop.xlane.xlu0 %1101 }
 0x2c6   : > { %vm1103_vm7 = vcmp.eq.f32.partialorder %v3898_v51, %v4167_v11  ;;  %v1339_v48 = vcvt.s32.f32 %v1337_v9  ;;  %v1382_v9 = vand.u32 65535, %v4095_v0 }
 0x2c7   : > { %v1104_v24 = vsel %vm1103_vm7, %v1099_v59, inf }
 0x2c8   : > { %1105 = vmin.xlane.f32.xlu1 %v1104_v24 }
 0x2c9   : > { %v4172_v20 = vpop.xlane.xlu0 %1191 }
 0x2ca   : > { %vm1193_vm8 = vcmp.eq.f32.partialorder %v3913_v39, %v4172_v20 }
 0x2cb   : > { %v1194_v49 = vsel %vm1193_vm8, %v1189_v13, inf }
 0x2cc   : > { %1195 = vmin.xlane.f32.xlu1 %v1194_v49 }
 0x2cd   : > { %v4177_v30 = vpop.xlane.xlu0 %1086 }
 0x2ce   : > { %vm1088_vm11 = vcmp.eq.f32.partialorder %v3924_v40, %v4177_v30  ;;  %v1129_v40 = vcvt.s32.f32 %v1127_v61  ;;  %v4916_v61 = vld [vmem:[#allocation68_spill] sm:$0xff] }
 0x2cf   : > { %v1089_v51 = vsel %vm1088_vm11, %v1084_v63, inf  ;;  %v1367_v63 = vand.u32 65535, %v4048_v12 }
 0x2d0   : > { %1090 = vmin.xlane.f32.xlu1 %v1089_v51 }
 0x2d1   : > { %v4181_v5 = vpop.xlane.xlu0 %1176  ;;  %v1369_v12 = vcvt.s32.f32 %v1367_v63 }
 0x2d2   : > { %vm1178_vm0 = vcmp.eq.f32.partialorder %v3932_v15, %v4181_v5  ;;  %v1112_v15 = vand.u32 65535, %v3944_v16 }
 0x2d3   : > { %v1179_v39 = vsel %vm1178_vm0, %v1174_v28, inf }
 0x2d4   : > { %1180 = vmin.xlane.f32.xlu1 %v1179_v39  ;;  %v1114_v47 = vcvt.s32.f32 %v1112_v15 }
 0x2d9   : > { %v4191_v34 = vpop.xlane.xlu0 %1131 }
 0x2da   : > { %vm1133_vm14 = vcmp.eq.f32.partialorder %v3949_v14, %v4191_v34 }
 0x2db   : > { %v1134_v44 = vsel %vm1133_vm14, %v1129_v40, inf }
 0x2dc   : > { %1135 = vmin.xlane.f32.xlu1 %v1134_v44  ;;  %v4917_v44 = vld [vmem:[#allocation71_spill] sm:$0xff] }
 0x2dd   : > { %v4196_v33 = vpop.xlane.xlu1 %1221  ;;  %v4198_v35 = vpop.xlane.xlu0 %1116 }
 0x2de   : > { %vm1223_vm4 = vcmp.eq.f32.partialorder %v3965_v17, %v4196_v33  ;;  %vm1118_vm12 = vcmp.eq.f32.partialorder %v3967_v27, %v4198_v35  ;;  %v1232_v17 = vand.u32 65535, %v3991_v1  ;;  %v1249_v27 = vcvt.s32.f32 %v1247_v22 }
 0x2df   : > { %v1224_v25 = vsel %vm1223_vm4, %v1219_v43, inf  ;;  %v1119_v16 = vsel %vm1118_vm12, %v1114_v47, inf  ;;  %v1292_v47 = vand.u32 65535, %v4079_v23 }
 0x2e0   : > { %1225 = vmin.xlane.f32.xlu1 %v1224_v25  ;;  %v1234_v24 = vcvt.s32.f32 %v1232_v17  ;;  %v1307_v25 = vand.u32 65535, %v4919_v54 }
 0x2e1   : > { %v4205_v14 = vpop.xlane.xlu0 %1206  ;;  %v1294_v17 = vcvt.s32.f32 %v1292_v47  ;;  %v4931_v47 = vld [vmem:[#allocation25_spill] sm:$0xff] }
 0x2e2   : > { %vm1208_vm13 = vcmp.eq.f32.partialorder %v3976_v7, %v4205_v14  ;;  %v1322_v7 = vand.u32 65535, %v4007_v8 }
 0x2e3   : > { %v1209_v6 = vsel %vm1208_vm13, %v1204_v26, inf  ;;  %v1397_v26 = vand.u32 65535, %v4092_v18 }
 0x2e4   : > { %1120 = vmin.xlane.f32.xlu1 %v1119_v16  ;;  %1210 = vmin.xlane.f32.xlu0 %v1209_v6  ;;  %v1324_v49 = vcvt.s32.f32 %v1322_v7  ;;  %v1309_v6 = vcvt.s32.f32 %v1307_v25 }
 0x2e5   : > { %v1399_v18 = vcvt.s32.f32 %v1397_v26  ;;  %v2379_v26 = vsel %vm2327_vm6, %v4931_v47, -inf }
 0x2ed   : > { %v4212_v3 = vpop.xlane.xlu1 %1251 }
 0x2ee   : > { %v4214_v59 = vpop.xlane.xlu0 %1236  ;;  %vm1253_vm5 = vcmp.eq.f32.partialorder %v3998_v42, %v4212_v3 }
 0x2ef   : > { %vm1238_vm3 = vcmp.eq.f32.partialorder %v4001_v19, %v4214_v59  ;;  %v1254_v4 = vsel %vm1253_vm5, %v1249_v27, inf  ;;  %v1277_v19 = vand.u32 65535, %v4032_v57 }
 0x2f0   : > { %1255 = vmin.xlane.f32.xlu1 %v1254_v4  ;;  %v1239_v62 = vsel %vm1238_vm3, %v1234_v24, inf  ;;  %v1384_v4 = vcvt.s32.f32 %v1382_v9 }
 0x2f1   : > { %v4221_v1 = vpop.xlane.xlu1 %1341  ;;  %1240 = vmin.xlane.f32.xlu0 %v1239_v62  ;;  %v1279_v28 = vcvt.s32.f32 %v1277_v19  ;;  %v4920_v62 = vld [vmem:[#allocation36_spill] sm:$0xff] }
 0x2f2   : > { %v4223_v13 = vpop.xlane.xlu0 %1326  ;;  %vm1343_vm10 = vcmp.eq.f32.partialorder %v4017_v46, %v4221_v1  ;;  %v1264_v46 = vcvt.s32.f32 %v1262_v53  ;;  %v4924_v53 = vld [vmem:[#allocation17_spill] sm:$0xff] }
 0x2f3   : > { %vm1328_vm15 = vcmp.eq.f32.partialorder %v4019_v58, %v4223_v13  ;;  %v1344_v8 = vsel %vm1343_vm10, %v1339_v48, inf  ;;  %v1352_v58 = vand.u32 65535, %v4051_v45  ;;  %v2367_v63 = vsel %vm2327_vm6, %v4924_v53, -inf }
 0x2f4   : > { %1345 = vmin.xlane.f32.xlu1 %v1344_v8  ;;  %v1329_v42 = vsel %vm1328_vm15, %v1324_v49, inf  ;;  %v4921_v49 = vld [vmem:[#allocation37_spill] sm:$0xff]  ;;  %v4922_v8 = vld [vmem:[#allocation15_spill] sm:$0xff] }
 0x2f5   : > { %1330 = vmin.xlane.f32.xlu0 %v1329_v42  ;;  %v1354_v15 = vcvt.s32.f32 %v1352_v58  ;;  %v2361_v42 = vsel %vm2327_vm6, %v4922_v8, -inf }
 0x2fd   : > { %v4232_v51 = vpop.xlane.xlu1 %1281 }
 0x2fe   : > { %v4234_v39 = vpop.xlane.xlu0 %1266  ;;  %vm1283_vm2 = vcmp.eq.f32.partialorder %v4042_v56, %v4232_v51  ;;  %v4918_v56 = vld [vmem:[#allocation72_spill] sm:$0xff] }
 0x2ff   : > { %vm1268_vm9 = vcmp.eq.f32.partialorder %v4916_v61, %v4234_v39  ;;  %v1284_v10 = vsel %vm1283_vm2, %v1279_v28, inf  ;;  %v4925_v28 = vld [vmem:[#allocation18_spill] sm:$0xff]  ;;  %v4926_v61 = vld [vmem:[#allocation21_spill] sm:$0xff] }
 0x300   : > { %1285 = vmin.xlane.f32.xlu1 %v1284_v10  ;;  %v1269_v57 = vsel %vm1268_vm9, %v1264_v46, inf  ;;  %v2364_v46 = vsel %vm2327_vm6, %v4925_v28, -inf  ;;  %v2373_v10 = vsel %vm2327_vm6, %v4926_v61, -inf }
 0x301   : > { %v4241_v50 = vpop.xlane.xlu1 %1371  ;;  %1270 = vmin.xlane.f32.xlu0 %v1269_v57  ;;  %v4927_v57 = vld [vmem:[#allocation22_spill] sm:$0xff] }
 0x302   : > { %v4243_v40 = vpop.xlane.xlu0 %1356  ;;  %vm1373_vm7 = vcmp.eq.f32.partialorder %v4917_v44, %v4241_v50 }
 0x303   : > { %vm1358_vm8 = vcmp.eq.f32.partialorder %v4918_v56, %v4243_v40  ;;  %v1374_v45 = vsel %vm1373_vm7, %v1369_v12, inf  ;;  %v2370_v12 = vsel %vm2327_vm6, %v4927_v57, -inf }
 0x304   : > { %1375 = vmin.xlane.f32.xlu1 %v1374_v45  ;;  %v1359_v43 = vsel %vm1358_vm8, %v1354_v15, inf  ;;  %v4928_v15 = vld [vmem:[#allocation38_spill] sm:$0xff]  ;;  %v4929_v45 = vld [vmem:[#allocation39_spill] sm:$0xff] }
 0x305   : > { %1360 = vmin.xlane.f32.xlu0 %v1359_v43  ;;  %v4930_v43 = vld [vmem:[#allocation40_spill] sm:$0xff] }
 0x306   : > { %v1550_v54 = vrot.slane %v4930_v43, 4 }
 0x308   : > { %vm1551_vm12 = vcmp.lt.s32.totalorder %v4930_v43, %v1550_v54 }
 0x309   : > { %v1552_v8 = vsel %vm1551_vm12, %v4930_v43, %v1550_v54 }
 0x30d   : > { %v4252_v16 = vpop.xlane.xlu1 %1311 }
 0x30e   : > { %v4254_v22 = vpop.xlane.xlu0 %1296  ;;  %vm1313_vm11 = vcmp.eq.f32.partialorder %v4086_v52, %v4252_v16 }
 0x30f   : > { %vm1298_vm0 = vcmp.eq.f32.partialorder %v4089_v37, %v4254_v22  ;;  %v1314_v27 = vsel %vm1313_vm11, %v1309_v6, inf  ;;  %v4932_v6 = vld [vmem:[#allocation26_spill] sm:$0xff] }
 0x310   : > { %1315 = vmin.xlane.f32.xlu1 %v1314_v27  ;;  %v1299_v24 = vsel %vm1298_vm0, %v1294_v17, inf  ;;  %v2376_v17 = vsel %vm2327_vm6, %v4932_v6, -inf  ;;  %v4933_v27 = vld [vmem:[#allocation41_spill] sm:$0xff] }
 0x311   : > { %v4261_v23 = vpop.xlane.xlu1 %1401  ;;  %1300 = vmin.xlane.f32.xlu0 %v1299_v24  ;;  %v1589_v24 = vrot.slane %v4933_v27, 4 }
 0x312   : > { %v4263_v7 = vpop.xlane.xlu0 %1386  ;;  %vm1403_vm14 = vcmp.eq.f32.partialorder %v4101_v32, %v4261_v23  ;;  %v4923_v32 = vld [vmem:[#allocation16_spill] sm:$0xff] }
 0x313   : > { %vm1388_vm4 = vcmp.eq.f32.partialorder %v4103_v31, %v4263_v7  ;;  %v1404_v0 = vsel %vm1403_vm14, %v1399_v18, inf  ;;  %v2358_v19 = vsel %vm2327_vm6, %v4923_v32, -inf  ;;  %v4934_v18 = vld [vmem:[#allocation19_spill] sm:$0xff]  ;;  %vm1590_vm13 = vcmp.lt.s32.totalorder %v4933_v27, %v1589_v24 }
 0x314   : > { %1405 = vmin.xlane.f32.xlu1 %v1404_v0  ;;  %v1389_v52 = vsel %vm1388_vm4, %v1384_v4, inf  ;;  %v2385_v4 = vsel %vm2327_vm6, %v4934_v18, -inf  ;;  %v4935_v0 = vld [vmem:[#allocation20_spill] sm:$0xff] }
 0x315   : > { %v4269_v37 = vpop.xlane.xlu1 %2169  ;;  %1390 = vmin.xlane.f32.xlu0 %v1389_v52  ;;  %v2382_v52 = vsel %vm2327_vm6, %v4935_v0, -inf  ;;  %v1078_v0 = vcvt.f32.s32 %v4144_v38 }
 0x316   : > { %v4298_v25 = vpop.xlane.xlu0 %2166 }
 0x318   : > { %2211 = vmax.xlane.f32.xlu1 %v4920_v62 }
 0x319   : > { %v4272_v48 = vpop.xlane.xlu1 %2175  ;;  %2208 = vmax.xlane.f32.xlu0 %v4921_v49 }
 0x31a   : > { %v4312_v62 = vpop.xlane.xlu0 %2172 }
 0x31c   : > { %2362 = vmax.xlane.f32.xlu1 %v2361_v42  ;;  %v4936_v42 = vld [vmem:[#allocation23_spill] sm:$0xff] }
 0x31d   : > { %v4279_v31 = vpop.xlane.xlu1 %2332  ;;  %2359 = vmax.xlane.f32.xlu0 %v2358_v19  ;;  %v2391_v32 = vsel %vm2327_vm6, %v4936_v42, -inf  ;;  %v4937_v19 = vld [vmem:[#allocation24_spill] sm:$0xff] }
 0x31e   : > { %v2388_v53 = vsel %vm2327_vm6, %v4937_v19, -inf  ;;  %v4325_v61 = vpop.xlane.xlu0 %2329 }
 0x320   : > { %2368 = vmax.xlane.f32.xlu1 %v2367_v63  ;;  %v1553_v63 = vrot.slane %v1552_v8, 2 }
 0x321   : > { %v4285_v58 = vpop.xlane.xlu1 %2338  ;;  %2365 = vmax.xlane.f32.xlu0 %v2364_v46  ;;  %v1591_v46 = vsel %vm1590_vm13, %v4933_v27, %v1589_v24 }
 0x322   : > { %vm1554_vm5 = vcmp.lt.s32.totalorder %v1552_v8, %v1553_v63  ;;  %v4332_v47 = vpop.xlane.xlu0 %2335 }
 0x323   : > { %v1555_v54 = vsel %vm1554_vm5, %v1552_v8, %v1553_v63  ;;  %v1168_v63 = vcvt.f32.s32 %v4151_v2 }
 0x324   : > { %2374 = vmax.xlane.f32.xlu1 %v2373_v10  ;;  %v4938_v10 = vld [vmem:[#allocation42_spill] sm:$0xff]  ;;  %v1556_v6 = vrot.slane %v1555_v54, 1 }
 0x325   : > { %v4291_v44 = vpop.xlane.xlu1 %2181  ;;  %2371 = vmax.xlane.f32.xlu0 %v2370_v12  ;;  %v1563_v57 = vrot.slane %v4938_v10, 4  ;;  %v1592_v12 = vrot.slane %v1591_v46, 2  ;;  %v1169_v41 = vshll.u32 %v1168_v63, 16 }
 0x326   : > { %vm1557_vm2 = vcmp.lt.s32.totalorder %v1555_v54, %v1556_v6  ;;  %v4342_v8 = vpop.xlane.xlu0 %2178 }
 0x327   : > { %vm1564_vm3 = vcmp.lt.s32.totalorder %v4938_v10, %v1563_v57  ;;  %vm1593_vm10 = vcmp.lt.s32.totalorder %v1591_v46, %v1592_v12  ;;  %v1558_v19 = vsel %vm1557_vm2, %v1555_v54, %v1556_v6  ;;  %v1063_v54 = vcvt.f32.s32 %v4156_v21  ;;  %v4944_v6 = vld [vmem:[#allocation52_spill] sm:$0xff] }
 0x328   : > { %2217 = vmax.xlane.f32.xlu1 %v4928_v15  ;;  %v1594_v27 = vsel %vm1593_vm10, %v1591_v46, %v1592_v12 }
 0x329   : > { %v4294_v56 = vpop.xlane.xlu1 %2187  ;;  %2214 = vmax.xlane.f32.xlu0 %v4929_v45  ;;  %v4939_v45 = vld [vmem:[#allocation43_spill] sm:$0xff]  ;;  %v1064_v21 = vshll.u32 %v1063_v54, 16 }
 0x32a   : > { %v1602_v43 = vrot.slane %v4939_v45, 4  ;;  %v4349_v12 = vpop.xlane.xlu0 %2184 }
 0x32c   : > { %2380 = vmax.xlane.f32.xlu1 %v2379_v26  ;;  %vm1603_vm15 = vcmp.lt.s32.totalorder %v4939_v45, %v1602_v43 }
 0x32d   : > { %v4304_v9 = vpop.xlane.xlu1 %2193  ;;  %2377 = vmax.xlane.f32.xlu0 %v2376_v17  ;;  %v1565_v17 = vsel %vm1564_vm3, %v4938_v10, %v1563_v57  ;;  %v1108_v57 = vcvt.f32.s32 %v4167_v11 }
 0x32e   : > { %v1566_v18 = vrot.slane %v1565_v17, 2 }
 0x330   : > { %2386 = vmax.xlane.f32.xlu1 %v2385_v4  ;;  %v1604_v4 = vsel %vm1603_vm15, %v4939_v45, %v1602_v43  ;;  %vm1567_vm9 = vcmp.lt.s32.totalorder %v1565_v17, %v1566_v18  ;;  %v4943_v45 = vld [vmem:[#allocation14_spill] sm:$0xff] }
 0x331   : > { %v4314_v49 = vpop.xlane.xlu1 %2344  ;;  %2383 = vmax.xlane.f32.xlu0 %v2382_v52  ;;  %v1595_v52 = vrot.slane %v1594_v27, 1  ;;  %v1605_v42 = vrot.slane %v1604_v4, 2  ;;  %vm1727_vm11 = vcmp.eq.s32.totalorder %v1558_v19, %v4943_v45  ;;  %v1568_v36 = vsel %vm1567_vm9, %v1565_v17, %v1566_v18 }
 0x332   : > { %v1153_v18 = vcvt.f32.s32 %v4161_v55 }
 0x333   : > { %vm1596_vm7 = vcmp.lt.s32.totalorder %v1594_v27, %v1595_v52  ;;  %vm4345_vm8 = vcmp.lt.s32.totalorder %v1604_v4, %v1605_v42 }
 0x334   : > { %2392 = vmax.xlane.f32.xlu1 %v2391_v32  ;;  %v1597_v43 = vsel %vm1596_vm7, %v1594_v27, %v1595_v52  ;;  %v1569_v27 = vrot.slane %v1568_v36, 1  ;;  %v1607_v17 = vsel %vm4345_vm8, %v1604_v4, %v1605_v42  ;;  %v4362_v52 = vpop.xlane.xlu0 %2190  ;;  %v4948_v42 = vld [vmem:[#allocation9_spill] sm:$0xff] }
 0x335   : > { %v4322_v28 = vpop.xlane.xlu1 %2350  ;;  %2389 = vmax.xlane.f32.xlu0 %v2388_v53  ;;  %v1079_v53 = vshll.u32 %v1078_v0, 16  ;;  %vm1733_vm4 = vcmp.eq.s32.totalorder %v1597_v43, %v4943_v45  ;;  %4946 = vst [vmem:[#allocation30_spill] sm:$0xff] %v4362_v52  ;;  %vm1726_vm3 = vcmp.eq.s32.totalorder %v1558_v19, %v4948_v42  ;;  %vm1732_vm7 = vcmp.eq.s32.totalorder %v1597_v43, %v4948_v42 }
 0x336   : > { %vm4369_vm10 = vcmp.lt.s32.totalorder %v1568_v36, %v1569_v27 }
 0x339   : > { %v4328_v15 = vpop.xlane.xlu1 %2356 }
 0x33d   : > { %v4334_v26 = vpop.xlane.xlu1 %2199 }
 0x33e   : > { %4940 = vst [vmem:[#allocation29_spill] sm:$0xff] %v4334_v26 }
 0x341   : > { %v4338_v24 = vpop.xlane.xlu1 %2205 }
 0x345   : > { %v1076_v32 = vpop.xlane.xlu1 %1075 }
 0x346   : > { %v1077_v10 = vcvt.f32.s32 %v1076_v32  ;;  %v4808_v32 = vmov 0.0  }
 0x348   : > { %v1080_v46 = vadd.s32 %v1079_v53, %v1077_v10  ;;  %v4945_v10 = vld [vmem:[#allocation44_spill] sm:$0xff] }
 0x349   : > { %v1166_v38 = vpop.xlane.xlu1 %1165  ;;  %v1576_v60 = vrot.slane %v4945_v10, 4 }
 0x34a   : > { %vm1703_vm0 = vcmp.eq.s32.totalorder %v1080_v46, %v4944_v6  ;;  %v1167_v2 = vcvt.f32.s32 %v1166_v38  ;;  %v4947_v38 = vld [vmem:[#allocation45_spill] sm:$0xff] }
 0x34b   : > { %vm1751_vm14 = vmand %vm1703_vm0, %vm1727_vm11  ;;  %vm1577_vm5 = vcmp.lt.s32.totalorder %v4945_v10, %v1576_v60 }
 0x34c   : > { %v1170_v0 = vadd.s32 %v1169_v41, %v1167_v2  ;;  %v2702_v53 = vsel %vm1751_vm14, 1.0, %v4808_v32  ;;  %v1615_v2 = vrot.slane %v4947_v38, 4 }
 0x34d   : > { %v1061_v26 = vpop.xlane.xlu1 %1060  ;;  %v1825_v29 = vsel %vm400_vm1, %v2702_v53, 0.0 }
 0x34e   : > { %vm1709_vm12 = vcmp.eq.s32.totalorder %v1170_v0, %v4944_v6  ;;  %v1062_v41 = vcvt.f32.s32 %v1061_v26  ;;  %1826 = vadd.xlane.f32.xlu1 %v1825_v29  ;;  %v1608_v29 = vrot.slane %v1607_v17, 1  ;;  %v1154_v26 = vshll.u32 %v1153_v18, 16 }
 0x34f   : > { %vm1757_vm13 = vmand %vm1709_vm12, %vm1733_vm4  ;;  %vm4378_vm9 = vcmp.lt.s32.totalorder %v4947_v38, %v1615_v2 }
 0x350   : > { %v1065_v63 = vadd.s32 %v1064_v21, %v1062_v41  ;;  %v2708_v46 = vsel %vm1757_vm13, 1.0, %v4808_v32  ;;  %v1578_v41 = vsel %vm1577_vm5, %v4945_v10, %v1576_v60  ;;  %vm1609_vm8 = vcmp.lt.s32.totalorder %v1607_v17, %v1608_v29 }
 0x351   : > { %v1151_v53 = vpop.xlane.xlu1 %1150  ;;  %v1843_v4 = vsel %vm400_vm1, %v2708_v46, 0.0  ;;  %v4382_v46 = vpop.xlane.xlu0 %2341  ;;  %v1610_v43 = vsel %vm1609_vm8, %v1607_v17, %v1608_v29 }
 0x352   : > { %vm1702_vm15 = vcmp.eq.s32.totalorder %v1065_v63, %v4944_v6  ;;  %v1152_v54 = vcvt.f32.s32 %v1151_v53  ;;  %1844 = vadd.xlane.f32.xlu1 %v1843_v4  ;;  %v1571_v63 = vsel %vm4369_vm10, %v1568_v36, %v1569_v27  ;;  %v1109_v53 = vshll.u32 %v1108_v57, 16 }
 0x353   : > { %vm1750_vm2 = vmand %vm1702_vm15, %vm1726_vm3  ;;  %v1198_v4 = vcvt.f32.s32 %v4172_v20  ;;  %vm1729_vm14 = vcmp.eq.s32.totalorder %v1571_v63, %v4943_v45  ;;  %v1617_v36 = vsel %vm4378_vm9, %v4947_v38, %v1615_v2  ;;  %v1093_v27 = vcvt.f32.s32 %v4177_v30 }
 0x354   : > { %v1155_v0 = vadd.s32 %v1154_v26, %v1152_v54  ;;  %v2701_v21 = vsel %vm1750_vm2, 1.0, %v4808_v32  ;;  %v1579_v54 = vrot.slane %v1578_v41, 2  ;;  %vm1735_vm5 = vcmp.eq.s32.totalorder %v1610_v43, %v4943_v45 }
 0x355   : > { %v1106_v18 = vpop.xlane.xlu1 %1105  ;;  %v1822_v11 = vsel %vm400_vm1, %v2701_v21, 0.0  ;;  %v1199_v20 = vshll.u32 %v1198_v4, 16  ;;  %v4398_v57 = vpop.xlane.xlu0 %2347  ;;  %v1094_v38 = vshll.u32 %v1093_v27, 16  ;;  %v1183_v30 = vcvt.f32.s32 %v4181_v5 }
 0x356   : > { %vm1708_vm11 = vcmp.eq.s32.totalorder %v1155_v0, %v4944_v6  ;;  %v1107_v60 = vcvt.f32.s32 %v1106_v18  ;;  %1823 = vadd.xlane.f32.xlu0 %v1822_v11  ;;  %vm1580_vm13 = vcmp.lt.s32.totalorder %v1578_v41, %v1579_v54  ;;  %v1618_v11 = vrot.slane %v1617_v36, 2 }
 0x357   : > { %vm1756_vm0 = vmand %vm1708_vm11, %vm1732_vm7  ;;  %v1581_v2 = vsel %vm1580_vm13, %v1578_v41, %v1579_v54  ;;  %vm1728_vm2 = vcmp.eq.s32.totalorder %v1571_v63, %v4948_v42  ;;  %v1184_v5 = vshll.u32 %v1183_v30, 16  ;;  %vm1734_vm8 = vcmp.eq.s32.totalorder %v1610_v43, %v4948_v42  ;;  %v4954_v63 = vld [vmem:[#allocation47_spill] sm:$0xff] }
 0x358   : > { %v1110_v10 = vadd.s32 %v1109_v53, %v1107_v60  ;;  %v2707_v26 = vsel %vm1756_vm0, 1.0, %v4808_v32  ;;  %vm1619_vm15 = vcmp.lt.s32.totalorder %v1617_v36, %v1618_v11  ;;  %v1582_v27 = vrot.slane %v1581_v2, 1 }
 0x359   : > { %v1196_v52 = vpop.xlane.xlu1 %1195  ;;  %v1840_v21 = vsel %vm400_vm1, %v2707_v26, 0.0  ;;  %v4406_v4 = vpop.xlane.xlu0 %2353  ;;  %v4953_v26 = vld [vmem:[#allocation46_spill] sm:$0xff]  ;;  %v1620_v41 = vsel %vm1619_vm15, %v1617_v36, %v1618_v11 }
 0x35a   : > { %vm1705_vm4 = vcmp.eq.s32.totalorder %v1110_v10, %v4944_v6  ;;  %v1197_v55 = vcvt.f32.s32 %v1196_v52  ;;  %1841 = vadd.xlane.f32.xlu0 %v1840_v21  ;;  %v1628_v21 = vrot.slane %v4953_v26, 4 }
 0x35b   : > { %vm1753_vm12 = vmand %vm1705_vm4, %vm1729_vm14  ;;  %vm1583_vm14 = vcmp.lt.s32.totalorder %v1581_v2, %v1582_v27 }
 0x35c   : > { %v1200_v0 = vadd.s32 %v1199_v20, %v1197_v55  ;;  %v2704_v18 = vsel %vm1753_vm12, 1.0, %v4808_v32  ;;  %vm1629_vm11 = vcmp.lt.s32.totalorder %v4953_v26, %v1628_v21  ;;  %v1584_v43 = vsel %vm1583_vm14, %v1581_v2, %v1582_v27 }
 0x35d   : > { %v1091_v17 = vpop.xlane.xlu1 %1090  ;;  %v1831_v29 = vsel %vm400_vm1, %v2704_v18, 0.0  ;;  %v1667_v18 = vrot.slane %v4954_v63, 4  ;;  %v1213_v27 = vcvt.f32.s32 %v4205_v14 }
 0x35e   : > { %vm1711_vm3 = vcmp.eq.s32.totalorder %v1200_v0, %v4944_v6  ;;  %v1092_v52 = vcvt.f32.s32 %v1091_v17  ;;  %1832 = vadd.xlane.f32.xlu1 %v1831_v29  ;;  %v1138_v17 = vcvt.f32.s32 %v4191_v34  ;;  %v1621_v29 = vrot.slane %v1620_v41, 1 }
 0x35f   : > { %vm1759_vm10 = vmand %vm1711_vm3, %vm1735_vm5  ;;  %vm1668_vm12 = vcmp.lt.s32.totalorder %v4954_v63, %v1667_v18  ;;  %v1228_v34 = vcvt.f32.s32 %v4196_v33  ;;  %vm1731_vm5 = vcmp.eq.s32.totalorder %v1584_v43, %v4943_v45  ;;  %v1214_v14 = vshll.u32 %v1213_v27, 16 }
 0x360   : > { %v1095_v19 = vadd.s32 %v1094_v38, %v1092_v52  ;;  %v2710_v53 = vsel %vm1759_vm10, 1.0, %v4808_v32  ;;  %v4419_v38 = vpop.xlane.xlu0 %2196  ;;  %v1630_v52 = vsel %vm1629_vm11, %v4953_v26, %v1628_v21  ;;  %vm1622_vm13 = vcmp.lt.s32.totalorder %v1620_v41, %v1621_v29 }
 0x361   : > { %v1181_v60 = vpop.xlane.xlu1 %1180  ;;  %v1849_v10 = vsel %vm400_vm1, %v2710_v53, 0.0  ;;  %v1623_v2 = vsel %vm1622_vm13, %v1620_v41, %v1621_v29  ;;  %v1669_v26 = vsel %vm1668_vm12, %v4954_v63, %v1667_v18  ;;  %v1229_v21 = vshll.u32 %v1228_v34, 16 }
 0x362   : > { %vm1704_vm9 = vcmp.eq.s32.totalorder %v1095_v19, %v4944_v6  ;;  %v1182_v20 = vcvt.f32.s32 %v1181_v60  ;;  %1850 = vadd.xlane.f32.xlu1 %v1849_v10  ;;  %v1139_v19 = vshll.u32 %v1138_v17, 16  ;;  %v1631_v10 = vrot.slane %v1630_v52, 2 }
 0x363   : > { %vm1752_vm7 = vmand %vm1704_vm9, %vm1728_vm2  ;;  %vm1737_vm2 = vcmp.eq.s32.totalorder %v1623_v2, %v4943_v45  ;;  %v1670_v63 = vrot.slane %v1669_v26, 2  ;;  %vm1736_vm12 = vcmp.eq.s32.totalorder %v1623_v2, %v4948_v42  ;;  %v1243_v2 = vcvt.f32.s32 %v4214_v59 }
 0x364   : > { %v1185_v54 = vadd.s32 %v1184_v5, %v1182_v20  ;;  %v2703_v55 = vsel %vm1752_vm7, 1.0, %v4808_v32  ;;  %v1123_v5 = vcvt.f32.s32 %v4198_v35  ;;  %v4427_v20 = vpop.xlane.xlu0 %2202  ;;  %vm4434_vm15 = vcmp.lt.s32.totalorder %v1630_v52, %v1631_v10 }
 0x365   : > { %v1828_v0 = vsel %vm400_vm1, %v2703_v55, 0.0  ;;  %vm1671_vm14 = vcmp.lt.s32.totalorder %v1669_v26, %v1670_v63 }
 0x366   : > { %vm1710_vm0 = vcmp.eq.s32.totalorder %v1185_v54, %v4944_v6  ;;  %1829 = vadd.xlane.f32.xlu0 %v1828_v0  ;;  %v1124_v17 = vshll.u32 %v1123_v5, 16  ;;  %v1633_v5 = vsel %vm4434_vm15, %v1630_v52, %v1631_v10  ;;  %v4958_v52 = vld [vmem:[#allocation49_spill] sm:$0xff] }
 0x367   : > { %vm1758_vm4 = vmand %vm1710_vm0, %vm1734_vm8  ;;  %vm1730_vm0 = vcmp.eq.s32.totalorder %v1584_v43, %v4948_v42  ;;  %v1680_v10 = vrot.slane %v4958_v52, 4 }
 0x368   : > { %v2709_v36 = vsel %vm1758_vm4, 1.0, %v4808_v32 }
 0x369   : > { %v1136_v11 = vpop.xlane.xlu1 %1135  ;;  %v1846_v30 = vsel %vm400_vm1, %v2709_v36, 0.0 }
 0x36a   : > { %v1137_v53 = vcvt.f32.s32 %v1136_v11  ;;  %1847 = vadd.xlane.f32.xlu0 %v1846_v30  ;;  %v4957_v30 = vld [vmem:[#allocation48_spill] sm:$0xff] }
 0x36c   : > { %v1140_v60 = vadd.s32 %v1139_v19, %v1137_v53  ;;  %v1641_v19 = vrot.slane %v4957_v30, 4 }
 0x36d   : > { %v1226_v54 = vpop.xlane.xlu1 %1225 }
 0x36e   : > { %vm1707_vm3 = vcmp.eq.s32.totalorder %v1140_v60, %v4944_v6  ;;  %v1227_v33 = vcvt.f32.s32 %v1226_v54  ;;  %vm1642_vm13 = vcmp.lt.s32.totalorder %v4957_v30, %v1641_v19 }
 0x36f   : > { %vm1755_vm10 = vmand %vm1707_vm3, %vm1731_vm5  ;;  %v1643_v35 = vsel %vm1642_vm13, %v4957_v30, %v1641_v19  ;;  %v1333_v30 = vcvt.f32.s32 %v4223_v13 }
 0x370   : > { %v1230_v55 = vadd.s32 %v1229_v21, %v1227_v33  ;;  %v2706_v0 = vsel %vm1755_vm10, 1.0, %v4808_v32  ;;  %v1634_v21 = vrot.slane %v1633_v5, 1  ;;  %vm1681_vm10 = vcmp.lt.s32.totalorder %v4958_v52, %v1680_v10 }
 0x371   : > { %v1121_v36 = vpop.xlane.xlu1 %1120  ;;  %v1211_v11 = vpop.xlane.xlu0 %1210  ;;  %v1837_v41 = vsel %vm400_vm1, %v2706_v0, 0.0  ;;  %v1258_v0 = vcvt.f32.s32 %v4212_v3  ;;  %v1682_v59 = vsel %vm1681_vm10, %v4958_v52, %v1680_v10  ;;  %v1334_v52 = vshll.u32 %v1333_v30, 16 }
 0x372   : > { %vm1713_vm9 = vcmp.eq.s32.totalorder %v1230_v55, %v4944_v6  ;;  %v1122_v18 = vcvt.f32.s32 %v1121_v36  ;;  %v1212_v29 = vcvt.f32.s32 %v1211_v11  ;;  %1838 = vadd.xlane.f32.xlu1 %v1837_v41  ;;  %v1672_v55 = vsel %vm1671_vm14, %v1669_v26, %v1670_v63 }
 0x373   : > { %vm1761_vm7 = vmand %vm1713_vm9, %vm1737_vm2  ;;  %vm1635_vm3 = vcmp.lt.s32.totalorder %v1633_v5, %v1634_v21  ;;  %v1644_v41 = vrot.slane %v1643_v35, 2  ;;  %v1348_v26 = vcvt.f32.s32 %v4221_v1  ;;  %v1288_v30 = vcvt.f32.s32 %v4232_v51 }
 0x374   : > { %v1125_v34 = vadd.s32 %v1124_v17, %v1122_v18  ;;  %v1215_v53 = vadd.s32 %v1214_v14, %v1212_v29  ;;  %v2712_v60 = vsel %vm1761_vm7, 1.0, %v4808_v32  ;;  %v1673_v17 = vrot.slane %v1672_v55, 1 }
 0x375   : > { %v1855_v54 = vsel %vm400_vm1, %v2712_v60, 0.0  ;;  %v1259_v14 = vshll.u32 %v1258_v0, 16  ;;  %v1636_v18 = vsel %vm1635_vm3, %v1633_v5, %v1634_v21  ;;  %v1244_v29 = vshll.u32 %v1243_v2, 16  ;;  %v4961_v60 = vld [vmem:[#allocation50_spill] sm:$0xff] }
 0x376   : > { %vm1706_vm8 = vcmp.eq.s32.totalorder %v1125_v34, %v4944_v6  ;;  %vm1712_vm11 = vcmp.eq.s32.totalorder %v1215_v53, %v4944_v6  ;;  %1856 = vadd.xlane.f32.xlu1 %v1855_v54  ;;  %vm4463_vm15 = vcmp.lt.s32.totalorder %v1672_v55, %v1673_v17  ;;  %v1654_v54 = vrot.slane %v4961_v60, 4 }
 0x377   : > { %vm1754_vm4 = vmand %vm1706_vm8, %vm1730_vm0  ;;  %vm1739_vm2 = vcmp.eq.s32.totalorder %v1636_v18, %v4943_v45  ;;  %vm1738_vm9 = vcmp.eq.s32.totalorder %v1636_v18, %v4948_v42  ;;  %vm1645_vm7 = vcmp.lt.s32.totalorder %v1643_v35, %v1644_v41  ;;  %v1349_v1 = vshll.u32 %v1348_v26, 16 }
 0x378   : > { %v2705_v27 = vsel %vm1754_vm4, 1.0, %v4808_v32  ;;  %vm1760_vm5 = vmand %vm1712_vm11, %vm1736_vm12  ;;  %v1683_v21 = vrot.slane %v1682_v59, 2  ;;  %v1675_v0 = vsel %vm4463_vm15, %v1672_v55, %v1673_v17  ;;  %vm1655_vm15 = vcmp.lt.s32.totalorder %v4961_v60, %v1654_v54  ;;  %v4962_v17 = vld [vmem:[#allocation51_spill] sm:$0xff] }
 0x379   : > { %v1834_v33 = vsel %vm400_vm1, %v2705_v27, 0.0  ;;  %v2711_v43 = vsel %vm1760_vm5, 1.0, %v4808_v32  ;;  %vm1745_vm12 = vcmp.eq.s32.totalorder %v1675_v0, %v4943_v45  ;;  %vm1744_vm10 = vcmp.eq.s32.totalorder %v1675_v0, %v4948_v42 }
 0x37a   : > { %1835 = vadd.xlane.f32.xlu0 %v1834_v33  ;;  %v1852_v11 = vsel %vm400_vm1, %v2711_v43, 0.0  ;;  %vm1684_vm13 = vcmp.lt.s32.totalorder %v1682_v59, %v1683_v21  ;;  %v1273_v53 = vcvt.f32.s32 %v4234_v39 }
 0x37d   : > { %v1256_v36 = vpop.xlane.xlu1 %1255 }
 0x37e   : > { %v1257_v63 = vcvt.f32.s32 %v1256_v36  ;;  %1853 = vadd.xlane.f32.xlu0 %v1852_v11  ;;  %v1241_v3 = vpop.xlane.xlu0 %1240  ;;  %v1646_v36 = vsel %vm1645_vm7, %v1643_v35, %v1644_v41  ;;  %v1693_v41 = vrot.slane %v4962_v17, 4 }
 0x37f   : > { %v1242_v19 = vcvt.f32.s32 %v1241_v3  ;;  %v1647_v55 = vrot.slane %v1646_v36, 1 }
 0x380   : > { %v1260_v34 = vadd.s32 %v1259_v14, %v1257_v63  ;;  %vm1694_vm7 = vcmp.lt.s32.totalorder %v4962_v17, %v1693_v41 }
 0x381   : > { %v1245_v27 = vadd.s32 %v1244_v29, %v1242_v19  ;;  %v1346_v33 = vpop.xlane.xlu1 %1345  ;;  %v1685_v29 = vsel %vm1684_vm13, %v1682_v59, %v1683_v21 }
 0x382   : > { %vm1715_vm8 = vcmp.eq.s32.totalorder %v1260_v34, %v4944_v6  ;;  %v1347_v13 = vcvt.f32.s32 %v1346_v33  ;;  %v1331_v5 = vpop.xlane.xlu0 %1330  ;;  %v1656_v34 = vsel %vm1655_vm15, %v4961_v60, %v1654_v54  ;;  %v1695_v60 = vsel %vm1694_vm7, %v4962_v17, %v1693_v41 }
 0x383   : > { %vm1714_vm11 = vcmp.eq.s32.totalorder %v1245_v27, %v4944_v6  ;;  %v1332_v10 = vcvt.f32.s32 %v1331_v5  ;;  %vm1763_vm0 = vmand %vm1715_vm8, %vm1739_vm2  ;;  %v1686_v27 = vrot.slane %v1685_v29, 1  ;;  %v1378_v5 = vcvt.f32.s32 %v4241_v50 }
 0x384   : > { %v1350_v43 = vadd.s32 %v1349_v1, %v1347_v13  ;;  %v2714_v2 = vsel %vm1763_vm0, 1.0, %v4808_v32  ;;  %vm1762_vm14 = vmand %vm1714_vm11, %vm1738_vm9  ;;  %vm1648_vm9 = vcmp.lt.s32.totalorder %v1646_v36, %v1647_v55  ;;  %v1657_v1 = vrot.slane %v1656_v34, 2 }
 0x385   : > { %v1335_v11 = vadd.s32 %v1334_v52, %v1332_v10  ;;  %v1861_v14 = vsel %vm400_vm1, %v2714_v2, 0.0  ;;  %v2713_v26 = vsel %vm1762_vm14, 1.0, %v4808_v32  ;;  %v1289_v13 = vshll.u32 %v1288_v30, 16 }
 0x386   : > { %vm1721_vm4 = vcmp.eq.s32.totalorder %v1350_v43, %v4944_v6  ;;  %1862 = vadd.xlane.f32.xlu1 %v1861_v14  ;;  %v1858_v63 = vsel %vm400_vm1, %v2713_v26, 0.0  ;;  %v1649_v51 = vsel %vm1648_vm9, %v1646_v36, %v1647_v55  ;;  %v1274_v52 = vshll.u32 %v1273_v53, 16 }
 0x387   : > { %vm1720_vm5 = vcmp.eq.s32.totalorder %v1335_v11, %v4944_v6  ;;  %1859 = vadd.xlane.f32.xlu0 %v1858_v63  ;;  %vm1769_vm3 = vmand %vm1721_vm4, %vm1745_vm12  ;;  %v1363_v10 = vcvt.f32.s32 %v4243_v40  ;;  %vm4495_vm8 = vcmp.lt.s32.totalorder %v1685_v29, %v1686_v27  ;;  %vm1741_vm11 = vcmp.eq.s32.totalorder %v1649_v51, %v4943_v45 }
 0x388   : > { %v2720_v35 = vsel %vm1769_vm3, 1.0, %v4808_v32  ;;  %vm1768_vm2 = vmand %vm1720_vm5, %vm1744_vm10  ;;  %vm1740_vm0 = vcmp.eq.s32.totalorder %v1649_v51, %v4948_v42  ;;  %vm1658_vm14 = vcmp.lt.s32.totalorder %v1656_v34, %v1657_v1  ;;  %v1379_v50 = vshll.u32 %v1378_v5, 16 }
 0x389   : > { %v1879_v3 = vsel %vm400_vm1, %v2720_v35, 0.0  ;;  %v2719_v18 = vsel %vm1768_vm2, 1.0, %v4808_v32  ;;  %v1696_v11 = vrot.slane %v1695_v60, 2  ;;  %v1364_v14 = vshll.u32 %v1363_v10, 16 }
 0x38a   : > { %1880 = vadd.xlane.f32.xlu1 %v1879_v3  ;;  %v1876_v19 = vsel %vm400_vm1, %v2719_v18, 0.0  ;;  %v1688_v63 = vsel %vm4495_vm8, %v1685_v29, %v1686_v27  ;;  %v1659_v17 = vsel %vm1658_vm14, %v1656_v34, %v1657_v1  ;;  %v1408_v51 = vcvt.f32.s32 %v4261_v23 }
 0x38b   : > { %1877 = vadd.xlane.f32.xlu0 %v1876_v19  ;;  %vm1747_vm10 = vcmp.eq.s32.totalorder %v1688_v63, %v4943_v45  ;;  %vm1697_vm15 = vcmp.lt.s32.totalorder %v1695_v60, %v1696_v11  ;;  %vm1746_vm7 = vcmp.eq.s32.totalorder %v1688_v63, %v4948_v42  ;;  %v1660_v29 = vrot.slane %v1659_v17, 1 }
 0x38c   : > { %v1698_v27 = vsel %vm1697_vm15, %v1695_v60, %v1696_v11  ;;  %v1393_v60 = vcvt.f32.s32 %v4263_v7 }
 0x38d   : > { %v1286_v33 = vpop.xlane.xlu1 %1285  ;;  %v1699_v5 = vrot.slane %v1698_v27, 1 }
 0x38e   : > { %v1287_v59 = vcvt.f32.s32 %v1286_v33  ;;  %v1271_v21 = vpop.xlane.xlu0 %1270  ;;  %v1318_v33 = vcvt.f32.s32 %v4252_v16  ;;  %v1394_v23 = vshll.u32 %v1393_v60, 16 }
 0x38f   : > { %v1272_v0 = vcvt.f32.s32 %v1271_v21 }
 0x390   : > { %v1290_v39 = vadd.s32 %v1289_v13, %v1287_v59  ;;  %v1303_v13 = vcvt.f32.s32 %v4254_v22  ;;  %v1319_v21 = vshll.u32 %v1318_v33, 16  ;;  %v1409_v22 = vshll.u32 %v1408_v51, 16 }
 0x391   : > { %v1275_v43 = vadd.s32 %v1274_v52, %v1272_v0  ;;  %v1376_v2 = vpop.xlane.xlu1 %1375 }
 0x392   : > { %vm1717_vm4 = vcmp.eq.s32.totalorder %v1290_v39, %v4944_v6  ;;  %v1377_v36 = vcvt.f32.s32 %v1376_v2  ;;  %v1361_v40 = vpop.xlane.xlu0 %1360  ;;  %v1304_v39 = vshll.u32 %v1303_v13, 16 }
 0x393   : > { %vm1716_vm12 = vcmp.eq.s32.totalorder %v1275_v43, %v4944_v6  ;;  %v1362_v26 = vcvt.f32.s32 %v1361_v40  ;;  %vm1765_vm13 = vmand %vm1717_vm4, %vm1741_vm11  ;;  %vm1661_vm11 = vcmp.lt.s32.totalorder %v1659_v17, %v1660_v29 }
 0x394   : > { %v1380_v55 = vadd.s32 %v1379_v50, %v1377_v36  ;;  %v2716_v35 = vsel %vm1765_vm13, 1.0, %v4808_v32  ;;  %vm1764_vm5 = vmand %vm1716_vm12, %vm1740_vm0  ;;  %v1662_v0 = vsel %vm1661_vm11, %v1659_v17, %v1660_v29  ;;  %vm1700_vm0 = vcmp.lt.s32.totalorder %v1698_v27, %v1699_v5  ;;  %v4966_v29 = vld [vmem:[#allocation28_spill] sm:$0xff] }
 0x395   : > { %v1365_v41 = vadd.s32 %v1364_v14, %v1362_v26  ;;  %v1867_v3 = vsel %vm400_vm1, %v2716_v35, 0.0  ;;  %v2715_v18 = vsel %vm1764_vm5, 1.0, %v4808_v32  ;;  %vm1743_vm14 = vcmp.eq.s32.totalorder %v1662_v0, %v4943_v45 }
 0x396   : > { %vm1723_vm3 = vcmp.eq.s32.totalorder %v1380_v55, %v4944_v6  ;;  %1868 = vadd.xlane.f32.xlu1 %v1867_v3  ;;  %v1864_v30 = vsel %vm400_vm1, %v2715_v18, 0.0  ;;  %vm1742_vm12 = vcmp.eq.s32.totalorder %v1662_v0, %v4948_v42  ;;  %v1701_v7 = vsel %vm1700_vm0, %v1698_v27, %v1699_v5 }
 0x397   : > { %vm1722_vm2 = vcmp.eq.s32.totalorder %v1365_v41, %v4944_v6  ;;  %1865 = vadd.xlane.f32.xlu0 %v1864_v30  ;;  %vm1771_vm9 = vmand %vm1723_vm3, %vm1747_vm10  ;;  %vm1749_vm15 = vcmp.eq.s32.totalorder %v1701_v7, %v4943_v45  ;;  %v4965_v45 = vld [vmem:[#allocation27_spill] sm:$0xff] }
 0x398   : > { %v2722_v19 = vsel %vm1771_vm9, 1.0, %v4808_v32  ;;  %vm1770_vm8 = vmand %vm1722_vm2, %vm1746_vm7  ;;  %vm1748_vm7 = vcmp.eq.s32.totalorder %v1701_v7, %v4948_v42  ;;  %v2394_v42 = vsel %vm2327_vm6, %v4966_v29, -inf }
 0x399   : > { %v1885_v34 = vsel %vm400_vm1, %v2722_v19, 0.0  ;;  %v2721_v53 = vsel %vm1770_vm8, 1.0, %v4808_v32 }
 0x39a   : > { %1886 = vadd.xlane.f32.xlu1 %v1885_v34  ;;  %v1882_v1 = vsel %vm400_vm1, %v2721_v53, 0.0 }
 0x39b   : > { %1883 = vadd.xlane.f32.xlu0 %v1882_v1 }
 0x39d   : > { %v1316_v59 = vpop.xlane.xlu1 %1315 }
 0x39e   : > { %v1317_v52 = vcvt.f32.s32 %v1316_v59  ;;  %v1301_v10 = vpop.xlane.xlu0 %1300 }
 0x39f   : > { %v1302_v54 = vcvt.f32.s32 %v1301_v10 }
 0x3a0   : > { %v1320_v16 = vadd.s32 %v1319_v21, %v1317_v52 }
 0x3a1   : > { %v1305_v43 = vadd.s32 %v1304_v39, %v1302_v54  ;;  %v1406_v2 = vpop.xlane.xlu1 %1405 }
 0x3a2   : > { %vm1719_vm4 = vcmp.eq.s32.totalorder %v1320_v16, %v4944_v6  ;;  %v1407_v50 = vcvt.f32.s32 %v1406_v2  ;;  %v1391_v36 = vpop.xlane.xlu0 %1390  ;;  %v4970_v2 = vld [vmem:[#allocation5_spill] sm:$0xff] }
 0x3a3   : > { %vm1718_vm13 = vcmp.eq.s32.totalorder %v1305_v43, %v4944_v6  ;;  %v1392_v40 = vcvt.f32.s32 %v1391_v36  ;;  %vm1767_vm5 = vmand %vm1719_vm4, %vm1743_vm14 }
 0x3a4   : > { %v1410_v11 = vadd.s32 %v1409_v22, %v1407_v50  ;;  %v2718_v14 = vsel %vm1767_vm5, 1.0, %v4808_v32  ;;  %vm1766_vm3 = vmand %vm1718_vm13, %vm1742_vm12  ;;  %v4971_v50 = vld [vmem:[#allocation54_spill] sm:$0xff] }
 0x3a5   : > { %v1395_v26 = vadd.s32 %v1394_v23, %v1392_v40  ;;  %v1873_v63 = vsel %vm400_vm1, %v2718_v14, 0.0  ;;  %v2717_v55 = vsel %vm1766_vm3, 1.0, %v4808_v32  ;;  %v4537_v30 = vpop.xlane.xlu1 %2211  ;;  %vm2520_vm3 = vcmask 1041409  }
 0x3a6   : > { %vm1725_vm10 = vcmp.eq.s32.totalorder %v1410_v11, %v4944_v6  ;;  %1874 = vadd.xlane.f32.xlu1 %v1873_v63  ;;  %v1870_v35 = vsel %vm400_vm1, %v2717_v55, 0.0  ;;  %v4545_v34 = vpop.xlane.xlu0 %2208  ;;  %v4972_v11 = vld [vmem:[#allocation2_spill] sm:$0xff] }
 0x3a7   : > { %vm1724_vm2 = vcmp.eq.s32.totalorder %v1395_v26, %v4944_v6  ;;  %1871 = vadd.xlane.f32.xlu0 %v1870_v35  ;;  %vm1773_vm9 = vmand %vm1725_vm10, %vm1749_vm15  ;;  %v2397_v6 = vsel %vm2327_vm6, %v4965_v45, -inf  ;;  %v4973_v26 = vld [vmem:[#allocation55_spill] sm:$0xff] }
 0x3a8   : > { %v2724_v17 = vsel %vm1773_vm9, 1.0, %v4808_v32  ;;  %vm1772_vm8 = vmand %vm1724_vm2, %vm1748_vm7  ;;  %vm2522_vm9 = vcmask 1042434   ;;  %vm2582_vm7 = vcmask 7168  }
 0x3a9   : > { %v1891_v41 = vsel %vm400_vm1, %v2724_v17, 0.0  ;;  %v2723_v3 = vsel %vm1772_vm8, 1.0, %v4808_v32  ;;  %v4543_v19 = vpop.xlane.xlu1 %2362  ;;  %vm2587_vm8 = vcmask 15360  }
 0x3aa   : > { %1892 = vadd.xlane.f32.xlu1 %v1891_v41  ;;  %v1888_v18 = vsel %vm400_vm1, %v2723_v3, 0.0  ;;  %v4549_v27 = vpop.xlane.xlu0 %2359 }
 0x3ab   : > { %1889 = vadd.xlane.f32.xlu0 %v1888_v18  ;;  %v4974_v18 = vld [vmem:[#allocation3_spill] sm:$0xff] }
 0x3ad   : > { %v4547_v53 = vpop.xlane.xlu1 %2368 }
 0x3ae   : > { %2398 = vmax.xlane.f32.xlu1 %v2397_v6  ;;  %v4553_v1 = vpop.xlane.xlu0 %2365 }
 0x3af   : > { %2395 = vmax.xlane.f32.xlu0 %v2394_v42 }
 0x3b1   : > { %v4551_v33 = vpop.xlane.xlu1 %2374 }
 0x3b2   : > { %v4557_v5 = vpop.xlane.xlu0 %2371 }
 0x3b5   : > { %v4555_v13 = vpop.xlane.xlu1 %2217 }
 0x3b6   : > { %4967 = vst [vmem:[#allocation31_spill] sm:$0xff] %v4555_v13  ;;  %v4561_v21 = vpop.xlane.xlu0 %2214 }
 0x3b7   : > { %4968 = vst [vmem:[#allocation32_spill] sm:$0xff] %v4561_v21 }
 0x3b9   : > { %v4559_v59 = vpop.xlane.xlu1 %2380 }
 0x3ba   : > { %v4565_v52 = vpop.xlane.xlu0 %2377 }
 0x3bb   : > { %4969 = vst [vmem:[#allocation33_spill] sm:$0xff] %v4565_v52 }
 0x3bd   : > { %v4563_v51 = vpop.xlane.xlu1 %2386 }
 0x3be   : > { %v4569_v0 = vpop.xlane.xlu0 %2383 }
 0x3c1   : > { %v4567_v10 = vpop.xlane.xlu1 %2392 }
 0x3c2   : > { %v4571_v60 = vpop.xlane.xlu0 %2389 }
 0x3db   : > { %v1827_v39 = vpop.xlane.xlu1 %1826 }
 0x3dc   : > { %vm1895_vm1 = vcmp.gt.f32.partialorder %v1827_v39, 0.0  ;;  %v4975_v39 = vld [vmem:[#allocation53_spill] sm:$0xff] }
 0x3dd   : > { %v2726_v16 = vsel %vm1895_vm1, 1.0, %v4808_v32  ;;  %vm2592_vm1 = vcmask 18432  }
 0x3de   : > { %v2039_v22 = vmul.f32 %v2726_v16, %v4970_v2  ;;  %v2220_v36 = vmul.f32 %v2726_v16, %v4971_v50  ;;  %v2401_v23 = vmul.f32 %v2726_v16, %v4279_v31 }
 0x3df   : > { %v1845_v54 = vpop.xlane.xlu1 %1844 }
 0x3e0   : > { %vm1901_vm6 = vcmp.gt.f32.partialorder %v1845_v54, 0.0 }
 0x3e1   : > { %v2732_v7 = vsel %vm1901_vm6, 1.0, %v4808_v32 }
 0x3e2   : > { %v2045_v45 = vmul.f32 %v2732_v7, %v4974_v18  ;;  %v2226_v16 = vmul.f32 %v2732_v7, %v4269_v37 }
 0x3e3   : > { %v1824_v43 = vpop.xlane.xlu0 %1823 }
 0x3e4   : > { %vm1894_vm11 = vcmp.gt.f32.partialorder %v1824_v43, 0.0 }
 0x3e5   : > { %v2725_v40 = vsel %vm1894_vm11, 1.0, %v4808_v32 }
 0x3e6   : > { %v2038_v14 = vmul.f32 %v2725_v40, %v4972_v11  ;;  %v2219_v63 = vmul.f32 %v2725_v40, %v4973_v26  ;;  %v2400_v55 = vmul.f32 %v2725_v40, %v4325_v61 }
 0x3e7   : > { %v1842_v35 = vpop.xlane.xlu0 %1841 }
 0x3e8   : > { %v2062_v17 = vadd.f32 %v2039_v22, %v2038_v14  ;;  %v2243_v41 = vadd.f32 %v2220_v36, %v2219_v63  ;;  %v2424_v3 = vadd.f32 %v2401_v23, %v2400_v55  ;;  %vm1900_vm0 = vcmp.gt.f32.partialorder %v1842_v35, 0.0 }
 0x3e9   : > { %v2731_v6 = vsel %vm1900_vm0, 1.0, %v4808_v32  ;;  %v2407_v22 = vmul.f32 %v2732_v7, %v4322_v28 }
 0x3ea   : > { %v2063_v31 = vrot.slane %v2062_v17, 4  ;;  %v2244_v29 = vrot.slane %v2243_v41, 4  ;;  %v2425_v42 = vrot.slane %v2424_v3, 4  ;;  %v2044_v54 = vmul.f32 %v2731_v6, %v4975_v39 }
 0x3eb   : > { %v2225_v43 = vmul.f32 %v2731_v6, %v4298_v25  ;;  %v2406_v61 = vmul.f32 %v2731_v6, %v4398_v57  ;;  %v1833_v2 = vpop.xlane.xlu1 %1832 }
 0x3ec   : > { %v2064_v50 = vadd.f32 %v2063_v31, %v2062_v17  ;;  %v2083_v36 = vadd.f32 %v2045_v45, %v2044_v54  ;;  %v2245_v23 = vadd.f32 %v2244_v29, %v2243_v41  ;;  %v2426_v11 = vadd.f32 %v2425_v42, %v2424_v3  ;;  %v4976_v45 = vld [vmem:[#allocation7_spill] sm:$0xff] }
 0x3ed   : > { %v2264_v40 = vadd.f32 %v2226_v16, %v2225_v43  ;;  %v2445_v14 = vadd.f32 %v2407_v22, %v2406_v61  ;;  %vm1897_vm14 = vcmp.gt.f32.partialorder %v1833_v2, 0.0  ;;  %v4977_v16 = vld [vmem:[#allocation56_spill] sm:$0xff] }
 0x3ee   : > { %v2065_v26 = vrot.slane %v2064_v50, 2  ;;  %v2084_v63 = vrot.slane %v2083_v36, 4  ;;  %v2246_v35 = vrot.slane %v2245_v23, 2  ;;  %v2427_v37 = vrot.slane %v2426_v11, 2 }
 0x3ef   : > { %v1851_v55 = vpop.xlane.xlu1 %1850  ;;  %v2265_v18 = vrot.slane %v2264_v40, 4  ;;  %v2446_v39 = vrot.slane %v2445_v14, 4  ;;  %v2728_v6 = vsel %vm1897_vm14, 1.0, %v4808_v32 }
 0x3f0   : > { %v4589_v25 = vadd.f32 %v2065_v26, %v2064_v50  ;;  %v2085_v57 = vadd.f32 %v2084_v63, %v2083_v36  ;;  %vm1903_vm4 = vcmp.gt.f32.partialorder %v1851_v55, 0.0  ;;  %v4592_v7 = vadd.f32 %v2246_v35, %v2245_v23  ;;  %v4978_v50 = vld [vmem:[#allocation8_spill] sm:$0xff]  ;;  %v4979_v23 = vld [vmem:[#allocation57_spill] sm:$0xff]  ;;  %v4980_v26 = vld [vmem:[#allocation10_spill] sm:$0xff] }
 0x3f1   : > { %v2266_v17 = vadd.f32 %v2265_v18, %v2264_v40  ;;  %v4594_v41 = vadd.f32 %v2427_v37, %v2426_v11  ;;  %v2447_v3 = vadd.f32 %v2446_v39, %v2445_v14  ;;  %v2041_v31 = vmul.f32 %v2728_v6, %v4976_v45 }
 0x3f2   : > { %v2734_v29 = vsel %vm1903_vm4, 1.0, %v4808_v32  ;;  %v2086_v54 = vrot.slane %v2085_v57, 2  ;;  %v2222_v43 = vmul.f32 %v2728_v6, %v4977_v16  ;;  %v2403_v22 = vmul.f32 %v2728_v6, %v4285_v58  ;;  %v4981_v58 = vld [vmem:[#allocation11_spill] sm:$0xff] }
 0x3f3   : > { %v1830_v28 = vpop.xlane.xlu0 %1829  ;;  %v2267_v14 = vrot.slane %v2266_v17, 2  ;;  %v2047_v63 = vmul.f32 %v2734_v29, %v4980_v26  ;;  %v2228_v55 = vmul.f32 %v2734_v29, %v4272_v48  ;;  %v2248_v48 = vrot.slane %v4592_v7, 1 }
 0x3f4   : > { %vm1896_vm12 = vcmp.gt.f32.partialorder %v1830_v28, 0.0  ;;  %v2409_v28 = vmul.f32 %v2734_v29, %v4328_v15  ;;  %v2429_v21 = vrot.slane %v4594_v41, 1 }
 0x3f5   : > { %v2727_v61 = vsel %vm1896_vm12, 1.0, %v4808_v32  ;;  %v2268_v15 = vadd.f32 %v2267_v14, %v2266_v17 }
 0x3f6   : > { %v2040_v36 = vmul.f32 %v2727_v61, %v4978_v50  ;;  %v2221_v40 = vmul.f32 %v2727_v61, %v4979_v23  ;;  %v2402_v11 = vmul.f32 %v2727_v61, %v4332_v47  ;;  %v2448_v47 = vrot.slane %v2447_v3, 2 }
 0x3f7   : > { %v1848_v2 = vpop.xlane.xlu0 %1847 }
 0x3f8   : > { %vm1902_vm13 = vcmp.gt.f32.partialorder %v1848_v2, 0.0  ;;  %v2069_v35 = vadd.f32 %v2041_v31, %v2040_v36  ;;  %v2250_v18 = vadd.f32 %v2222_v43, %v2221_v40  ;;  %v2431_v37 = vadd.f32 %v2403_v22, %v2402_v11 }
 0x3f9   : > { %v2733_v39 = vsel %vm1902_vm13, 1.0, %v4808_v32  ;;  %v2087_v22 = vadd.f32 %v2086_v54, %v2085_v57  ;;  %v2449_v32 = vadd.f32 %v2448_v47, %v2447_v3 }
 0x3fa   : > { %v2046_v6 = vmul.f32 %v2733_v39, %v4981_v58  ;;  %v2227_v45 = vmul.f32 %v2733_v39, %v4312_v62  ;;  %v2408_v16 = vmul.f32 %v2733_v39, %v4406_v4  ;;  %v2070_v61 = vrot.slane %v2069_v35, 4 }
 0x3fb   : > { %v2251_v50 = vrot.slane %v2250_v18, 4  ;;  %v2432_v23 = vrot.slane %v2431_v37, 4 }
 0x3fc   : > { %v2090_v2 = vadd.f32 %v2047_v63, %v2046_v6  ;;  %v2271_v31 = vadd.f32 %v2228_v55, %v2227_v45  ;;  %v2452_v43 = vadd.f32 %v2409_v28, %v2408_v16  ;;  %v2071_v36 = vadd.f32 %v2070_v61, %v2069_v35 }
 0x3fd   : > { %v2252_v40 = vadd.f32 %v2251_v50, %v2250_v18  ;;  %v2433_v11 = vadd.f32 %v2432_v23, %v2431_v37  ;;  %v2088_v55 = vrot.slane %v2087_v22, 1  ;;  %v2269_v37 = vrot.slane %v2268_v15, 1 }
 0x3fe   : > { %v2091_v29 = vrot.slane %v2090_v2, 4  ;;  %v2272_v26 = vrot.slane %v2271_v31, 4  ;;  %v2453_v58 = vrot.slane %v2452_v43, 4  ;;  %v2072_v4 = vrot.slane %v2071_v36, 2 }
 0x3ff   : > { %v1839_v62 = vpop.xlane.xlu1 %1838  ;;  %v2253_v39 = vrot.slane %v2252_v40, 2  ;;  %v2434_v42 = vrot.slane %v2433_v11, 2  ;;  %v2450_v6 = vrot.slane %v2449_v32, 1  ;;  %v4982_v61 = vrot.slane %v4589_v25, 1 }
 0x400   : > { %v2092_v13 = vadd.f32 %v2091_v29, %v2090_v2  ;;  %v2273_v52 = vadd.f32 %v2272_v26, %v2271_v31  ;;  %v2454_v63 = vadd.f32 %v2453_v58, %v2452_v43  ;;  %v2073_v28 = vadd.f32 %v2072_v4, %v2071_v36 }
 0x401   : > { %v2254_v57 = vadd.f32 %v2253_v39, %v2252_v40  ;;  %v2435_v54 = vadd.f32 %v2434_v42, %v2433_v11  ;;  %vm1899_vm5 = vcmp.gt.f32.partialorder %v1839_v62, 0.0  ;;  %v2068_v50 = vadd.f32 %v4982_v61, %v4589_v25  ;;  %v4984_v39 = vld [vmem:[#allocation58_spill] sm:$0xff] }
 0x402   : > { %v2093_v35 = vrot.slane %v2092_v13, 2  ;;  %v2274_v18 = vrot.slane %v2273_v52, 2  ;;  %v2455_v17 = vrot.slane %v2454_v63, 2  ;;  %v2074_v3 = vrot.slane %v2073_v28, 1 }
 0x403   : > { %v1857_v14 = vpop.xlane.xlu1 %1856  ;;  %v2255_v45 = vrot.slane %v2254_v57, 1  ;;  %v2436_v23 = vrot.slane %v2435_v54, 1  ;;  %v4983_v42 = vmov 0.0   ;;  %v2249_v43 = vadd.f32 %v2248_v48, %v4592_v7 }
 0x404   : > { %v2094_v16 = vadd.f32 %v2093_v35, %v2092_v13  ;;  %v2275_v47 = vadd.f32 %v2274_v18, %v2273_v52  ;;  %vm1905_vm10 = vcmp.gt.f32.partialorder %v1857_v14, 0.0  ;;  %v2456_v2 = vadd.f32 %v2455_v17, %v2454_v63  ;;  %v4985_v35 = vld [vmem:[#allocation62_spill] sm:$0xff] }
 0x405   : > { %v2730_v31 = vsel %vm1899_vm5, 1.0, %v4983_v42  ;;  %v2430_v36 = vadd.f32 %v2429_v21, %v4594_v41  ;;  %v2075_v40 = vadd.f32 %v2074_v3, %v2073_v28  ;;  %v2256_v11 = vadd.f32 %v2255_v45, %v2254_v57  ;;  %v4988_v57 = vld [vmem:[#allocation63_spill] sm:$0xff] }
 0x406   : > { %v2089_v26 = vadd.f32 %v2088_v55, %v2087_v22  ;;  %v2270_v58 = vadd.f32 %v2269_v37, %v2268_v15  ;;  %v2451_v13 = vadd.f32 %v2450_v6, %v2449_v32  ;;  %v2736_v52 = vsel %vm1905_vm10, 1.0, %v4983_v42  ;;  %v4986_v32 = vld [vmem:[#allocation60_spill] sm:$0xff]  ;;  %v4987_v55 = vld [vmem:[#allocation59_spill] sm:$0xff] }
 0x407   : > { %v1836_v29 = vpop.xlane.xlu0 %1835  ;;  %v2095_v62 = vrot.slane %v2094_v16, 1  ;;  %v2276_v4 = vrot.slane %v2275_v47, 1  ;;  %v2043_v25 = vmul.f32 %v2730_v31, %v4984_v39  ;;  %v2224_v63 = vmul.f32 %v2730_v31, %v4985_v35 }
 0x408   : > { %v2437_v18 = vadd.f32 %v2436_v23, %v2435_v54  ;;  %v2457_v17 = vrot.slane %v2456_v2, 1  ;;  %v2405_v7 = vmul.f32 %v2730_v31, %v4314_v49  ;;  %vm1898_vm15 = vcmp.gt.f32.partialorder %v1836_v29, 0.0  ;;  %v4989_v23 = vld [vmem:[#allocation61_spill] sm:$0xff] }
 0x409   : > { %v4625_v21 = vsel %vm2520_vm3, %v2075_v40, %v2068_v50  ;;  %v4628_v41 = vsel %vm2520_vm3, %v2256_v11, %v2249_v43  ;;  %v2049_v48 = vmul.f32 %v2736_v52, %v4986_v32  ;;  %v2729_v22 = vsel %vm1898_vm15, 1.0, %v4983_v42 }
 0x40a   : > { %v2042_v28 = vmul.f32 %v2729_v22, %v4987_v55  ;;  %v2223_v14 = vmul.f32 %v2729_v22, %v4988_v57  ;;  %v2404_v54 = vmul.f32 %v2729_v22, %v4382_v46  ;;  %v2096_v49 = vadd.f32 %v2095_v62, %v2094_v16 }
 0x40b   : > { %v1854_v15 = vpop.xlane.xlu0 %1853  ;;  %v2277_v37 = vadd.f32 %v2276_v4, %v2275_v47  ;;  %v2230_v6 = vmul.f32 %v2736_v52, %v4291_v44  ;;  %v2458_v43 = vadd.f32 %v2457_v17, %v2456_v2  ;;  %v2411_v40 = vmul.f32 %v2736_v52, %v4543_v19 }
 0x40c   : > { %vm1904_vm2 = vcmp.gt.f32.partialorder %v1854_v15, 0.0  ;;  %v2076_v45 = vadd.f32 %v2043_v25, %v2042_v28  ;;  %v2257_v61 = vadd.f32 %v2224_v63, %v2223_v14  ;;  %v2438_v50 = vadd.f32 %v2405_v7, %v2404_v54 }
 0x40d   : > { %v2735_v3 = vsel %vm1904_vm2, 1.0, %v4983_v42  ;;  %v2570_v44 = vsel %vm2520_vm3, %v2437_v18, %v2430_v36  ;;  %v2524_v62 = vsel %vm2520_vm3, %v2096_v49, %v2089_v26 }
 0x40e   : > { %v2048_v31 = vmul.f32 %v2735_v3, %v4989_v23  ;;  %v2229_v11 = vmul.f32 %v2735_v3, %v4342_v8  ;;  %v2410_v29 = vmul.f32 %v2735_v3, %v4549_v27  ;;  %v2077_v46 = vrot.slane %v2076_v45, 4  ;;  %v4990_v23 = vld [vmem:[#allocation64_spill] sm:$0xff] }
 0x40f   : > { %v2258_v39 = vrot.slane %v2257_v61, 4  ;;  %v2439_v16 = vrot.slane %v2438_v50, 4  ;;  %v2548_v8 = vsel %vm2520_vm3, %v2277_v37, %v2270_v58  ;;  %v2572_v27 = vsel %vm2520_vm3, %v2458_v43, %v2451_v13 }
 0x410   : > { %v2097_v47 = vadd.f32 %v2049_v48, %v2048_v31  ;;  %v2278_v4 = vadd.f32 %v2230_v6, %v2229_v11  ;;  %v2459_v25 = vadd.f32 %v2411_v40, %v2410_v29  ;;  %v2078_v35 = vadd.f32 %v2077_v46, %v2076_v45 }
 0x411   : > { %v2259_v2 = vadd.f32 %v2258_v39, %v2257_v61  ;;  %v2440_v63 = vadd.f32 %v2439_v16, %v2438_v50 }
 0x412   : > { %v2098_v19 = vrot.slane %v2097_v47, 4  ;;  %v2279_v52 = vrot.slane %v2278_v4, 4  ;;  %v2460_v17 = vrot.slane %v2459_v25, 4  ;;  %v2079_v36 = vrot.slane %v2078_v35, 2 }
 0x413   : > { %v1863_v7 = vpop.xlane.xlu1 %1862  ;;  %v2260_v18 = vrot.slane %v2259_v2, 2  ;;  %v2441_v26 = vrot.slane %v2440_v63, 2 }
 0x414   : > { %v2099_v32 = vadd.f32 %v2098_v19, %v2097_v47  ;;  %v1860_v48 = vpop.xlane.xlu0 %1859  ;;  %v2280_v22 = vadd.f32 %v2279_v52, %v2278_v4  ;;  %v2461_v15 = vadd.f32 %v2460_v17, %v2459_v25  ;;  %vm1907_vm6 = vcmp.gt.f32.partialorder %v1863_v7, 0.0  ;;  %v4991_v4 = vld [vmem:[#allocation65_spill] sm:$0xff] }
 0x415   : > { %vm1906_vm11 = vcmp.gt.f32.partialorder %v1860_v48, 0.0  ;;  %v2080_v55 = vadd.f32 %v2079_v36, %v2078_v35  ;;  %v2261_v28 = vadd.f32 %v2260_v18, %v2259_v2  ;;  %v2442_v58 = vadd.f32 %v2441_v26, %v2440_v63 }
 0x416   : > { %v2100_v57 = vrot.slane %v2099_v32, 2  ;;  %v2281_v13 = vrot.slane %v2280_v22, 2  ;;  %v2462_v14 = vrot.slane %v2461_v15, 2  ;;  %v2738_v54 = vsel %vm1907_vm6, 1.0, %v4983_v42 }
 0x417   : > { %v2737_v49 = vsel %vm1906_vm11, 1.0, %v4983_v42  ;;  %v2081_v37 = vrot.slane %v2080_v55, 1  ;;  %v2262_v6 = vrot.slane %v2261_v28, 1  ;;  %v2443_v3 = vrot.slane %v2442_v58, 1  ;;  %v1881_v19 = vpop.xlane.xlu1 %1880 }
 0x418   : > { %v2101_v45 = vadd.f32 %v2100_v57, %v2099_v32  ;;  %v2282_v61 = vadd.f32 %v2281_v13, %v2280_v22  ;;  %v2463_v50 = vadd.f32 %v2462_v14, %v2461_v15  ;;  %v2051_v31 = vmul.f32 %v2738_v54, %v4990_v23  ;;  %v1878_v32 = vpop.xlane.xlu0 %1877  ;;  %v4992_v57 = vld [vmem:[#allocation66_spill] sm:$0xff]  ;;  %v4993_v14 = vld [vmem:[#allocation67_spill] sm:$0xff] }
 0x419   : > { %v2232_v43 = vmul.f32 %v2738_v54, %v4294_v56  ;;  %v2082_v40 = vadd.f32 %v2081_v37, %v2080_v55  ;;  %v2263_v11 = vadd.f32 %v2262_v6, %v2261_v28  ;;  %v2444_v29 = vadd.f32 %v2443_v3, %v2442_v58 }
 0x41a   : > { %v2102_v46 = vrot.slane %v2101_v45, 1  ;;  %v2283_v39 = vrot.slane %v2282_v61, 1  ;;  %v2464_v16 = vrot.slane %v2463_v50, 1  ;;  %v2413_v47 = vmul.f32 %v2738_v54, %v4547_v53 }
 0x41b   : > { %v2050_v25 = vmul.f32 %v2737_v49, %v4991_v4  ;;  %v2523_v35 = vsel %vm2522_vm9, %v2082_v40, %v4625_v21  ;;  %v2547_v56 = vsel %vm2522_vm9, %v2263_v11, %v4628_v41  ;;  %v2571_v2 = vsel %vm2522_vm9, %v2444_v29, %v2570_v44  ;;  %v4994_v29 = vld [vmem:[#allocation69_spill] sm:$0xff] }
 0x41c   : > { %v2103_v63 = vadd.f32 %v2102_v46, %v2101_v45  ;;  %v2583_v53 = vsel %vm2582_vm7, %v2523_v35, %v2547_v56  ;;  %v2284_v52 = vadd.f32 %v2283_v39, %v2282_v61  ;;  %v2465_v17 = vadd.f32 %v2464_v16, %v2463_v50 }
 0x41d   : > { %v2104_v7 = vadd.f32 %v2051_v31, %v2050_v25  ;;  %v2588_v36 = vsel %vm2587_vm8, %v2583_v53, %v2571_v2  ;;  %v2231_v26 = vmul.f32 %v2737_v49, %v4349_v12  ;;  %v2412_v21 = vmul.f32 %v2737_v49, %v4553_v1 }
 0x41e   : > { %v2525_v18 = vsel %vm2522_vm9, %v2103_v63, %v2524_v62  ;;  %2593 = vst.msk [vmem:[%s4655_s23] sm:$0x7] %vm2592_vm1, %v2588_v36  ;;  %v2549_v41 = vsel %vm2522_vm9, %v2284_v52, %v2548_v8  ;;  %v2573_v44 = vsel %vm2522_vm9, %v2465_v17, %v2572_v27  ;;  %vm1913_vm0 = vcmp.gt.f32.partialorder %v1881_v19, 0.0 }
 0x41f   : > { %v2584_v48 = vsel %vm2582_vm7, %v2525_v18, %v2549_v41  ;;  %v2105_v22 = vrot.slane %v2104_v7, 4  ;;  %v2285_v15 = vadd.f32 %v2232_v43, %v2231_v26  ;;  %v2466_v55 = vadd.f32 %v2413_v47, %v2412_v21 }
 0x420   : > { %v2589_v28 = vsel %vm2587_vm8, %v2584_v48, %v2573_v44  ;;  %v2744_v62 = vsel %vm1913_vm0, 1.0, %v4983_v42  ;;  %vm1912_vm14 = vcmp.gt.f32.partialorder %v1878_v32, 0.0 }
 0x421   : > { %2594 = vst.msk [vmem:[%s4655_s23 + $0x4] sm:$0x7] %vm2592_vm1, %v2589_v28  ;;  %v2286_v12 = vrot.slane %v2285_v15, 4  ;;  %v2467_v1 = vrot.slane %v2466_v55, 4  ;;  %v2743_v8 = vsel %vm1912_vm14, 1.0, %v4983_v42  ;;  %v2106_v27 = vadd.f32 %v2105_v22, %v2104_v7 }
 0x422   : > { %v2057_v13 = vmul.f32 %v2744_v62, %v4992_v57  ;;  %v2056_v54 = vmul.f32 %v2743_v8, %v4993_v14  ;;  %v2238_v3 = vmul.f32 %v2744_v62, %v4338_v24  ;;  %v2237_v45 = vmul.f32 %v2743_v8, %v4427_v20  ;;  %v4995_v20 = vld [vmem:[#allocation70_spill] sm:$0xff] }
 0x423   : > { %v1869_v58 = vpop.xlane.xlu1 %1868  ;;  %v2287_v37 = vadd.f32 %v2286_v12, %v2285_v15  ;;  %v2468_v6 = vadd.f32 %v2467_v1, %v2466_v55  ;;  %v2419_v61 = vmul.f32 %v2744_v62, %v4563_v51  ;;  %v2107_v23 = vrot.slane %v2106_v27, 2  ;;  %v4996_v51 = vld [vmem:[#allocation30_spill] sm:$0xff]  ;;  %v4997_v62 = vld [vmem:[#allocation73_spill] sm:$0xff] }
 0x424   : > { %v1866_v49 = vpop.xlane.xlu0 %1865  ;;  %vm1909_vm4 = vcmp.gt.f32.partialorder %v1869_v58, 0.0  ;;  %v2125_v31 = vadd.f32 %v2057_v13, %v2056_v54  ;;  %v2418_v43 = vmul.f32 %v2743_v8, %v4569_v0  ;;  %v2306_v47 = vadd.f32 %v2238_v3, %v2237_v45  ;;  %v4998_v14 = vld [vmem:[#allocation74_spill] sm:$0xff] }
 0x425   : > { %vm1908_vm12 = vcmp.gt.f32.partialorder %v1866_v49, 0.0  ;;  %v2740_v50 = vsel %vm1909_vm4, 1.0, %v4983_v42  ;;  %v2288_v11 = vrot.slane %v2287_v37, 2  ;;  %v2469_v16 = vrot.slane %v2468_v6, 2 }
 0x426   : > { %v2739_v40 = vsel %vm1908_vm12, 1.0, %v4983_v42  ;;  %v2053_v46 = vmul.f32 %v2740_v50, %v4994_v29  ;;  %v2234_v39 = vmul.f32 %v2740_v50, %v4304_v9  ;;  %v2415_v24 = vmul.f32 %v2740_v50, %v4551_v33 }
 0x427   : > { %v2052_v4 = vmul.f32 %v2739_v40, %v4995_v20  ;;  %v2233_v25 = vmul.f32 %v2739_v40, %v4996_v51  ;;  %v1887_v35 = vpop.xlane.xlu1 %1886  ;;  %v2108_v2 = vadd.f32 %v2107_v23, %v2106_v27  ;;  %v2126_v63 = vrot.slane %v2125_v31, 4 }
 0x428   : > { %v1884_v56 = vpop.xlane.xlu0 %1883  ;;  %v2487_v0 = vadd.f32 %v2419_v61, %v2418_v43  ;;  %v2289_v19 = vadd.f32 %v2288_v11, %v2287_v37  ;;  %v2414_v17 = vmul.f32 %v2739_v40, %v4557_v5  ;;  %v2470_v7 = vadd.f32 %v2469_v16, %v2468_v6 }
 0x429   : > { %v2111_v53 = vadd.f32 %v2053_v46, %v2052_v4  ;;  %v2292_v52 = vadd.f32 %v2234_v39, %v2233_v25  ;;  %v2307_v9 = vrot.slane %v2306_v47, 4  ;;  %vm1915_vm13 = vcmp.gt.f32.partialorder %v1887_v35, 0.0  ;;  %v5000_v25 = vld [vmem:[#allocation29_spill] sm:$0xff] }
 0x42a   : > { %vm1914_vm5 = vcmp.gt.f32.partialorder %v1884_v56, 0.0  ;;  %v2473_v18 = vadd.f32 %v2415_v24, %v2414_v17  ;;  %v2109_v26 = vrot.slane %v2108_v2, 1  ;;  %v2127_v21 = vadd.f32 %v2126_v63, %v2125_v31  ;;  %v4999_v24 = vld [vmem:[#allocation12_spill] sm:$0xff] }
 0x42b   : > { %v2112_v36 = vrot.slane %v2111_v53, 4  ;;  %v2293_v33 = vrot.slane %v2292_v52, 4  ;;  %v2488_v41 = vrot.slane %v2487_v0, 4  ;;  %v2746_v44 = vsel %vm1915_vm13, 1.0, %v4983_v42 }
 0x42c   : > { %v2474_v22 = vrot.slane %v2473_v18, 4  ;;  %v2745_v15 = vsel %vm1914_vm5, 1.0, %v4983_v42  ;;  %v2290_v55 = vrot.slane %v2289_v19, 1  ;;  %v2471_v28 = vrot.slane %v2470_v7, 1 }
 0x42d   : > { %v2113_v32 = vadd.f32 %v2112_v36, %v2111_v53  ;;  %v2294_v48 = vadd.f32 %v2293_v33, %v2292_v52  ;;  %v2308_v5 = vadd.f32 %v2307_v9, %v2306_v47  ;;  %v2059_v12 = vmul.f32 %v2746_v44, %v4997_v62  ;;  %v5001_v53 = vld [vmem:[#allocation4_spill] sm:$0xff]  ;;  %v5002_v9 = vld [vmem:[#allocation33_spill] sm:$0xff] }
 0x42e   : > { %v2475_v58 = vadd.f32 %v2474_v22, %v2473_v18  ;;  %v2240_v27 = vmul.f32 %v2746_v44, %v4537_v30  ;;  %v2421_v13 = vmul.f32 %v2746_v44, %v4567_v10  ;;  %v2058_v54 = vmul.f32 %v2745_v15, %v4998_v14 }
 0x42f   : > { %v2114_v1 = vrot.slane %v2113_v32, 2  ;;  %v2295_v8 = vrot.slane %v2294_v48, 2  ;;  %v2239_v49 = vmul.f32 %v2745_v15, %v4545_v34  ;;  %v2420_v37 = vmul.f32 %v2745_v15, %v4571_v60 }
 0x430   : > { %v2128_v6 = vrot.slane %v2127_v21, 2  ;;  %v2489_v3 = vadd.f32 %v2488_v41, %v2487_v0  ;;  %v2476_v45 = vrot.slane %v2475_v58, 2  ;;  %v2132_v50 = vadd.f32 %v2059_v12, %v2058_v54  ;;  %v5004_v54 = vld [vmem:[#allocation31_spill] sm:$0xff] }
 0x431   : > { %v2115_v61 = vadd.f32 %v2114_v1, %v2113_v32  ;;  %v2110_v23 = vadd.f32 %v2109_v26, %v2108_v2  ;;  %v2309_v31 = vrot.slane %v2308_v5, 2  ;;  %v2291_v40 = vadd.f32 %v2290_v55, %v2289_v19 }
 0x432   : > { %v2296_v11 = vadd.f32 %v2295_v8, %v2294_v48  ;;  %v2313_v10 = vadd.f32 %v2240_v27, %v2239_v49  ;;  %v2494_v29 = vadd.f32 %v2421_v13, %v2420_v37  ;;  %v4700_v46 = vadd.f32 %v2471_v28, %v2470_v7  ;;  %v5003_v27 = vld [vmem:[#allocation13_spill] sm:$0xff] }
 0x433   : > { %v1875_v57 = vpop.xlane.xlu1 %1874  ;;  %v4702_v34 = vadd.f32 %v2128_v6, %v2127_v21  ;;  %v2490_v60 = vrot.slane %v2489_v3, 2  ;;  %v2477_v39 = vadd.f32 %v2476_v45, %v2475_v58  ;;  %v2116_v16 = vrot.slane %v2115_v61, 1 }
 0x434   : > { %vm1911_vm10 = vcmp.gt.f32.partialorder %v1875_v57, 0.0  ;;  %v1872_v30 = vpop.xlane.xlu0 %1871  ;;  %v2133_v47 = vrot.slane %v2132_v50, 4  ;;  %v4705_v51 = vadd.f32 %v2309_v31, %v2308_v5  ;;  %v2297_v63 = vrot.slane %v2296_v11, 1 }
 0x435   : > { %v2742_v43 = vsel %vm1911_vm10, 1.0, %v4983_v42  ;;  %vm1910_vm15 = vcmp.gt.f32.partialorder %v1872_v30, 0.0  ;;  %v2314_v0 = vrot.slane %v2313_v10, 4  ;;  %v2495_v19 = vrot.slane %v2494_v29, 4 }
 0x436   : > { %v2055_v20 = vmul.f32 %v2742_v43, %v4999_v24  ;;  %v2236_v35 = vmul.f32 %v2742_v43, %v5000_v25  ;;  %v2417_v56 = vmul.f32 %v2742_v43, %v4559_v59  ;;  %v2741_v2 = vsel %vm1910_vm15, 1.0, %v4983_v42 }
 0x437   : > { %v1893_v4 = vpop.xlane.xlu1 %1892  ;;  %v2054_v52 = vmul.f32 %v2741_v2, %v5001_v53  ;;  %v2478_v17 = vrot.slane %v2477_v39, 1  ;;  %v2235_v7 = vmul.f32 %v2741_v2, %v4419_v38  ;;  %v2416_v36 = vmul.f32 %v2741_v2, %v5002_v9 }
 0x438   : > { %vm1917_vm2 = vcmp.gt.f32.partialorder %v1893_v4, 0.0  ;;  %v1890_v33 = vpop.xlane.xlu0 %1889  ;;  %v4713_v18 = vadd.f32 %v2490_v60, %v2489_v3  ;;  %v2117_v26 = vadd.f32 %v2116_v16, %v2115_v61  ;;  %v2134_v21 = vadd.f32 %v2133_v47, %v2132_v50  ;;  %v5005_v61 = vld [vmem:[#allocation6_spill] sm:$0xff] }
 0x439   : > { %v2118_v41 = vadd.f32 %v2055_v20, %v2054_v52  ;;  %v2130_v59 = vrot.slane %v4702_v34, 1  ;;  %v2299_v44 = vadd.f32 %v2236_v35, %v2235_v7  ;;  %v2480_v32 = vadd.f32 %v2417_v56, %v2416_v36 }
 0x43a   : > { %v2748_v48 = vsel %vm1917_vm2, 1.0, %v4983_v42  ;;  %v2298_v22 = vadd.f32 %v2297_v63, %v2296_v11  ;;  %v2315_v15 = vadd.f32 %v2314_v0, %v2313_v10  ;;  %vm1916_vm6 = vcmp.gt.f32.partialorder %v1890_v33, 0.0 }
 0x43b   : > { %v2119_v55 = vrot.slane %v2118_v41, 4  ;;  %v2479_v38 = vadd.f32 %v2478_v17, %v2477_v39  ;;  %v2496_v28 = vadd.f32 %v2495_v19, %v2494_v29  ;;  %v2300_v5 = vrot.slane %v2299_v44, 4  ;;  %v2399_v12 = vpop.xlane.xlu1 %2398 }
 0x43c   : > { %v2481_v62 = vrot.slane %v2480_v32, 4  ;;  %v2526_v1 = vsel %vm2520_vm3, %v2117_v26, %v2110_v23  ;;  %v2135_v8 = vrot.slane %v2134_v21, 2  ;;  %v2061_v57 = vmul.f32 %v2748_v48, %v5003_v27  ;;  %v2396_v6 = vpop.xlane.xlu0 %2395  ;;  %v5006_v23 = vld [vmem:[#allocation32_spill] sm:$0xff] }
 0x43d   : > { %v2120_v58 = vadd.f32 %v2119_v55, %v2118_v41  ;;  %v2301_v13 = vadd.f32 %v2300_v5, %v2299_v44  ;;  %v2242_v49 = vmul.f32 %v2748_v48, %v5004_v54  ;;  %v2747_v37 = vsel %vm1916_vm6, 1.0, %v4983_v42 }
 0x43e   : > { %v2482_v14 = vadd.f32 %v2481_v62, %v2480_v32  ;;  %v2316_v3 = vrot.slane %v2315_v15, 2  ;;  %v2060_v50 = vmul.f32 %v2747_v37, %v5005_v61  ;;  %v2423_v31 = vmul.f32 %v2748_v48, %v2399_v12 }
 0x43f   : > { %v2121_v45 = vrot.slane %v2120_v58, 2  ;;  %v2497_v43 = vrot.slane %v2496_v28, 2  ;;  %v2302_v30 = vrot.slane %v2301_v13, 2  ;;  %v2241_v10 = vmul.f32 %v2747_v37, %v5006_v23 }
 0x440   : > { %v2483_v11 = vrot.slane %v2482_v14, 2  ;;  %v2550_v29 = vsel %vm2520_vm3, %v2298_v22, %v2291_v40  ;;  %v2139_v39 = vadd.f32 %v2061_v57, %v2060_v50  ;;  %v2422_v16 = vmul.f32 %v2747_v37, %v2396_v6 }
 0x441   : > { %v2122_v60 = vadd.f32 %v2121_v45, %v2120_v58  ;;  %v2136_v47 = vadd.f32 %v2135_v8, %v2134_v21  ;;  %v2303_v24 = vadd.f32 %v2302_v30, %v2301_v13  ;;  %v2320_v42 = vadd.f32 %v2242_v49, %v2241_v10 }
 0x442   : > { %v2484_v20 = vadd.f32 %v2483_v11, %v2482_v14  ;;  %v2317_v4 = vadd.f32 %v2316_v3, %v2315_v15  ;;  %v2140_v35 = vrot.slane %v2139_v39, 4  ;;  %v2501_v56 = vadd.f32 %v2423_v31, %v2422_v16 }
 0x443   : > { %v2123_v25 = vrot.slane %v2122_v60, 1  ;;  %v2498_v2 = vadd.f32 %v2497_v43, %v2496_v28  ;;  %v2304_v63 = vrot.slane %v2303_v24, 1  ;;  %v2321_v19 = vrot.slane %v2320_v42, 4 }
 0x444   : > { %v2485_v0 = vrot.slane %v2484_v20, 1  ;;  %v2574_v53 = vsel %vm2520_vm3, %v2479_v38, %v4700_v46  ;;  %v2141_v40 = vadd.f32 %v2140_v35, %v2139_v39  ;;  %v2502_v17 = vrot.slane %v2501_v56, 4 }
 0x445   : > { %v2124_v52 = vadd.f32 %v2123_v25, %v2122_v60  ;;  %v2137_v7 = vrot.slane %v2136_v47, 1  ;;  %v2305_v9 = vadd.f32 %v2304_v63, %v2303_v24  ;;  %v2322_v33 = vadd.f32 %v2321_v19, %v2320_v42 }
 0x446   : > { %v2486_v36 = vadd.f32 %v2485_v0, %v2484_v20  ;;  %v2318_v26 = vrot.slane %v2317_v4, 1  ;;  %v2142_v41 = vrot.slane %v2141_v40, 2  ;;  %v2503_v44 = vadd.f32 %v2502_v17, %v2501_v56 }
 0x447   : > { %v2527_v21 = vsel %vm2522_vm9, %v2124_v52, %v2526_v1  ;;  %v2499_v32 = vrot.slane %v2498_v2, 1  ;;  %v2551_v48 = vsel %vm2522_vm9, %v2305_v9, %v2550_v29  ;;  %v2323_v15 = vrot.slane %v2322_v33, 2 }
 0x448   : > { %v2575_v22 = vsel %vm2522_vm9, %v2486_v36, %v2574_v53  ;;  %v2311_v46 = vrot.slane %v4705_v51, 1  ;;  %v2585_v55 = vsel %vm2582_vm7, %v2527_v21, %v2551_v48  ;;  %v2143_v38 = vadd.f32 %v2142_v41, %v2141_v40 }
 0x449   : > { %v2504_v28 = vrot.slane %v2503_v44, 2  ;;  %v2492_v5 = vrot.slane %v4713_v18, 1  ;;  %v2138_v62 = vadd.f32 %v2137_v7, %v2136_v47  ;;  %v2590_v12 = vsel %vm2587_vm8, %v2585_v55, %v2575_v22 }
 0x44a   : > { %v2324_v1 = vadd.f32 %v2323_v15, %v2322_v33  ;;  %v2319_v8 = vadd.f32 %v2318_v26, %v2317_v4  ;;  %2595 = vst.msk [vmem:[%s4655_s23 + $0x8] sm:$0x7] %vm2592_vm1, %v2590_v12  ;;  %v2144_v58 = vrot.slane %v2143_v38, 1  ;;  %v2131_v57 = vadd.f32 %v2130_v59, %v4702_v34 }
 0x44b   : > { %v2505_v27 = vadd.f32 %v2504_v28, %v2503_v44  ;;  %v2500_v13 = vadd.f32 %v2499_v32, %v2498_v2  ;;  %v2312_v54 = vadd.f32 %v2311_v46, %v4705_v51  ;;  %v2493_v6 = vadd.f32 %v2492_v5, %v4713_v18 }
 0x44c   : > { %v2325_v14 = vrot.slane %v2324_v1, 1  ;;  %v2145_v49 = vadd.f32 %v2144_v58, %v2143_v38  ;;  %v2528_v3 = vsel %vm2520_vm3, %v2138_v62, %v2131_v57 }
 0x44d   : > { %v2506_v37 = vrot.slane %v2505_v27, 1  ;;  %v2552_v61 = vsel %vm2520_vm3, %v2319_v8, %v2312_v54  ;;  %v2576_v34 = vsel %vm2520_vm3, %v2500_v13, %v2493_v6 }
 0x44e   : > { %v2326_v45 = vadd.f32 %v2325_v14, %v2324_v1  ;;  %v2529_v50 = vsel %vm2522_vm9, %v2145_v49, %v2528_v3 }
 0x44f   : > { %v2507_v31 = vadd.f32 %v2506_v37, %v2505_v27 }
 0x450   : > { %v2553_v43 = vsel %vm2522_vm9, %v2326_v45, %v2552_v61 }
 0x451   : > { %v2586_v59 = vsel %vm2582_vm7, %v2529_v50, %v2553_v43  ;;  %v2577_v51 = vsel %vm2522_vm9, %v2507_v31, %v2576_v34 }
 0x452   : > { %v2591_v30 = vsel %vm2587_vm8, %v2586_v59, %v2577_v51 }
 0x453   : > { %2596 = vst.msk [vmem:[%s4655_s23 + $0xc] sm:$0x7] %vm2592_vm1, %v2591_v30 }
 0x454 PF: > { %s12_s9 = sadd.s32 1, %s2964_s9  }
 0x455   : > { %p9_p4 = scmp.ge.s32.totalorder %s12_s9, 4  }
 0x457   :  { %11 = sbr.rel (!%p9_p4) target bundleno = 1 (0x1), region = 61 }

</bundles_post_ra>
